<compile_context>
chip_gen: v7x
topology: tpu7x:2x2x1
jax: 0.10.0
libtpu: 0.0.40
codegen_flags: <defaults>
</compile_context>

<pallas_src>
import functools

import numpy as np
import jax
import jax.numpy as jnp
from jax.experimental import pallas as pl
from jax.experimental.pallas import tpu as pltpu

F = 16          # feature channels
K1 = 25         # conv1 kernel (1, 25)
PAD1 = 12       # conv1 padding (0, 12)
K2 = 16         # separable depthwise kernel (1, 16)
PAD2 = 8        # separable depthwise padding (0, 8)
POOL_OUT = 15   # AdaptiveAvgPool2d((1, 15))
BN_EPS = 1e-5

LANE_G = 4                 # samples per pooled lane group (block-diag pool span)
MAX_GROUPS_PER_STEP = 16   # up to 64 samples per grid step (VMEM-bounded)


def _round_up(n, m):
    return -(-n // m) * m


def _elu(x):
    # PyTorch ELU, alpha=1.0 (f32 on the VPU; exp rides the EUP slot)
    return jnp.where(x > 0, x, jnp.exp(jnp.minimum(x, 0.0)) - 1.0)


def _layout(n_samples):
    """Static lane layout for a given n_samples (batch independent)."""
    T = n_samples
    Tin = T + 2 * PAD1                              # zero-padded conv1 input length
    W1 = _round_up(Tin, 128)                        # per-sample pre-pool lane block
    w = T // 4                                      # AvgPool2d((1,4)) output width
    w_out = w + 1                                   # separable depthwise output width
    W2 = _round_up(w + 2 * PAD2, 128 // LANE_G)     # per-sample post-pool lane block
    return dict(T=T, Tin=Tin, W1=W1, w=w, w_out=w_out, W2=W2,
                G1=LANE_G * W1, G2=LANE_G * W2, G2E=LANE_G * W2 + K2)


def eegnet_kernel(x_ref, wdw_ref, w1_ref, bdw_ref, p1_ref, wsd_ref, wpw_ref,
                  bpw_ref, g_ref, sblk_ref, bfc_ref, out_ref, *,
                  groups, G1, G2, L1):
    # ---- stage 0: depthwise over EEG channels, one wide f32 contraction ----
    # x_ref: [C, L1 + 128] raw zero-padded samples packed along the lane axis.
    z = jnp.dot(wdw_ref[...], x_ref[...],
                preferred_element_type=jnp.float32)               # [F, L1+128]

    # ---- stage 1: conv1 (1x25) + BN1/BN2 + ELU as 25 shifted-slice FMAs ----
    # (the 128 zero tail lanes give the k<=24 slices room; out-of-sample reads
    #  only land in per-sample columns the pooling matrix ignores)
    w1 = w1_ref[...]
    y = w1[:, 0:1] * z[:, 0:L1]
    for k in range(1, K1):
        y = y + w1[:, k:k + 1] * z[:, k:k + L1]
    y = _elu(y + bdw_ref[...])
    y16 = y.astype(jnp.bfloat16)          # bf16 operand for the pooling MXU dot

    # ---- stages 2-5: loop over LANE_G-sample groups, shared small constants ----
    p1 = p1_ref[...]
    wsd = wsd_ref[...]
    wpw = wpw_ref[...]
    bpw = bpw_ref[...]
    gt = g_ref[...]
    sblk = sblk_ref[...]
    per_f_cols = []
    for g in range(groups):
        yg = y16[:, g * G1:(g + 1) * G1]
        # AvgPool2d((1,4)) + per-sample zero placement: one bf16 MXU matmul
        pg = jnp.dot(yg, p1, preferred_element_type=jnp.float32)  # [F, G2+K2]
        # separable depthwise (1x16, pad 8): 16 shifted-slice VPU FMAs
        q = wsd[:, 0:1] * pg[:, 0:G2]
        for k in range(1, K2):
            q = q + wsd[:, k:k + 1] * pg[:, k:k + G2]
        # pointwise 1x1 conv (+ folded BN3) + ELU
        v = _elu(jnp.dot(wpw, q, preferred_element_type=jnp.float32) + bpw)
        # AdaptiveAvgPool2d((1,15)) + Linear(240,1) folded: weighted segment sum
        per_f_cols.append(jnp.dot(v * gt, sblk,
                                  preferred_element_type=jnp.float32))  # [F, LANE_G]

    per_f = jnp.concatenate(per_f_cols, axis=1)                    # [F, NB]
    logits = jnp.sum(per_f, axis=0, keepdims=True) + bfc_ref[0, 0]  # [1, NB]
    # sigmoid: divide on the EUP approx path, single lane-packed store
    out_ref[...] = pl.reciprocal(1.0 + jnp.exp(-logits), approx=True)


def init_params(key, n_channels):
    """Deterministic synthetic parameters (shapes from EEGNet2D.__init__).
    All convs are bias=False, exactly as in the reference module."""
    ks = jax.random.split(key, 9)

    def u(k, shape, lo=-0.1, hi=0.1):
        return jax.random.uniform(k, shape, jnp.float32, lo, hi)

    p = {
        "w_conv1": u(ks[0], (F, K1)),            # Conv2d(1, 16, (1, 25))
        "w_dw": u(ks[1], (F, n_channels)),       # Conv2d(16, 16, (C, 1), groups=16)
        "w_sd": u(ks[2], (F, K2)),               # sep. depthwise Conv2d(16,16,(1,16),groups=16)
        "w_pw": u(ks[3], (F, F)),                # pointwise Conv2d(16, 16, 1)
        "w_fc": u(ks[4], (1, F * POOL_OUT)),     # Linear(240, 1)
        "b_fc": u(ks[5], (1,)),
    }
    for i, kk in zip((1, 2, 3), (ks[6], ks[7], ks[8])):
        k1, k2, k3, k4 = jax.random.split(kk, 4)
        p[f"bn{i}_gamma"] = 1.0 + u(k1, (F,))
        p[f"bn{i}_beta"] = u(k2, (F,))
        p[f"bn{i}_mean"] = u(k3, (F,))
        p[f"bn{i}_var"] = 1.0 + u(k4, (F,), 0.0, 0.5)
    return p


def fold_params(p, n_channels, n_samples):
    """Fold inference BatchNorms into the convs and build the constant pool /
    head matrices for the lane-packed kernel (batch independent)."""
    C, T = n_channels, n_samples
    L = _layout(T)
    W1, W2, w, w_out = L["W1"], L["W2"], L["w"], L["w_out"]
    G1, G2, G2E = L["G1"], L["G2"], L["G2E"]

    def bn_affine(i):
        scale = p[f"bn{i}_gamma"] / jnp.sqrt(p[f"bn{i}_var"] + BN_EPS)
        shift = p[f"bn{i}_beta"] - p[f"bn{i}_mean"] * scale
        return scale, shift

    s1, sh1 = bn_affine(1)
    s2, sh2 = bn_affine(2)
    s3, sh3 = bn_affine(3)

    # conv1(+BN1 scale)+depthwise(+BN2 scale) reordered: channel reduction uses
    # the raw depthwise weights, the 25 temporal taps carry the (s1*s2) scale.
    w1_eff = (s2 * s1)[:, None] * p["w_conv1"]                          # [F, K1]
    bias_dw = (s2 * sh1 * jnp.sum(p["w_dw"], axis=1) + sh2)[:, None]    # [F, 1]

    # pointwise 1x1 conv with BN3 folded
    wpw_eff = s3[:, None] * p["w_pw"]                                   # [F, F]
    bias_pw = sh3[:, None]                                              # [F, 1]

    # AvgPool2d((1,4)) + per-sample placement at offset PAD2 (the zero padding
    # of the separable conv), block-diagonal over one LANE_G-sample group,
    # with K2 trailing zero columns so the depthwise taps are plain slices.
    p1 = np.zeros((G1, G2E), np.float32)
    for b in range(LANE_G):
        for j in range(w):
            p1[b * W1 + 4 * j: b * W1 + 4 * j + 4, b * W2 + PAD2 + j] = 0.25

    # AdaptiveAvgPool2d((1,15)) folded into fc: G[f, j] = sum_i wfc[f,i]*P2[j,i]
    p2 = np.zeros((w_out, POOL_OUT), np.float32)
    for i in range(POOL_OUT):
        s = (i * w_out) // POOL_OUT
        e = -((-(i + 1) * w_out) // POOL_OUT)
        p2[s:e, i] = 1.0 / (e - s)
    wfc2d = np.asarray(p["w_fc"], np.float32).reshape(F, POOL_OUT)      # flatten (f, i)
    g = wfc2d @ p2.T                                                    # [F, w_out]
    gtile = np.zeros((F, G2), np.float32)
    for b in range(LANE_G):
        gtile[:, b * W2: b * W2 + w_out] = g

    sum_blk = np.zeros((G2, LANE_G), np.float32)
    for b in range(LANE_G):
        sum_blk[b * W2:(b + 1) * W2, b] = 1.0

    return {
        "wdw": p["w_dw"].astype(jnp.float32),          # [F, C] channel contraction
        "w1": w1_eff.astype(jnp.float32),              # [F, K1] temporal taps
        "bias_dw": bias_dw.astype(jnp.float32),
        "p1": jnp.asarray(p1).astype(jnp.bfloat16),    # exact 0/0.25 in bf16
        "wsd": p["w_sd"].astype(jnp.float32),
        "wpw": wpw_eff.astype(jnp.float32),
        "bias_pw": bias_pw.astype(jnp.float32),
        "gtile": jnp.asarray(gtile),
        "sum_blk": jnp.asarray(sum_blk),
        "bfc": p["b_fc"].reshape(1, 1).astype(jnp.float32),
    }


@jax.jit
def eegnet2d_forward(x, kp):
    """x: [B, 1, C, T] float32 (PyTorch NCHW).  Returns [B, 1] sigmoid probs."""
    B, _, C, T = x.shape
    L = _layout(T)
    W1, G1, G2, G2E = L["W1"], L["G1"], L["G2"], L["G2E"]

    groups = max(1, min(MAX_GROUPS_PER_STEP, -(-B // LANE_G)))
    NB = groups * LANE_G                      # samples per grid step
    num_steps = -(-B // NB)
    Bp = num_steps * NB
    L1 = NB * W1                              # per-step packed lane width
    L1E = L1 + 128                            # + zero tail for the tap slices

    assert kp["p1"].shape == (G1, G2E), "params built for another n_samples"

    # Raw input layout (no im2col): each sample gets a W1-lane block with its
    # T samples at offset PAD1 (= the conv1 zero padding), NB samples packed
    # side by side per grid step, plus 128 zero tail lanes.
    x2 = x[:, 0].astype(jnp.float32)                                  # [B, C, T]
    if Bp != B:
        x2 = jnp.pad(x2, ((0, Bp - B), (0, 0), (0, 0)))
    xb = jnp.pad(x2, ((0, 0), (0, 0), (PAD1, W1 - PAD1 - T)))         # [Bp, C, W1]
    xb = xb.reshape(num_steps, NB, C, W1).transpose(0, 2, 1, 3)       # [S, C, NB, W1]
    xb = xb.reshape(num_steps, C, L1)
    xp = jnp.pad(xb, ((0, 0), (0, 0), (0, 128)))                      # [S, C, L1E]

    kernel = functools.partial(eegnet_kernel, groups=groups, G1=G1, G2=G2, L1=L1)

    # VMEM budget: input block (double-buffered) + f32 working slabs + pool matrix
    vmem_est = int(2 * C * L1E * 4 + 6 * F * L1E * 4 + 2 * G1 * G2E * 2 + (2 << 20))
    vmem_limit = int(min(64 * 1024 * 1024, max(32 * 1024 * 1024, 2 * vmem_est)))

    out = pl.pallas_call(
        kernel,
        out_shape=jax.ShapeDtypeStruct((num_steps, 1, NB), jnp.float32),
        grid=(num_steps,),
        in_specs=[
            pl.BlockSpec((None, C, L1E), lambda s: (s, 0, 0)),        # raw padded x slab
            pl.BlockSpec((F, C), lambda s: (0, 0)),                   # channel contraction w
            pl.BlockSpec((F, K1), lambda s: (0, 0)),                  # conv1 taps (+BN scale)
            pl.BlockSpec((F, 1), lambda s: (0, 0)),                   # fused BN bias
            pl.BlockSpec((G1, G2E), lambda s: (0, 0)),                # pool1 + placement (bf16)
            pl.BlockSpec((F, K2), lambda s: (0, 0)),                  # sep. depthwise taps
            pl.BlockSpec((F, F), lambda s: (0, 0)),                   # pointwise (+BN3)
            pl.BlockSpec((F, 1), lambda s: (0, 0)),                   # pointwise bias
            pl.BlockSpec((F, G2), lambda s: (0, 0)),                  # pool2+fc head weights
            pl.BlockSpec((G2, LANE_G), lambda s: (0, 0)),             # per-sample segment sum
            pl.BlockSpec(memory_space=pltpu.MemorySpace.SMEM),        # fc bias scalar
        ],
        out_specs=pl.BlockSpec((None, 1, NB), lambda s: (s, 0, 0)),
        compiler_params=pltpu.CompilerParams(
            dimension_semantics=("parallel",),
            vmem_limit_bytes=vmem_limit),
    )(xp, kp["wdw"], kp["w1"], kp["bias_dw"], kp["p1"], kp["wsd"], kp["wpw"],
      kp["bias_pw"], kp["gtile"], kp["sum_blk"], kp["bfc"])

    return out.reshape(Bp, 1)[:B]                                     # [B, 1]


def reference_forward(x, p):
    """Straightforward (unfused) f32 JAX reference of EEGNet2D.forward, eval mode."""
    B, _, C, T = x.shape

    def bn(y, i, axis):
        shape = [1] * y.ndim
        shape[axis] = F
        scale = (p[f"bn{i}_gamma"] / jnp.sqrt(p[f"bn{i}_var"] + BN_EPS)).reshape(shape)
        shift = (p[f"bn{i}_beta"]
                 - p[f"bn{i}_mean"] * p[f"bn{i}_gamma"]
                 / jnp.sqrt(p[f"bn{i}_var"] + BN_EPS)).reshape(shape)
        return y * scale + shift

    elu = lambda t: jnp.where(t > 0, t, jnp.exp(jnp.minimum(t, 0.0)) - 1.0)

    x2 = x[:, 0]
    xp = jnp.pad(x2, ((0, 0), (0, 0), (PAD1, PAD1)))
    cols = jnp.stack([xp[:, :, k:k + T] for k in range(K1)], -1)       # [B,C,T,K1]
    y = jnp.einsum("bctk,fk->bfct", cols, p["w_conv1"])                # conv1
    y = bn(y, 1, 1)
    y = jnp.einsum("bfct,fc->bft", y, p["w_dw"])                       # depthwise (C,1)
    y = bn(y, 2, 1)
    y = elu(y)
    W = T // 4
    y = y[:, :, :4 * W].reshape(B, F, W, 4).mean(-1)                   # AvgPool2d((1,4))
    yp = jnp.pad(y, ((0, 0), (0, 0), (PAD2, PAD2)))
    w_out = W + 1
    z = jnp.stack([yp[:, :, k:k + w_out] for k in range(K2)], -1)      # [B,F,w_out,K2]
    z = jnp.einsum("bfjk,fk->bfj", z, p["w_sd"])                       # sep depthwise
    u = jnp.einsum("bfj,gf->bgj", z, p["w_pw"])                        # pointwise
    u = bn(u, 3, 1)
    v = elu(u)
    segs = []
    for i in range(POOL_OUT):                                          # AdaptiveAvgPool2d
        s = (i * w_out) // POOL_OUT
        e = -((-(i + 1) * w_out) // POOL_OUT)
        segs.append(v[:, :, s:e].mean(-1))
    y3 = jnp.stack(segs, -1)                                           # [B, F, 15]
    logit = y3.reshape(B, F * POOL_OUT) @ p["w_fc"].T + p["b_fc"]
    return jax.nn.sigmoid(logit)


if __name__ == "__main__":
    key = jax.random.PRNGKey(0)
    kx, kparam = jax.random.split(key)

    # small shapes consistent with EEGNet2D: batch=2, 1 input map, n_channels=8
    # EEG channels, n_samples=64 (T//4 + 1 >= 15 so AdaptiveAvgPool2d((1,15)) is
    # well posed).
    B, C, T = 2, 8, 64
    x = jax.random.normal(kx, (B, 1, C, T), jnp.float32)

    params = init_params(kparam, C)
    kernel_params = fold_params(params, C, T)

    out = eegnet2d_forward(x, kernel_params)
    out = jax.block_until_ready(out)
    assert out.shape == (B, 1), out.shape
    assert bool(jnp.all((out >= 0.0) & (out <= 1.0)))

    # correctness check against an unfused f32 JAX reference (bf16 is only used
    # for the exact-valued pooling matmul, so probabilities agree tightly)
    ref = reference_forward(x, params)
    err = float(jnp.max(jnp.abs(out - ref)))
    assert err < 1e-2, f"max |kernel - reference| = {err}"
    print("KERNEL_OK")
</pallas_src>

<mosaic_0001>
module attributes {stable_mosaic.version = 11 : i64} {
  func.func @eegnet_kernel(%arg0: i32, %arg1: memref<1x8x640xf32, #tpu.memory_space<vmem>>, %arg2: memref<16x8xf32, #tpu.memory_space<vmem>>, %arg3: memref<16x25xf32, #tpu.memory_space<vmem>>, %arg4: memref<16x1xf32, #tpu.memory_space<vmem>>, %arg5: memref<512x144xbf16, #tpu.memory_space<vmem>>, %arg6: memref<16x16xf32, #tpu.memory_space<vmem>>, %arg7: memref<16x16xf32, #tpu.memory_space<vmem>>, %arg8: memref<16x1xf32, #tpu.memory_space<vmem>>, %arg9: memref<16x128xf32, #tpu.memory_space<vmem>>, %arg10: memref<128x4xf32, #tpu.memory_space<vmem>>, %arg11: memref<1x1xf32, #tpu.memory_space<smem>>, %arg12: memref<1x1x4xf32, #tpu.memory_space<vmem>>) attributes {dimension_semantics = [#tpu.dimension_semantics<parallel>], iteration_bounds = array<i64: 1>, scalar_prefetch = 0 : i64, scratch_operands = 0 : i64, tpu.core_type = #tpu.core_type<tc>, window_params = [{transform_indices = @transform_0, window_bounds = array<i64: 1, 8, 640>}, {pipeline_mode = #tpu.pipeline_mode<synchronous>, transform_indices = @transform_1, window_bounds = array<i64: 16, 8>}, {pipeline_mode = #tpu.pipeline_mode<synchronous>, transform_indices = @transform_2, window_bounds = array<i64: 16, 25>}, {pipeline_mode = #tpu.pipeline_mode<synchronous>, transform_indices = @transform_3, window_bounds = array<i64: 16, 1>}, {pipeline_mode = #tpu.pipeline_mode<synchronous>, transform_indices = @transform_4, window_bounds = array<i64: 512, 144>}, {pipeline_mode = #tpu.pipeline_mode<synchronous>, transform_indices = @transform_5, window_bounds = array<i64: 16, 16>}, {pipeline_mode = #tpu.pipeline_mode<synchronous>, transform_indices = @transform_6, window_bounds = array<i64: 16, 16>}, {pipeline_mode = #tpu.pipeline_mode<synchronous>, transform_indices = @transform_7, window_bounds = array<i64: 16, 1>}, {pipeline_mode = #tpu.pipeline_mode<synchronous>, transform_indices = @transform_8, window_bounds = array<i64: 16, 128>}, {pipeline_mode = #tpu.pipeline_mode<synchronous>, transform_indices = @transform_9, window_bounds = array<i64: 128, 4>}, {transform_indices = @transform_10, window_bounds = array<i64: 1, 1>}, {transform_indices = @transform_11, window_bounds = array<i64: 1, 1, 4>}]} {
    %c0 = arith.constant 0 : index
    %c0_0 = arith.constant 0 : index
    %0 = vector.load %arg2[%c0, %c0_0] : memref<16x8xf32, #tpu.memory_space<vmem>>, vector<16x8xf32>
    %c0_1 = arith.constant 0 : index
    %c0_2 = arith.constant 0 : index
    %c0_3 = arith.constant 0 : index
    %1 = vector.load %arg1[%c0_1, %c0_2, %c0_3] : memref<1x8x640xf32, #tpu.memory_space<vmem>>, vector<1x8x640xf32>
    %2 = vector.shape_cast %1 : vector<1x8x640xf32> to vector<8x640xf32>
    %cst = arith.constant dense<0.000000e+00> : vector<16x640xf32>
    %3 = tpu.matmul %0, %2, %cst {dimension_numbers = #tpu.dot_dimension_numbers<[1], [0], [0], [1], [0, 0, 1, 1], [], []>} : vector<16x8xf32>, vector<8x640xf32>, vector<16x640xf32> -> vector<16x640xf32>
    %c0_4 = arith.constant 0 : index
    %c0_5 = arith.constant 0 : index
    %4 = vector.load %arg3[%c0_4, %c0_5] : memref<16x25xf32, #tpu.memory_space<vmem>>, vector<16x25xf32>
    %5 = vector.extract_strided_slice %4 {offsets = [0, 0], sizes = [16, 1], strides = [1, 1]} : vector<16x25xf32> to vector<16x1xf32>
    %6 = vector.extract_strided_slice %3 {offsets = [0, 0], sizes = [16, 512], strides = [1, 1]} : vector<16x640xf32> to vector<16x512xf32>
    %7 = vector.broadcast %5 : vector<16x1xf32> to vector<16x512xf32>
    %8 = arith.mulf %7, %6 : vector<16x512xf32>
    %9 = vector.extract_strided_slice %4 {offsets = [0, 1], sizes = [16, 1], strides = [1, 1]} : vector<16x25xf32> to vector<16x1xf32>
    %10 = vector.extract_strided_slice %3 {offsets = [0, 1], sizes = [16, 512], strides = [1, 1]} : vector<16x640xf32> to vector<16x512xf32>
    %11 = vector.broadcast %9 : vector<16x1xf32> to vector<16x512xf32>
    %12 = arith.mulf %11, %10 : vector<16x512xf32>
    %13 = arith.addf %8, %12 : vector<16x512xf32>
    %14 = vector.extract_strided_slice %4 {offsets = [0, 2], sizes = [16, 1], strides = [1, 1]} : vector<16x25xf32> to vector<16x1xf32>
    %15 = vector.extract_strided_slice %3 {offsets = [0, 2], sizes = [16, 512], strides = [1, 1]} : vector<16x640xf32> to vector<16x512xf32>
    %16 = vector.broadcast %14 : vector<16x1xf32> to vector<16x512xf32>
    %17 = arith.mulf %16, %15 : vector<16x512xf32>
    %18 = arith.addf %13, %17 : vector<16x512xf32>
    %19 = vector.extract_strided_slice %4 {offsets = [0, 3], sizes = [16, 1], strides = [1, 1]} : vector<16x25xf32> to vector<16x1xf32>
    %20 = vector.extract_strided_slice %3 {offsets = [0, 3], sizes = [16, 512], strides = [1, 1]} : vector<16x640xf32> to vector<16x512xf32>
    %21 = vector.broadcast %19 : vector<16x1xf32> to vector<16x512xf32>
    %22 = arith.mulf %21, %20 : vector<16x512xf32>
    %23 = arith.addf %18, %22 : vector<16x512xf32>
    %24 = vector.extract_strided_slice %4 {offsets = [0, 4], sizes = [16, 1], strides = [1, 1]} : vector<16x25xf32> to vector<16x1xf32>
    %25 = vector.extract_strided_slice %3 {offsets = [0, 4], sizes = [16, 512], strides = [1, 1]} : vector<16x640xf32> to vector<16x512xf32>
    %26 = vector.broadcast %24 : vector<16x1xf32> to vector<16x512xf32>
    %27 = arith.mulf %26, %25 : vector<16x512xf32>
    %28 = arith.addf %23, %27 : vector<16x512xf32>
    %29 = vector.extract_strided_slice %4 {offsets = [0, 5], sizes = [16, 1], strides = [1, 1]} : vector<16x25xf32> to vector<16x1xf32>
    %30 = vector.extract_strided_slice %3 {offsets = [0, 5], sizes = [16, 512], strides = [1, 1]} : vector<16x640xf32> to vector<16x512xf32>
    %31 = vector.broadcast %29 : vector<16x1xf32> to vector<16x512xf32>
    %32 = arith.mulf %31, %30 : vector<16x512xf32>
    %33 = arith.addf %28, %32 : vector<16x512xf32>
    %34 = vector.extract_strided_slice %4 {offsets = [0, 6], sizes = [16, 1], strides = [1, 1]} : vector<16x25xf32> to vector<16x1xf32>
    %35 = vector.extract_strided_slice %3 {offsets = [0, 6], sizes = [16, 512], strides = [1, 1]} : vector<16x640xf32> to vector<16x512xf32>
    %36 = vector.broadcast %34 : vector<16x1xf32> to vector<16x512xf32>
    %37 = arith.mulf %36, %35 : vector<16x512xf32>
    %38 = arith.addf %33, %37 : vector<16x512xf32>
    %39 = vector.extract_strided_slice %4 {offsets = [0, 7], sizes = [16, 1], strides = [1, 1]} : vector<16x25xf32> to vector<16x1xf32>
    %40 = vector.extract_strided_slice %3 {offsets = [0, 7], sizes = [16, 512], strides = [1, 1]} : vector<16x640xf32> to vector<16x512xf32>
    %41 = vector.broadcast %39 : vector<16x1xf32> to vector<16x512xf32>
    %42 = arith.mulf %41, %40 : vector<16x512xf32>
    %43 = arith.addf %38, %42 : vector<16x512xf32>
    %44 = vector.extract_strided_slice %4 {offsets = [0, 8], sizes = [16, 1], strides = [1, 1]} : vector<16x25xf32> to vector<16x1xf32>
    %45 = vector.extract_strided_slice %3 {offsets = [0, 8], sizes = [16, 512], strides = [1, 1]} : vector<16x640xf32> to vector<16x512xf32>
    %46 = vector.broadcast %44 : vector<16x1xf32> to vector<16x512xf32>
    %47 = arith.mulf %46, %45 : vector<16x512xf32>
    %48 = arith.addf %43, %47 : vector<16x512xf32>
    %49 = vector.extract_strided_slice %4 {offsets = [0, 9], sizes = [16, 1], strides = [1, 1]} : vector<16x25xf32> to vector<16x1xf32>
    %50 = vector.extract_strided_slice %3 {offsets = [0, 9], sizes = [16, 512], strides = [1, 1]} : vector<16x640xf32> to vector<16x512xf32>
    %51 = vector.broadcast %49 : vector<16x1xf32> to vector<16x512xf32>
    %52 = arith.mulf %51, %50 : vector<16x512xf32>
    %53 = arith.addf %48, %52 : vector<16x512xf32>
    %54 = vector.extract_strided_slice %4 {offsets = [0, 10], sizes = [16, 1], strides = [1, 1]} : vector<16x25xf32> to vector<16x1xf32>
    %55 = vector.extract_strided_slice %3 {offsets = [0, 10], sizes = [16, 512], strides = [1, 1]} : vector<16x640xf32> to vector<16x512xf32>
    %56 = vector.broadcast %54 : vector<16x1xf32> to vector<16x512xf32>
    %57 = arith.mulf %56, %55 : vector<16x512xf32>
    %58 = arith.addf %53, %57 : vector<16x512xf32>
    %59 = vector.extract_strided_slice %4 {offsets = [0, 11], sizes = [16, 1], strides = [1, 1]} : vector<16x25xf32> to vector<16x1xf32>
    %60 = vector.extract_strided_slice %3 {offsets = [0, 11], sizes = [16, 512], strides = [1, 1]} : vector<16x640xf32> to vector<16x512xf32>
    %61 = vector.broadcast %59 : vector<16x1xf32> to vector<16x512xf32>
    %62 = arith.mulf %61, %60 : vector<16x512xf32>
    %63 = arith.addf %58, %62 : vector<16x512xf32>
    %64 = vector.extract_strided_slice %4 {offsets = [0, 12], sizes = [16, 1], strides = [1, 1]} : vector<16x25xf32> to vector<16x1xf32>
    %65 = vector.extract_strided_slice %3 {offsets = [0, 12], sizes = [16, 512], strides = [1, 1]} : vector<16x640xf32> to vector<16x512xf32>
    %66 = vector.broadcast %64 : vector<16x1xf32> to vector<16x512xf32>
    %67 = arith.mulf %66, %65 : vector<16x512xf32>
    %68 = arith.addf %63, %67 : vector<16x512xf32>
    %69 = vector.extract_strided_slice %4 {offsets = [0, 13], sizes = [16, 1], strides = [1, 1]} : vector<16x25xf32> to vector<16x1xf32>
    %70 = vector.extract_strided_slice %3 {offsets = [0, 13], sizes = [16, 512], strides = [1, 1]} : vector<16x640xf32> to vector<16x512xf32>
    %71 = vector.broadcast %69 : vector<16x1xf32> to vector<16x512xf32>
    %72 = arith.mulf %71, %70 : vector<16x512xf32>
    %73 = arith.addf %68, %72 : vector<16x512xf32>
    %74 = vector.extract_strided_slice %4 {offsets = [0, 14], sizes = [16, 1], strides = [1, 1]} : vector<16x25xf32> to vector<16x1xf32>
    %75 = vector.extract_strided_slice %3 {offsets = [0, 14], sizes = [16, 512], strides = [1, 1]} : vector<16x640xf32> to vector<16x512xf32>
    %76 = vector.broadcast %74 : vector<16x1xf32> to vector<16x512xf32>
    %77 = arith.mulf %76, %75 : vector<16x512xf32>
    %78 = arith.addf %73, %77 : vector<16x512xf32>
    %79 = vector.extract_strided_slice %4 {offsets = [0, 15], sizes = [16, 1], strides = [1, 1]} : vector<16x25xf32> to vector<16x1xf32>
    %80 = vector.extract_strided_slice %3 {offsets = [0, 15], sizes = [16, 512], strides = [1, 1]} : vector<16x640xf32> to vector<16x512xf32>
    %81 = vector.broadcast %79 : vector<16x1xf32> to vector<16x512xf32>
    %82 = arith.mulf %81, %80 : vector<16x512xf32>
    %83 = arith.addf %78, %82 : vector<16x512xf32>
    %84 = vector.extract_strided_slice %4 {offsets = [0, 16], sizes = [16, 1], strides = [1, 1]} : vector<16x25xf32> to vector<16x1xf32>
    %85 = vector.extract_strided_slice %3 {offsets = [0, 16], sizes = [16, 512], strides = [1, 1]} : vector<16x640xf32> to vector<16x512xf32>
    %86 = vector.broadcast %84 : vector<16x1xf32> to vector<16x512xf32>
    %87 = arith.mulf %86, %85 : vector<16x512xf32>
    %88 = arith.addf %83, %87 : vector<16x512xf32>
    %89 = vector.extract_strided_slice %4 {offsets = [0, 17], sizes = [16, 1], strides = [1, 1]} : vector<16x25xf32> to vector<16x1xf32>
    %90 = vector.extract_strided_slice %3 {offsets = [0, 17], sizes = [16, 512], strides = [1, 1]} : vector<16x640xf32> to vector<16x512xf32>
    %91 = vector.broadcast %89 : vector<16x1xf32> to vector<16x512xf32>
    %92 = arith.mulf %91, %90 : vector<16x512xf32>
    %93 = arith.addf %88, %92 : vector<16x512xf32>
    %94 = vector.extract_strided_slice %4 {offsets = [0, 18], sizes = [16, 1], strides = [1, 1]} : vector<16x25xf32> to vector<16x1xf32>
    %95 = vector.extract_strided_slice %3 {offsets = [0, 18], sizes = [16, 512], strides = [1, 1]} : vector<16x640xf32> to vector<16x512xf32>
    %96 = vector.broadcast %94 : vector<16x1xf32> to vector<16x512xf32>
    %97 = arith.mulf %96, %95 : vector<16x512xf32>
    %98 = arith.addf %93, %97 : vector<16x512xf32>
    %99 = vector.extract_strided_slice %4 {offsets = [0, 19], sizes = [16, 1], strides = [1, 1]} : vector<16x25xf32> to vector<16x1xf32>
    %100 = vector.extract_strided_slice %3 {offsets = [0, 19], sizes = [16, 512], strides = [1, 1]} : vector<16x640xf32> to vector<16x512xf32>
    %101 = vector.broadcast %99 : vector<16x1xf32> to vector<16x512xf32>
    %102 = arith.mulf %101, %100 : vector<16x512xf32>
    %103 = arith.addf %98, %102 : vector<16x512xf32>
    %104 = vector.extract_strided_slice %4 {offsets = [0, 20], sizes = [16, 1], strides = [1, 1]} : vector<16x25xf32> to vector<16x1xf32>
    %105 = vector.extract_strided_slice %3 {offsets = [0, 20], sizes = [16, 512], strides = [1, 1]} : vector<16x640xf32> to vector<16x512xf32>
    %106 = vector.broadcast %104 : vector<16x1xf32> to vector<16x512xf32>
    %107 = arith.mulf %106, %105 : vector<16x512xf32>
    %108 = arith.addf %103, %107 : vector<16x512xf32>
    %109 = vector.extract_strided_slice %4 {offsets = [0, 21], sizes = [16, 1], strides = [1, 1]} : vector<16x25xf32> to vector<16x1xf32>
    %110 = vector.extract_strided_slice %3 {offsets = [0, 21], sizes = [16, 512], strides = [1, 1]} : vector<16x640xf32> to vector<16x512xf32>
    %111 = vector.broadcast %109 : vector<16x1xf32> to vector<16x512xf32>
    %112 = arith.mulf %111, %110 : vector<16x512xf32>
    %113 = arith.addf %108, %112 : vector<16x512xf32>
    %114 = vector.extract_strided_slice %4 {offsets = [0, 22], sizes = [16, 1], strides = [1, 1]} : vector<16x25xf32> to vector<16x1xf32>
    %115 = vector.extract_strided_slice %3 {offsets = [0, 22], sizes = [16, 512], strides = [1, 1]} : vector<16x640xf32> to vector<16x512xf32>
    %116 = vector.broadcast %114 : vector<16x1xf32> to vector<16x512xf32>
    %117 = arith.mulf %116, %115 : vector<16x512xf32>
    %118 = arith.addf %113, %117 : vector<16x512xf32>
    %119 = vector.extract_strided_slice %4 {offsets = [0, 23], sizes = [16, 1], strides = [1, 1]} : vector<16x25xf32> to vector<16x1xf32>
    %120 = vector.extract_strided_slice %3 {offsets = [0, 23], sizes = [16, 512], strides = [1, 1]} : vector<16x640xf32> to vector<16x512xf32>
    %121 = vector.broadcast %119 : vector<16x1xf32> to vector<16x512xf32>
    %122 = arith.mulf %121, %120 : vector<16x512xf32>
    %123 = arith.addf %118, %122 : vector<16x512xf32>
    %124 = vector.extract_strided_slice %4 {offsets = [0, 24], sizes = [16, 1], strides = [1, 1]} : vector<16x25xf32> to vector<16x1xf32>
    %125 = vector.extract_strided_slice %3 {offsets = [0, 24], sizes = [16, 512], strides = [1, 1]} : vector<16x640xf32> to vector<16x512xf32>
    %126 = vector.broadcast %124 : vector<16x1xf32> to vector<16x512xf32>
    %127 = arith.mulf %126, %125 : vector<16x512xf32>
    %128 = arith.addf %123, %127 : vector<16x512xf32>
    %c0_6 = arith.constant 0 : index
    %c0_7 = arith.constant 0 : index
    %129 = vector.load %arg4[%c0_6, %c0_7] : memref<16x1xf32, #tpu.memory_space<vmem>>, vector<16x1xf32>
    %130 = vector.broadcast %129 : vector<16x1xf32> to vector<16x512xf32>
    %131 = arith.addf %128, %130 : vector<16x512xf32>
    %cst_8 = arith.constant 0.000000e+00 : f32
    %132 = vector.broadcast %cst_8 : f32 to vector<16x512xf32>
    %133 = arith.cmpf ogt, %131, %132 : vector<16x512xf32>
    %cst_9 = arith.constant 0.000000e+00 : f32
    %134 = vector.broadcast %cst_9 : f32 to vector<16x512xf32>
    %135 = arith.minimumf %131, %134 : vector<16x512xf32>
    %136 = math.exp %135 : vector<16x512xf32>
    %cst_10 = arith.constant 1.000000e+00 : f32
    %137 = vector.broadcast %cst_10 : f32 to vector<16x512xf32>
    %138 = arith.subf %136, %137 : vector<16x512xf32>
    %139 = arith.select %133, %131, %138 : vector<16x512xi1>, vector<16x512xf32>
    %140 = arith.truncf %139 : vector<16x512xf32> to vector<16x512xbf16>
    %c0_11 = arith.constant 0 : index
    %c0_12 = arith.constant 0 : index
    %141 = vector.load %arg5[%c0_11, %c0_12] : memref<512x144xbf16, #tpu.memory_space<vmem>>, vector<512x144xbf16>
    %c0_13 = arith.constant 0 : index
    %c0_14 = arith.constant 0 : index
    %142 = vector.load %arg6[%c0_13, %c0_14] : memref<16x16xf32, #tpu.memory_space<vmem>>, vector<16x16xf32>
    %c0_15 = arith.constant 0 : index
    %c0_16 = arith.constant 0 : index
    %143 = vector.load %arg7[%c0_15, %c0_16] : memref<16x16xf32, #tpu.memory_space<vmem>>, vector<16x16xf32>
    %c0_17 = arith.constant 0 : index
    %c0_18 = arith.constant 0 : index
    %144 = vector.load %arg8[%c0_17, %c0_18] : memref<16x1xf32, #tpu.memory_space<vmem>>, vector<16x1xf32>
    %c0_19 = arith.constant 0 : index
    %c0_20 = arith.constant 0 : index
    %145 = vector.load %arg9[%c0_19, %c0_20] : memref<16x128xf32, #tpu.memory_space<vmem>>, vector<16x128xf32>
    %c0_21 = arith.constant 0 : index
    %c0_22 = arith.constant 0 : index
    %146 = vector.load %arg10[%c0_21, %c0_22] : memref<128x4xf32, #tpu.memory_space<vmem>>, vector<128x4xf32>
    %cst_23 = arith.constant dense<0.000000e+00> : vector<16x144xf32>
    %147 = tpu.matmul %140, %141, %cst_23 {dimension_numbers = #tpu.dot_dimension_numbers<[1], [0], [0], [1], [0, 0, 1, 1], [], []>} : vector<16x512xbf16>, vector<512x144xbf16>, vector<16x144xf32> -> vector<16x144xf32>
    %148 = vector.extract_strided_slice %142 {offsets = [0, 0], sizes = [16, 1], strides = [1, 1]} : vector<16x16xf32> to vector<16x1xf32>
    %149 = vector.extract_strided_slice %147 {offsets = [0, 0], sizes = [16, 128], strides = [1, 1]} : vector<16x144xf32> to vector<16x128xf32>
    %150 = vector.broadcast %148 : vector<16x1xf32> to vector<16x128xf32>
    %151 = arith.mulf %150, %149 : vector<16x128xf32>
    %152 = vector.extract_strided_slice %142 {offsets = [0, 1], sizes = [16, 1], strides = [1, 1]} : vector<16x16xf32> to vector<16x1xf32>
    %153 = vector.extract_strided_slice %147 {offsets = [0, 1], sizes = [16, 128], strides = [1, 1]} : vector<16x144xf32> to vector<16x128xf32>
    %154 = vector.broadcast %152 : vector<16x1xf32> to vector<16x128xf32>
    %155 = arith.mulf %154, %153 : vector<16x128xf32>
    %156 = arith.addf %151, %155 : vector<16x128xf32>
    %157 = vector.extract_strided_slice %142 {offsets = [0, 2], sizes = [16, 1], strides = [1, 1]} : vector<16x16xf32> to vector<16x1xf32>
    %158 = vector.extract_strided_slice %147 {offsets = [0, 2], sizes = [16, 128], strides = [1, 1]} : vector<16x144xf32> to vector<16x128xf32>
    %159 = vector.broadcast %157 : vector<16x1xf32> to vector<16x128xf32>
    %160 = arith.mulf %159, %158 : vector<16x128xf32>
    %161 = arith.addf %156, %160 : vector<16x128xf32>
    %162 = vector.extract_strided_slice %142 {offsets = [0, 3], sizes = [16, 1], strides = [1, 1]} : vector<16x16xf32> to vector<16x1xf32>
    %163 = vector.extract_strided_slice %147 {offsets = [0, 3], sizes = [16, 128], strides = [1, 1]} : vector<16x144xf32> to vector<16x128xf32>
    %164 = vector.broadcast %162 : vector<16x1xf32> to vector<16x128xf32>
    %165 = arith.mulf %164, %163 : vector<16x128xf32>
    %166 = arith.addf %161, %165 : vector<16x128xf32>
    %167 = vector.extract_strided_slice %142 {offsets = [0, 4], sizes = [16, 1], strides = [1, 1]} : vector<16x16xf32> to vector<16x1xf32>
    %168 = vector.extract_strided_slice %147 {offsets = [0, 4], sizes = [16, 128], strides = [1, 1]} : vector<16x144xf32> to vector<16x128xf32>
    %169 = vector.broadcast %167 : vector<16x1xf32> to vector<16x128xf32>
    %170 = arith.mulf %169, %168 : vector<16x128xf32>
    %171 = arith.addf %166, %170 : vector<16x128xf32>
    %172 = vector.extract_strided_slice %142 {offsets = [0, 5], sizes = [16, 1], strides = [1, 1]} : vector<16x16xf32> to vector<16x1xf32>
    %173 = vector.extract_strided_slice %147 {offsets = [0, 5], sizes = [16, 128], strides = [1, 1]} : vector<16x144xf32> to vector<16x128xf32>
    %174 = vector.broadcast %172 : vector<16x1xf32> to vector<16x128xf32>
    %175 = arith.mulf %174, %173 : vector<16x128xf32>
    %176 = arith.addf %171, %175 : vector<16x128xf32>
    %177 = vector.extract_strided_slice %142 {offsets = [0, 6], sizes = [16, 1], strides = [1, 1]} : vector<16x16xf32> to vector<16x1xf32>
    %178 = vector.extract_strided_slice %147 {offsets = [0, 6], sizes = [16, 128], strides = [1, 1]} : vector<16x144xf32> to vector<16x128xf32>
    %179 = vector.broadcast %177 : vector<16x1xf32> to vector<16x128xf32>
    %180 = arith.mulf %179, %178 : vector<16x128xf32>
    %181 = arith.addf %176, %180 : vector<16x128xf32>
    %182 = vector.extract_strided_slice %142 {offsets = [0, 7], sizes = [16, 1], strides = [1, 1]} : vector<16x16xf32> to vector<16x1xf32>
    %183 = vector.extract_strided_slice %147 {offsets = [0, 7], sizes = [16, 128], strides = [1, 1]} : vector<16x144xf32> to vector<16x128xf32>
    %184 = vector.broadcast %182 : vector<16x1xf32> to vector<16x128xf32>
    %185 = arith.mulf %184, %183 : vector<16x128xf32>
    %186 = arith.addf %181, %185 : vector<16x128xf32>
    %187 = vector.extract_strided_slice %142 {offsets = [0, 8], sizes = [16, 1], strides = [1, 1]} : vector<16x16xf32> to vector<16x1xf32>
    %188 = vector.extract_strided_slice %147 {offsets = [0, 8], sizes = [16, 128], strides = [1, 1]} : vector<16x144xf32> to vector<16x128xf32>
    %189 = vector.broadcast %187 : vector<16x1xf32> to vector<16x128xf32>
    %190 = arith.mulf %189, %188 : vector<16x128xf32>
    %191 = arith.addf %186, %190 : vector<16x128xf32>
    %192 = vector.extract_strided_slice %142 {offsets = [0, 9], sizes = [16, 1], strides = [1, 1]} : vector<16x16xf32> to vector<16x1xf32>
    %193 = vector.extract_strided_slice %147 {offsets = [0, 9], sizes = [16, 128], strides = [1, 1]} : vector<16x144xf32> to vector<16x128xf32>
    %194 = vector.broadcast %192 : vector<16x1xf32> to vector<16x128xf32>
    %195 = arith.mulf %194, %193 : vector<16x128xf32>
    %196 = arith.addf %191, %195 : vector<16x128xf32>
    %197 = vector.extract_strided_slice %142 {offsets = [0, 10], sizes = [16, 1], strides = [1, 1]} : vector<16x16xf32> to vector<16x1xf32>
    %198 = vector.extract_strided_slice %147 {offsets = [0, 10], sizes = [16, 128], strides = [1, 1]} : vector<16x144xf32> to vector<16x128xf32>
    %199 = vector.broadcast %197 : vector<16x1xf32> to vector<16x128xf32>
    %200 = arith.mulf %199, %198 : vector<16x128xf32>
    %201 = arith.addf %196, %200 : vector<16x128xf32>
    %202 = vector.extract_strided_slice %142 {offsets = [0, 11], sizes = [16, 1], strides = [1, 1]} : vector<16x16xf32> to vector<16x1xf32>
    %203 = vector.extract_strided_slice %147 {offsets = [0, 11], sizes = [16, 128], strides = [1, 1]} : vector<16x144xf32> to vector<16x128xf32>
    %204 = vector.broadcast %202 : vector<16x1xf32> to vector<16x128xf32>
    %205 = arith.mulf %204, %203 : vector<16x128xf32>
    %206 = arith.addf %201, %205 : vector<16x128xf32>
    %207 = vector.extract_strided_slice %142 {offsets = [0, 12], sizes = [16, 1], strides = [1, 1]} : vector<16x16xf32> to vector<16x1xf32>
    %208 = vector.extract_strided_slice %147 {offsets = [0, 12], sizes = [16, 128], strides = [1, 1]} : vector<16x144xf32> to vector<16x128xf32>
    %209 = vector.broadcast %207 : vector<16x1xf32> to vector<16x128xf32>
    %210 = arith.mulf %209, %208 : vector<16x128xf32>
    %211 = arith.addf %206, %210 : vector<16x128xf32>
    %212 = vector.extract_strided_slice %142 {offsets = [0, 13], sizes = [16, 1], strides = [1, 1]} : vector<16x16xf32> to vector<16x1xf32>
    %213 = vector.extract_strided_slice %147 {offsets = [0, 13], sizes = [16, 128], strides = [1, 1]} : vector<16x144xf32> to vector<16x128xf32>
    %214 = vector.broadcast %212 : vector<16x1xf32> to vector<16x128xf32>
    %215 = arith.mulf %214, %213 : vector<16x128xf32>
    %216 = arith.addf %211, %215 : vector<16x128xf32>
    %217 = vector.extract_strided_slice %142 {offsets = [0, 14], sizes = [16, 1], strides = [1, 1]} : vector<16x16xf32> to vector<16x1xf32>
    %218 = vector.extract_strided_slice %147 {offsets = [0, 14], sizes = [16, 128], strides = [1, 1]} : vector<16x144xf32> to vector<16x128xf32>
    %219 = vector.broadcast %217 : vector<16x1xf32> to vector<16x128xf32>
    %220 = arith.mulf %219, %218 : vector<16x128xf32>
    %221 = arith.addf %216, %220 : vector<16x128xf32>
    %222 = vector.extract_strided_slice %142 {offsets = [0, 15], sizes = [16, 1], strides = [1, 1]} : vector<16x16xf32> to vector<16x1xf32>
    %223 = vector.extract_strided_slice %147 {offsets = [0, 15], sizes = [16, 128], strides = [1, 1]} : vector<16x144xf32> to vector<16x128xf32>
    %224 = vector.broadcast %222 : vector<16x1xf32> to vector<16x128xf32>
    %225 = arith.mulf %224, %223 : vector<16x128xf32>
    %226 = arith.addf %221, %225 : vector<16x128xf32>
    %cst_24 = arith.constant dense<0.000000e+00> : vector<16x128xf32>
    %227 = tpu.matmul %143, %226, %cst_24 {dimension_numbers = #tpu.dot_dimension_numbers<[1], [0], [0], [1], [0, 0, 1, 1], [], []>} : vector<16x16xf32>, vector<16x128xf32>, vector<16x128xf32> -> vector<16x128xf32>
    %228 = vector.broadcast %144 : vector<16x1xf32> to vector<16x128xf32>
    %229 = arith.addf %227, %228 : vector<16x128xf32>
    %cst_25 = arith.constant 0.000000e+00 : f32
    %230 = vector.broadcast %cst_25 : f32 to vector<16x128xf32>
    %231 = arith.cmpf ogt, %229, %230 : vector<16x128xf32>
    %cst_26 = arith.constant 0.000000e+00 : f32
    %232 = vector.broadcast %cst_26 : f32 to vector<16x128xf32>
    %233 = arith.minimumf %229, %232 : vector<16x128xf32>
    %234 = math.exp %233 : vector<16x128xf32>
    %cst_27 = arith.constant 1.000000e+00 : f32
    %235 = vector.broadcast %cst_27 : f32 to vector<16x128xf32>
    %236 = arith.subf %234, %235 : vector<16x128xf32>
    %237 = arith.select %231, %229, %236 : vector<16x128xi1>, vector<16x128xf32>
    %238 = arith.mulf %237, %145 : vector<16x128xf32>
    %cst_28 = arith.constant dense<0.000000e+00> : vector<16x4xf32>
    %239 = tpu.matmul %238, %146, %cst_28 {dimension_numbers = #tpu.dot_dimension_numbers<[1], [0], [0], [1], [0, 0, 1, 1], [], []>} : vector<16x128xf32>, vector<128x4xf32>, vector<16x4xf32> -> vector<16x4xf32>
    %cst_29 = arith.constant dense<0.000000e+00> : vector<4xf32>
    %240 = vector.multi_reduction <add>, %239, %cst_29 [0] : vector<16x4xf32> to vector<4xf32>
    %241 = vector.shape_cast %240 : vector<4xf32> to vector<1x4xf32>
    %c0_30 = arith.constant 0 : index
    %c0_31 = arith.constant 0 : index
    %242 = memref.load %arg11[%c0_30, %c0_31] : memref<1x1xf32, #tpu.memory_space<smem>>
    %243 = vector.broadcast %242 : f32 to vector<1x4xf32>
    %244 = arith.addf %241, %243 : vector<1x4xf32>
    %cst_32 = arith.constant 0.000000e+00 : f32
    %245 = vector.broadcast %cst_32 : f32 to vector<1x4xf32>
    %246 = arith.subf %245, %244 : vector<1x4xf32>
    %247 = math.exp %246 : vector<1x4xf32>
    %cst_33 = arith.constant 1.000000e+00 : f32
    %248 = vector.broadcast %cst_33 : f32 to vector<1x4xf32>
    %249 = arith.addf %248, %247 : vector<1x4xf32>
    %250 = tpu.reciprocal %249 {approx = true} : vector<1x4xf32> -> vector<1x4xf32>
    %c0_34 = arith.constant 0 : index
    %c0_35 = arith.constant 0 : index
    %c0_36 = arith.constant 0 : index
    %251 = vector.load %arg12[%c0_34, %c0_35, %c0_36] : memref<1x1x4xf32, #tpu.memory_space<vmem>>, vector<1x1x4xf32>
    %252 = vector.shape_cast %251 : vector<1x1x4xf32> to vector<1x4xf32>
    %253 = vector.shape_cast %250 : vector<1x4xf32> to vector<1x1x4xf32>
    tpu.vector_store %arg12[%c0_34, %c0_35, %c0_36], %253 {strides = array<i32>} : memref<1x1x4xf32, #tpu.memory_space<vmem>>, vector<1x1x4xf32>,
    return
  }
  func.func @transform_0(%arg0: i32) -> (i32, i32, i32) {
    %c0_i32 = arith.constant 0 : i32
    %c0_i32_0 = arith.constant 0 : i32
    %c0_i32_1 = arith.constant 0 : i32
    return %arg0, %c0_i32, %c0_i32_0 : i32, i32, i32
  }
  func.func @transform_1(%arg0: i32) -> (i32, i32) {
    %c0_i32 = arith.constant 0 : i32
    %c0_i32_0 = arith.constant 0 : i32
    %c0_i32_1 = arith.constant 0 : i32
    return %c0_i32, %c0_i32_0 : i32, i32
  }
  func.func @transform_2(%arg0: i32) -> (i32, i32) {
    %c0_i32 = arith.constant 0 : i32
    %c0_i32_0 = arith.constant 0 : i32
    %c0_i32_1 = arith.constant 0 : i32
    return %c0_i32, %c0_i32_0 : i32, i32
  }
  func.func @transform_3(%arg0: i32) -> (i32, i32) {
    %c0_i32 = arith.constant 0 : i32
    %c0_i32_0 = arith.constant 0 : i32
    %c0_i32_1 = arith.constant 0 : i32
    return %c0_i32, %c0_i32_0 : i32, i32
  }
  func.func @transform_4(%arg0: i32) -> (i32, i32) {
    %c0_i32 = arith.constant 0 : i32
    %c0_i32_0 = arith.constant 0 : i32
    %c0_i32_1 = arith.constant 0 : i32
    return %c0_i32, %c0_i32_0 : i32, i32
  }
  func.func @transform_5(%arg0: i32) -> (i32, i32) {
    %c0_i32 = arith.constant 0 : i32
    %c0_i32_0 = arith.constant 0 : i32
    %c0_i32_1 = arith.constant 0 : i32
    return %c0_i32, %c0_i32_0 : i32, i32
  }
  func.func @transform_6(%arg0: i32) -> (i32, i32) {
    %c0_i32 = arith.constant 0 : i32
    %c0_i32_0 = arith.constant 0 : i32
    %c0_i32_1 = arith.constant 0 : i32
    return %c0_i32, %c0_i32_0 : i32, i32
  }
  func.func @transform_7(%arg0: i32) -> (i32, i32) {
    %c0_i32 = arith.constant 0 : i32
    %c0_i32_0 = arith.constant 0 : i32
    %c0_i32_1 = arith.constant 0 : i32
    return %c0_i32, %c0_i32_0 : i32, i32
  }
  func.func @transform_8(%arg0: i32) -> (i32, i32) {
    %c0_i32 = arith.constant 0 : i32
    %c0_i32_0 = arith.constant 0 : i32
    %c0_i32_1 = arith.constant 0 : i32
    return %c0_i32, %c0_i32_0 : i32, i32
  }
  func.func @transform_9(%arg0: i32) -> (i32, i32) {
    %c0_i32 = arith.constant 0 : i32
    %c0_i32_0 = arith.constant 0 : i32
    %c0_i32_1 = arith.constant 0 : i32
    return %c0_i32, %c0_i32_0 : i32, i32
  }
  func.func @transform_10(%arg0: i32) -> (i32, i32) {
    %c0_i32 = arith.constant 0 : i32
    %c0_i32_0 = arith.constant 0 : i32
    %c0_i32_1 = arith.constant 0 : i32
    return %c0_i32, %c0_i32_0 : i32, i32
  }
  func.func @transform_11(%arg0: i32) -> (i32, i32, i32) {
    %c0_i32 = arith.constant 0 : i32
    %c0_i32_0 = arith.constant 0 : i32
    %c0_i32_1 = arith.constant 0 : i32
    return %arg0, %c0_i32, %c0_i32_0 : i32, i32, i32
  }
}

</mosaic_0001>

<bundles_post_ra>
// kernel: eegnet2d_forward.1
= control target key start
LH: loop header
LB: loop body
LE: loop exit
PB: predicated region body
PF: predicated region fallthrough
CT: control target
= control target key end

     0   :  { %v6406_v0 = vmov 2   ;;  %v3720_v4 = vmov 0.0   ;;  %vm46_vm0 = vcmask 64512   ;;  %v6408_v7 = vmov 1   ;;  %s3747_s15 = smov 125   ;;  %s3748_s16 = smov 124   ;;  %s6371_s2 = inlined_call_operand.vmem [shape: f32[16,25], index: 2, kind: input, shape index: {}]   ;;  %s6372_s0 = inlined_call_operand.vmem [shape: f32[1,8,640], index: 0, kind: input, shape index: {}]   ;;  %s6373_s1 = inlined_call_operand.vmem [shape: f32[16,8], index: 1, kind: input, shape index: {}]   ;;  %s6374_s3 = inlined_call_operand.vmem [shape: f32[16,1], index: 3, kind: input, shape index: {}]   ;;  %s6375_s4 = inlined_call_operand.vmem [shape: bf16[512,144], index: 4, kind: input, shape index: {}]   ;;  %s6376_s5 = inlined_call_operand.vmem [shape: f32[16,16], index: 5, kind: input, shape index: {}]   ;;  %s6377_s6 = inlined_call_operand.vmem [shape: f32[16,16], index: 6, kind: input, shape index: {}]   ;;  %s6378_s7 = inlined_call_operand.vmem [shape: f32[16,1], index: 7, kind: input, shape index: {}]   ;;  %s6379_s9 = inlined_call_operand.vmem [shape: f32[128,4], index: 9, kind: input, shape index: {}]   ;;  %s6380_s8 = inlined_call_operand.vmem [shape: f32[16,128], index: 8, kind: input, shape index: {}]   ;;  %s6381_s10 = inlined_call_operand.<no memory space> [shape: f32[1,1], index: 10, kind: input, shape index: {}]   ;;  %s6382_s11 = inlined_call_operand.vmem [shape: f32[1,1,4], index: 11, kind: output, shape index: {}]  }
   0x1   :  { %3532 = vset.pattern.permute.xlu1 %v6406_v0  ;;  %v3833_v1 = vld [vmem:[%s6371_s2] sm:$0xff]  ;;  %v42_v2 = vld [vmem:[%s6372_s0 + $0x8] sm:$0xff]  ;;  %117 = vmatprep.mubr.f32.mxu0 %v3720_v4  ;;  %v44_v8 = vld [vmem:[%s6372_s0 + $0x18] sm:$0xff]  ;;  %v6405_v12 = vmov 3   ;;  %v6403_v13 = vmov 4   ;;  %v6401_v14 = vmov 5  }
   0x2   :  { %v41_v3 = vld [vmem:[%s6372_s0] sm:$0xff]  ;;  %376 = vperm.xlu1 %3532, %v3833_v1   ;;  %53 = vmatprep.subr.mxu0 %v42_v2  ;;  %v3848_v6 = vld [vmem:[%s6371_s2 + $0x8] sm:$0xff]  ;;  %v43_v9 = vld [vmem:[%s6372_s0 + $0x10] sm:$0xff]  ;;  %v6398_v15 = vmov 6   ;;  %v6399_v16 = vmov 7   ;;  %v6389_v17 = vmov 9  }
   0x3   :  { %v39_v5 = vld [vmem:[%s6373_s1] sm:$0xff]  ;;  %54 = vmatpush1.msra.mxu0 %v41_v3  ;;  %3531 = vset.pattern.permute.xlu0 %v6408_v7  ;;  %v40_v11 = vld [vmem:[%s6373_s1 + $0x8] sm:$0xff]  ;;  %v6394_v18 = vmov 10   ;;  %v6396_v19 = vmov 8   ;;  %v6384_v20 = vmov 12   ;;  %v6390_v21 = vmov 13  }
   0x4   :  { %3287 = vmatmul.mubr.msk.f32.vlgmr.msra.gmra.mrb[0].mxu0 %vm46_vm0, %v39_v5  ;;  %303 = vperm.xlu0 %3531, %v3833_v1   ;;  %v45_v10 = vld [vmem:[%s6372_s0 + $0x20] sm:$0xff]  ;;  %v6383_v22 = vmov 15   ;;  %v3733_v23 = vmov 16   ;;  %v6392_v24 = vmov 11   ;;  %v3735_v25 = vmov 18   ;;  %s3745_s0 = smov 127  }
   0x5   :  { %123 = vmatprep.mubr.f32.mxu0 %v3720_v4  ;;  %130 = vmatprep.subr.mxu0 %v44_v8  ;;  %v3736_v26 = vmov 19   ;;  %v3737_v27 = vmov 21   ;;  %v6387_v28 = vmov 14   ;;  %v3739_v29 = vmov 22   ;;  %s3746_s1 = smov 126   ;;  %s3749_s17 = smov 123  }
   0x6   :  { %380 = vperm.xlu1 %3532, %v3848_v6   ;;  %131 = vmatpush1.msra.mxu0 %v43_v9  ;;  %v3740_v30 = vmov 24   ;;  %v6385_v31 = vmov 0   ;;  %v3742_v32 = vmov 17   ;;  %v3743_v33 = vmov 20   ;;  %s3750_s18 = smov 122   ;;  %s3751_s19 = smov 121  }
   0x7   :  { %3394 = vmatprep.subr.mxu0 %v45_v10  ;;  %v3744_v34 = vmov 23   ;;  %s3752_s20 = smov 120   ;;  %s3753_s21 = smov 119   ;;  %vm350_vm1 = vcmask 1039360   ;;  %vm423_vm2 = vcmask 1031168   ;;  %vm496_vm3 = vcmask 1022976  }
   0x8   :  { %3288 = vmatmul.mubr.msk.f32.gmra.mrb[2].mxu0 %vm46_vm0, %v40_v11  ;;  %307 = vperm.xlu0 %3531, %v3848_v6   ;;  %s3754_s22 = smov 118   ;;  %s3755_s23 = smov 117   ;;  %vm569_vm4 = vcmask 1014784   ;;  %vm642_vm5 = vcmask 1006592   ;;  %vm715_vm6 = vcmask 998400   ;;  %vm788_vm7 = vcmask 990208  }
   0x9   :  { %194 = vmatprep.mubr.f32.mxu0 %v3720_v4  ;;  %s3756_s24 = smov 116   ;;  %s6510_s25 = smov 115   ;;  %vm861_vm8 = vcmask 982016   ;;  %vm934_vm9 = vcmask 973824   ;;  %vm1007_vm10 = vcmask 965632   ;;  %vm6530_vm11 = vcmask 957440  }
   0xa   :  { %3534 = vset.pattern.permute.xlu1 %v6405_v12  ;;  %s6506_s26 = smov 114   ;;  %s6498_s27 = smov 113   ;;  %vm6528_vm12 = vcmask 949248   ;;  %vm6526_vm13 = vcmask 941056   ;;  %vm6527_vm14 = vcmask 932864   ;;  %vm6529_vm15 = vcmask 924672  }
   0xb   :  { %453 = vperm.xlu1 %3534, %v3848_v6   ;;  %s3760_s28 = smov 112   ;;  %s3761_s29 = smov 111  }
   0xc   :  { %3289 = vmatmul.mubr.msk.f32.vlgmr.msra.gmra.mrb[4].mxu0 %vm46_vm0, %v39_v5  ;;  %3533 = vset.pattern.permute.xlu0 %v6405_v12  ;;  %s3762_s30 = smov 110   ;;  %s3763_s12 = smov 109  }
   0xd   :  { %200 = vmatprep.mubr.f32.mxu0 %v3720_v4  ;;  %449 = vperm.xlu0 %3533, %v3833_v1   ;;  %s3764_s13 = smov 108   ;;  %s3765_s2 = smov 107  }
   0xe   :  { %3395 = vmatpush3.msra.mxu0 %v45_v10  ;;  %s3766_s14 = smov 106  }
   0xf   :  { %3535 = vset.pattern.permute.xlu1 %v6403_v13 }
  0x10   :  { %522 = vperm.xlu1 %3535, %v3833_v1   ;;  %3290 = vmatmul.mubr.msk.f32.gmra.mrb[6].mxu0 %vm46_vm0, %v40_v11 }
  0x11   :  { %3396 = vmatprep.mubr.msk.f32.mxu0 %vm46_vm0, %v39_v5  ;;  %3536 = vset.pattern.permute.xlu0 %v6403_v13 }
  0x12   :  { %526 = vperm.xlu0 %3536, %v3848_v6  }
  0x14   :  { %3537 = vset.pattern.permute.xlu1 %v6401_v14  ;;  %3397 = vmatmul.mubr.msk.f32.vlgmr.msra.gmra.mrb[8].mxu0 %vm46_vm0, %v40_v11  ;;  %vm1445_vm0 = vcmask 916480  }
  0x15   :  { %595 = vperm.xlu1 %3537, %v3833_v1  }
  0x16   :  { %3538 = vset.pattern.permute.xlu0 %v6398_v15 }
  0x17   :  { %668 = vperm.xlu0 %3538, %v3833_v1  }
  0x19   :  { %599 = vperm.xlu1 %3537, %v3848_v6  }
  0x1b   :  { %3541 = vset.pattern.permute.xlu0 %v6399_v16 }
  0x1c   :  { %745 = vperm.xlu0 %3541, %v3848_v6  }
  0x1d   :  { %3539 = vset.pattern.permute.xlu1 %v6398_v15 }
  0x1e   :  { %672 = vperm.xlu1 %3539, %v3848_v6  }
  0x20   :  { %3543 = vset.pattern.permute.xlu0 %v6389_v17 }
  0x21   :  { %887 = vperm.xlu0 %3543, %v3833_v1  }
  0x22   :  { %3540 = vset.pattern.permute.xlu1 %v6399_v16 }
  0x23   :  { %741 = vperm.xlu1 %3540, %v3833_v1  }
  0x25   :  { %3546 = vset.pattern.permute.xlu0 %v6394_v18 }
  0x26   :  { %964 = vperm.xlu0 %3546, %v3848_v6  }
  0x27   :  { %3542 = vset.pattern.permute.xlu1 %v6396_v19 }
  0x28   :  { %814 = vperm.xlu1 %3542, %v3833_v1  }
  0x2a   :  { %3548 = vset.pattern.permute.xlu0 %v6384_v20 }
  0x2b   :  { %1106 = vperm.xlu0 %3548, %v3833_v1  }
  0x2c   :  { %818 = vperm.xlu1 %3542, %v3848_v6  }
  0x2f   :  { %3551 = vset.pattern.permute.xlu0 %v6390_v21 }
  0x30   :  { %3544 = vset.pattern.permute.xlu1 %v6389_v17  ;;  %1183 = vperm.xlu0 %3551, %v3848_v6  }
  0x31   :  { %891 = vperm.xlu1 %3544, %v3848_v6  }
  0x34   :  { %3553 = vset.pattern.permute.xlu0 %v6383_v22 }
  0x35   :  { %3545 = vset.pattern.permute.xlu1 %v6394_v18  ;;  %1325 = vperm.xlu0 %3553, %v3833_v1  }
  0x36   :  { %960 = vperm.xlu1 %3545, %v3833_v1  }
  0x39   :  { %3556 = vset.pattern.permute.xlu0 %v3733_v23 }
  0x3a   :  { %3547 = vset.pattern.permute.xlu1 %v6392_v24  ;;  %1402 = vperm.xlu0 %3556, %v3848_v6  }
  0x3b   :  { %1033 = vperm.xlu1 %3547, %v3833_v1  }
  0x3e   :  { %3558 = vset.pattern.permute.xlu0 %v3735_v25 }
  0x3f   :  { %1037 = vperm.xlu1 %3547, %v3848_v6   ;;  %1544 = vperm.xlu0 %3558, %v3833_v1  }
  0x43   :  { %3549 = vset.pattern.permute.xlu1 %v6384_v20  ;;  %3561 = vset.pattern.permute.xlu0 %v3736_v26 }
  0x44   :  { %1110 = vperm.xlu1 %3549, %v3848_v6   ;;  %1621 = vperm.xlu0 %3561, %v3848_v6  }
  0x48   :  { %3550 = vset.pattern.permute.xlu1 %v6390_v21  ;;  %3563 = vset.pattern.permute.xlu0 %v3737_v27 }
  0x49   :  { %1179 = vperm.xlu1 %3550, %v3833_v1   ;;  %1763 = vperm.xlu0 %3563, %v3833_v1  }
  0x4d   :  { %3552 = vset.pattern.permute.xlu1 %v6387_v28  ;;  %3566 = vset.pattern.permute.xlu0 %v3739_v29 }
  0x4e   :  { %1252 = vperm.xlu1 %3552, %v3833_v1   ;;  %1840 = vperm.xlu0 %3566, %v3848_v6  }
  0x52   :  { %1256 = vperm.xlu1 %3552, %v3848_v6   ;;  %3568 = vset.pattern.permute.xlu0 %v3740_v30 }
  0x53   :  { %1982 = vperm.xlu0 %3568, %v3833_v1  }
  0x56   :  { %3554 = vset.pattern.permute.xlu1 %v6383_v22 }
  0x57   :  { %1329 = vperm.xlu1 %3554, %v3848_v6   ;;  %3571 = vset.pattern.permute.xlu0 %v6385_v31 }
  0x58   :  { %291 = vperm.xlu0 %3571, %v3848_v6  }
  0x5b   :  { %3555 = vset.pattern.permute.xlu1 %v3733_v23 }
  0x5c   :  { %1398 = vperm.xlu1 %3555, %v3833_v1  }
  0x60   :  { %3557 = vset.pattern.permute.xlu1 %v3742_v32 }
  0x61   :  { %1471 = vperm.xlu1 %3557, %v3833_v1  }
  0x65   :  { %1475 = vperm.xlu1 %3557, %v3848_v6  }
  0x69   :  { %3559 = vset.pattern.permute.xlu1 %v3735_v25 }
  0x6a   :  { %1548 = vperm.xlu1 %3559, %v3848_v6  }
  0x6e   :  { %3560 = vset.pattern.permute.xlu1 %v3736_v26 }
  0x6f   :  { %1617 = vperm.xlu1 %3560, %v3833_v1  }
  0x73   :  { %3562 = vset.pattern.permute.xlu1 %v3743_v33 }
  0x74   :  { %1690 = vperm.xlu1 %3562, %v3833_v1  }
  0x78   :  { %1694 = vperm.xlu1 %3562, %v3848_v6  }
  0x7c   :  { %3564 = vset.pattern.permute.xlu1 %v3737_v27 }
  0x7d   :  { %1767 = vperm.xlu1 %3564, %v3848_v6  }
  0x81   :  { %3565 = vset.pattern.permute.xlu1 %v3739_v29  ;;  %v3939_v35 = vpop.permute.xlu1 %376 }
  0x82   :  { %1836 = vperm.xlu1 %3565, %v3833_v1  }
  0x83   :  { %v3966_v47 = vpop.permute.xlu0 %303 }
  0x85   :  { %v3943_v36 = vpop.permute.xlu1 %380 }
  0x86   :  { %3567 = vset.pattern.permute.xlu1 %v3744_v34 }
  0x87   :  { %1909 = vperm.xlu1 %3567, %v3833_v1   ;;  %v3976_v52 = vpop.permute.xlu0 %307 }
  0x8a   :  { %v3946_v37 = vpop.permute.xlu1 %453 }
  0x8b   :  { %1913 = vperm.xlu1 %3567, %v3848_v6  }
  0x8c   :  { %v3993_v59 = vpop.permute.xlu0 %449 }
  0x8f   :  { %3569 = vset.pattern.permute.xlu1 %v3740_v30  ;;  %v3948_v38 = vpop.permute.xlu1 %522 }
  0x90   :  { %1986 = vperm.xlu1 %3569, %v3848_v6  }
  0x91   :  { %v4020_v8 = vpop.permute.xlu0 %526 }
  0x94   :  { %3570 = vset.pattern.permute.xlu1 %v6385_v31  ;;  %v3950_v39 = vpop.permute.xlu1 %595 }
  0x95   :  { %286 = vperm.xlu1 %3570, %v3833_v1  }
  0x98   :  { %v3952_v40 = vpop.permute.xlu1 %599 }
  0x9d   :  { %v3954_v41 = vpop.permute.xlu1 %672 }
  0xa2   :  { %v3956_v42 = vpop.permute.xlu1 %741 }
  0xa7   :  { %v3958_v43 = vpop.permute.xlu1 %814 }
  0xab   :  { %v3960_v44 = vpop.permute.xlu1 %818 }
  0xb0   :  { %v3962_v45 = vpop.permute.xlu1 %891 }
  0xb5   :  { %v3964_v46 = vpop.permute.xlu1 %960 }
  0xba   :  { %v3968_v48 = vpop.permute.xlu1 %1033 }
  0xbe   :  { %v3990_v58 = vpop.permute.xlu1 %1037 }
  0xc3   :  { %v4005_v1 = vpop.permute.xlu1 %1110 }
  0xc8   :  { %v4026_v11 = vpop.permute.xlu1 %1179 }
  0xcd   :  { %v4037_v27 = vpop.permute.xlu1 %1252 }
  0xd1   :  { %v4048_v33 = vpop.permute.xlu1 %1256 }
  0xd7   :  { %v3970_v49 = vpop.f32.mrb[0].mxu0 }
  0xd8   :  { %v3972_v50 = vpop.f32.mrb[1].mxu0  ;;  %v310_v51 = vmul.f32 %v3966_v47, %v3970_v49  ;;  %v383_v56 = vmul.f32 %v3939_v35, %v3970_v49  ;;  %v456_v62 = vmul.f32 %v3993_v59, %v3970_v49  ;;  %v529_v4 = vmul.f32 %v3948_v38, %v3970_v49 }
  0xd9   :  { %v311_v53 = vmul.f32 %v3966_v47, %v3972_v50  ;;  %v602_v10 = vmul.f32 %v3950_v39, %v3970_v49  ;;  %v384_v25 = vmul.f32 %v3939_v35, %v3972_v50  ;;  %v457_v29 = vmul.f32 %v3993_v59, %v3972_v50 }
  0xda   :  { %330 = vrot.lane.b32.xlu0 %v310_v51, %s3745_s0  ;;  %v530_v32 = vmul.f32 %v3948_v38, %v3972_v50  ;;  %v603_v51 = vmul.f32 %v3950_v39, %v3972_v50 }
  0xdb   :  { %332 = vrot.lane.b32.xlu1 %v311_v53, %s3745_s0  ;;  %v3982_v54 = vpop.f32.mrb[2].mxu0 }
  0xdc   :  { %v3984_v55 = vpop.f32.mrb[3].mxu0  ;;  %v315_v57 = vmul.f32 %v3976_v52, %v3982_v54  ;;  %v388_v63 = vmul.f32 %v3943_v36, %v3982_v54  ;;  %v461_v5 = vmul.f32 %v3946_v37, %v3982_v54  ;;  %v534_v23 = vmul.f32 %v4020_v8, %v3982_v54 }
  0xdd   :  { %v607_v26 = vmul.f32 %v3952_v40, %v3982_v54  ;;  %v680_v19 = vmul.f32 %v3954_v41, %v3982_v54 }
  0xde   :  { %403 = vrot.lane.b32.xlu0 %v383_v56, %s3746_s1  ;;  %v4058_v56 = vpop.permute.xlu0 %668 }
  0xdf   :  { %340 = vrot.lane.b32.xlu1 %v315_v57, %s3745_s0  ;;  %v3996_v60 = vpop.f32.mrb[4].mxu0  ;;  %v4061_v57 = vpop.permute.xlu1 %1329 }
  0xe0   :  { %v3998_v61 = vpop.f32.mrb[5].mxu0  ;;  %v312_v30 = vmul.f32 %v3966_v47, %v3996_v60  ;;  %v385_v34 = vmul.f32 %v3939_v35, %v3996_v60  ;;  %v458_v53 = vmul.f32 %v3993_v59, %v3996_v60  ;;  %v750_v16 = vmul.f32 %v3956_v42, %v3996_v60 }
  0xe2   :  { %476 = vrot.lane.b32.xlu0 %v456_v62, %s3747_s15  ;;  %v316_v62 = vmul.f32 %v3976_v52, %v3984_v55 }
  0xe3   :  { %413 = vrot.lane.b32.xlu1 %v388_v63, %s3746_s1  ;;  %v4008_v2 = vpop.f32.mrb[6].mxu0  ;;  %v531_v63 = vmul.f32 %v3948_v38, %v3996_v60 }
  0xe4   :  { %v4010_v3 = vpop.f32.mrb[7].mxu0 }
  0xe5   :  { %v318_v28 = vmul.f32 %v3976_v52, %v4010_v3  ;;  %v391_v17 = vmul.f32 %v3943_v36, %v4010_v3  ;;  %v464_v21 = vmul.f32 %v3946_v37, %v4010_v3 }
  0xe6   :  { %549 = vrot.lane.b32.xlu0 %v529_v4, %s3748_s16  ;;  %v4070_v4 = vpop.permute.xlu0 %745 }
  0xe7   :  { %486 = vrot.lane.b32.xlu1 %v461_v5, %s3747_s15  ;;  %v4018_v6 = vpop.f32.mrb[8].mxu0  ;;  %v389_v5 = vmul.f32 %v3943_v36, %v3984_v55  ;;  %v755_v12 = vmul.f32 %v4070_v4, %v4008_v2 }
  0xe8   :  { %v4022_v9 = vpop.f32.mrb[9].mxu0  ;;  %v684_v18 = vmul.f32 %v4018_v6, %v3954_v41  ;;  %v757_v7 = vmul.f32 %v4018_v6, %v4070_v4 }
  0xea   :  { %622 = vrot.lane.b32.xlu0 %v602_v10, %s3749_s17  ;;  %v4074_v10 = vpop.permute.xlu1 %1398 }
  0xeb   :  { %559 = vrot.lane.b32.xlu1 %v534_v23, %s3748_s16  ;;  %v604_v23 = vmul.f32 %v3950_v39, %v3996_v60 }
  0xee   :  { %405 = vrot.lane.b32.xlu0 %v384_v25, %s3746_s1  ;;  %v462_v25 = vmul.f32 %v3946_v37, %v3984_v55 }
  0xef   :  { %632 = vrot.lane.b32.xlu1 %v607_v26, %s3749_s17  ;;  %v317_v26 = vmul.f32 %v3976_v52, %v4008_v2 }
  0xf2   :  { %478 = vrot.lane.b32.xlu0 %v457_v29, %s3747_s15  ;;  %v4084_v29 = vpop.permute.xlu0 %887 }
  0xf3   :  { %334 = vrot.lane.b32.xlu1 %v312_v30, %s3745_s0  ;;  %v4087_v30 = vpop.permute.xlu1 %1471 }
  0xf6   :  { %551 = vrot.lane.b32.xlu0 %v530_v32, %s3748_s16  ;;  %v535_v32 = vmul.f32 %v4020_v8, %v3984_v55 }
  0xf7   :  { %407 = vrot.lane.b32.xlu1 %v385_v34, %s3746_s1  ;;  %v390_v34 = vmul.f32 %v3943_v36, %v4008_v2 }
  0xfa   :  { %624 = vrot.lane.b32.xlu0 %v603_v51, %s3749_s17  ;;  %v4096_v51 = vpop.permute.xlu0 %964 }
  0xfb   :  { %480 = vrot.lane.b32.xlu1 %v458_v53, %s3747_s15  ;;  %v608_v53 = vmul.f32 %v3952_v40, %v3984_v55 }
  0xfe   :  { %342 = vrot.lane.b32.xlu0 %v316_v62, %s3745_s0  ;;  %v4100_v62 = vpop.permute.xlu1 %1475 }
  0xff   :  { %553 = vrot.lane.b32.xlu1 %v531_v63, %s3748_s16  ;;  %v463_v63 = vmul.f32 %v3946_v37, %v4008_v2 }
 0x102   :  { %415 = vrot.lane.b32.xlu0 %v389_v5, %s3746_s1  ;;  %v313_v5 = vmul.f32 %v3966_v47, %v3998_v61 }
 0x103   :  { %626 = vrot.lane.b32.xlu1 %v604_v23, %s3749_s17  ;;  %v536_v23 = vmul.f32 %v4020_v8, %v4008_v2 }
 0x106   :  { %488 = vrot.lane.b32.xlu0 %v462_v25, %s3747_s15  ;;  %v4110_v25 = vpop.permute.xlu0 %1106 }
 0x107   :  { %344 = vrot.lane.b32.xlu1 %v317_v26, %s3745_s0  ;;  %v4113_v26 = vpop.permute.xlu1 %1548 }
 0x10a   :  { %561 = vrot.lane.b32.xlu0 %v535_v32, %s3748_s16  ;;  %v386_v32 = vmul.f32 %v3939_v35, %v3998_v61 }
 0x10b   :  { %417 = vrot.lane.b32.xlu1 %v390_v34, %s3746_s1  ;;  %v609_v34 = vmul.f32 %v3952_v40, %v4008_v2 }
 0x10e   :  { %634 = vrot.lane.b32.xlu0 %v608_v53, %s3749_s17  ;;  %v4122_v53 = vpop.permute.xlu0 %1183 }
 0x10f   :  { %490 = vrot.lane.b32.xlu1 %v463_v63, %s3747_s15  ;;  %v459_v63 = vmul.f32 %v3993_v59, %v3998_v61 }
 0x112   :  { %336 = vrot.lane.b32.xlu0 %v313_v5, %s3745_s0  ;;  %v4126_v5 = vpop.permute.xlu1 %1617  ;;  %v4136_v22 = vpop.permute.xlu0 %1325 }
 0x113   :  { %563 = vrot.lane.b32.xlu1 %v536_v23, %s3748_s16  ;;  %v677_v23 = vmul.f32 %v4058_v56, %v3996_v60 }
 0x116   :  { %409 = vrot.lane.b32.xlu0 %v386_v32, %s3746_s1  ;;  %v532_v32 = vmul.f32 %v3948_v38, %v3998_v61  ;;  %v4139_v20 = vpop.permute.xlu1 %1690  ;;  %v4148_v31 = vpop.permute.xlu0 %1402 }
 0x117   :  { %636 = vrot.lane.b32.xlu1 %v609_v34, %s3749_s17  ;;  %v319_v34 = vmul.f32 %v4018_v6, %v3976_v52 }
 0x11a   :  { %482 = vrot.lane.b32.xlu0 %v459_v63, %s3747_s15  ;;  %v605_v63 = vmul.f32 %v3950_v39, %v3998_v61 }
 0x11b   :  { %699 = vrot.lane.b32.xlu1 %v677_v23, %s3750_s18  ;;  %v392_v23 = vmul.f32 %v4018_v6, %v3943_v36 }
 0x11e   :  { %555 = vrot.lane.b32.xlu0 %v532_v32, %s3748_s16  ;;  %v4152_v32 = vpop.permute.xlu1 %1694 }
 0x11f   :  { %348 = vrot.lane.b32.xlu1 %v319_v34, %s3745_s0  ;;  %v465_v34 = vmul.f32 %v4018_v6, %v3946_v37  ;;  %v610_v37 = vmul.f32 %v3952_v40, %v4010_v3 }
 0x122   :  { %628 = vrot.lane.b32.xlu0 %v605_v63, %s3749_s17  ;;  %v538_v63 = vmul.f32 %v4018_v6, %v4020_v8  ;;  %v4165_v52 = vpop.permute.xlu1 %1767 }
 0x123   :  { %421 = vrot.lane.b32.xlu1 %v392_v23, %s3746_s1  ;;  %v4162_v23 = vpop.permute.xlu0 %1544 }
 0x126   :  { %346 = vrot.lane.b32.xlu0 %v318_v28, %s3745_s0  ;;  %v611_v28 = vmul.f32 %v4018_v6, %v3952_v40 }
 0x127   :  { %494 = vrot.lane.b32.xlu1 %v465_v34, %s3747_s15  ;;  %v4174_v36 = vpop.permute.xlu0 %1621  ;;  %v537_v34 = vmul.f32 %v4020_v8, %v4010_v3 }
 0x12a   :  { %419 = vrot.lane.b32.xlu0 %v391_v17, %s3746_s1  ;;  %v4178_v17 = vpop.permute.xlu1 %1836 }
 0x12b   :  { %567 = vrot.lane.b32.xlu1 %v538_v63, %s3748_s16  ;;  %v314_v63 = vmul.f32 %v3966_v47, %v4022_v9  ;;  %v676_v47 = vmul.f32 %v4058_v56, %v3972_v50 }
 0x12e   :  { %492 = vrot.lane.b32.xlu0 %v464_v21, %s3747_s15  ;;  %v387_v21 = vmul.f32 %v3939_v35, %v4022_v9  ;;  %v4191_v8 = vpop.permute.xlu1 %1909  ;;  %v678_v35 = vmul.f32 %v4058_v56, %v3998_v61 }
 0x12f   :  { %640 = vrot.lane.b32.xlu1 %v611_v28, %s3749_s17  ;;  %v4188_v28 = vpop.permute.xlu0 %1763 }
 0x132   :  { %565 = vrot.lane.b32.xlu0 %v537_v34, %s3748_s16  ;;  %v460_v34 = vmul.f32 %v3993_v59, %v4022_v9  ;;  %v681_v59 = vmul.f32 %v3954_v41, %v3984_v55 }
 0x133   :  { %338 = vrot.lane.b32.xlu1 %v314_v63, %s3745_s0  ;;  %v4200_v40 = vpop.permute.xlu0 %1840  ;;  %v4204_v63 = vpop.permute.xlu1 %1913 }
 0x136   :  { %638 = vrot.lane.b32.xlu0 %v610_v37, %s3749_s17  ;;  %v533_v37 = vmul.f32 %v3948_v38, %v4022_v9  ;;  %v683_v38 = vmul.f32 %v3954_v41, %v4010_v3 }
 0x137   :  { %411 = vrot.lane.b32.xlu1 %v387_v21, %s3746_s1  ;;  %v606_v21 = vmul.f32 %v3950_v39, %v4022_v9  ;;  %v675_v39 = vmul.f32 %v4058_v56, %v3970_v49 }
 0x13a   :  { %697 = vrot.lane.b32.xlu0 %v676_v47, %s3750_s18  ;;  %v4214_v47 = vpop.permute.xlu0 %1982 }
 0x13b   :  { %484 = vrot.lane.b32.xlu1 %v460_v34, %s3747_s15  ;;  %v4217_v34 = vpop.permute.xlu1 %1986 }
 0x13e   :  { %701 = vrot.lane.b32.xlu0 %v678_v35, %s3750_s18  ;;  %v679_v35 = vmul.f32 %v4058_v56, %v4022_v9 }
 0x13f   :  { %557 = vrot.lane.b32.xlu1 %v533_v37, %s3748_s16  ;;  %v4226_v37 = vpop.permute.xlu0 %291 }
 0x142   :  { %707 = vrot.lane.b32.xlu0 %v681_v59, %s3750_s18  ;;  %v4230_v59 = vpop.permute.xlu1 %286 }
 0x143   :  { %630 = vrot.lane.b32.xlu1 %v606_v21, %s3749_s17  ;;  %v682_v21 = vmul.f32 %v3954_v41, %v4008_v2  ;;  %v756_v41 = vmul.f32 %v4070_v4, %v4010_v3 }
 0x146   :  { %711 = vrot.lane.b32.xlu0 %v683_v38, %s3750_s18  ;;  %v749_v38 = vmul.f32 %v3956_v42, %v3972_v50 }
 0x147   :  { %703 = vrot.lane.b32.xlu1 %v679_v35, %s3750_s18 }
 0x14a   :  { %695 = vrot.lane.b32.xlu0 %v675_v39, %s3750_s18  ;;  %v751_v39 = vmul.f32 %v3956_v42, %v3998_v61 }
 0x14b   :  { %709 = vrot.lane.b32.xlu1 %v682_v21, %s3750_s18 }
 0x14c   :  { %v4236_v24 = vpop.permute.xlu0 %330 }
 0x14d   :  { %v4240_v35 = vpop.permute.xlu1 %332 }
 0x14e   :  { %770 = vrot.lane.b32.xlu0 %v749_v38, %s3751_s19  ;;  %v754_v38 = vmul.f32 %v4070_v4, %v3984_v55 }
 0x14f   :  { %713 = vrot.lane.b32.xlu1 %v684_v18, %s3750_s18 }
 0x150   :  { %v4246_v56 = vpop.permute.xlu0 %403 }
 0x151   :  { %v4250_v21 = vpop.permute.xlu1 %340 }
 0x152   :  { %6532 = vst [vmem:[#allocation3_spill] sm:$0xff] %v4250_v21  ;;  %774 = vrot.lane.b32.xlu0 %v751_v39, %s3751_s19  ;;  %v752_v39 = vmul.f32 %v3956_v42, %v4022_v9 }
 0x153   :  { %705 = vrot.lane.b32.xlu1 %v680_v19, %s3750_s18 }
 0x154   :  { %v4256_v15 = vpop.permute.xlu0 %476 }
 0x155   :  { %v4260_v18 = vpop.permute.xlu1 %413 }
 0x156   :  { %6533 = vst [vmem:[#allocation4_spill] sm:$0xff] %v4260_v18  ;;  %780 = vrot.lane.b32.xlu0 %v754_v38, %s3751_s19  ;;  %v748_v38 = vmul.f32 %v3956_v42, %v3970_v49 }
 0x157   :  { %772 = vrot.lane.b32.xlu1 %v750_v16, %s3751_s19 }
 0x158   :  { %v4266_v14 = vpop.permute.xlu0 %549 }
 0x159   :  { %v4270_v19 = vpop.permute.xlu1 %486 }
 0x15a   :  { %6534 = vst [vmem:[#allocation5_spill] sm:$0xff] %v4270_v19  ;;  %784 = vrot.lane.b32.xlu0 %v756_v41, %s3751_s19  ;;  %v822_v41 = vmul.f32 %v3958_v43, %v3972_v50  ;;  %v823_v19 = vmul.f32 %v3958_v43, %v3996_v60 }
 0x15b   :  { %776 = vrot.lane.b32.xlu1 %v752_v39, %s3751_s19 }
 0x15c   :  { %v4276_v13 = vpop.permute.xlu0 %622 }
 0x15d   :  { %6535 = vst [vmem:[#allocation6_spill] sm:$0xff] %v4276_v13  ;;  %v4280_v16 = vpop.permute.xlu1 %559 }
 0x15e   :  { %6536 = vst [vmem:[#allocation7_spill] sm:$0xff] %v4280_v16  ;;  %768 = vrot.lane.b32.xlu0 %v748_v38, %s3751_s19  ;;  %v753_v16 = vmul.f32 %v4070_v4, %v3982_v54  ;;  %v829_v4 = vmul.f32 %v3960_v44, %v4010_v3 }
 0x15f   :  { %782 = vrot.lane.b32.xlu1 %v755_v12, %s3751_s19  ;;  %v824_v12 = vmul.f32 %v3958_v43, %v3998_v61 }
 0x160   :  { %v4286_v0 = vpop.permute.xlu0 %405 }
 0x161   :  { %v4290_v39 = vpop.permute.xlu1 %632 }
 0x162   :  { %6537 = vst [vmem:[#allocation8_spill] sm:$0xff] %v4290_v39  ;;  %843 = vrot.lane.b32.xlu0 %v822_v41, %s3752_s20  ;;  %v827_v41 = vmul.f32 %v3960_v44, %v3984_v55 }
 0x163   :  { %786 = vrot.lane.b32.xlu1 %v757_v7, %s3751_s19 }
 0x164   :  { %v4296_v42 = vpop.permute.xlu0 %478 }
 0x165   :  { %v4300_v38 = vpop.permute.xlu1 %334 }
 0x166   :  { %847 = vrot.lane.b32.xlu0 %v824_v12, %s3752_s20  ;;  %v825_v12 = vmul.f32 %v3958_v43, %v4022_v9 }
 0x167   :  { %778 = vrot.lane.b32.xlu1 %v753_v16, %s3751_s19 }
 0x168   :  { %v4306_v39 = vpop.permute.xlu0 %551 }
 0x169   :  { %v4310_v7 = vpop.permute.xlu1 %407 }
 0x16a   :  { %853 = vrot.lane.b32.xlu0 %v827_v41, %s3752_s20  ;;  %v821_v41 = vmul.f32 %v3958_v43, %v3970_v49 }
 0x16b   :  { %845 = vrot.lane.b32.xlu1 %v823_v19, %s3752_s20 }
 0x16c   :  { %v4316_v13 = vpop.permute.xlu0 %624 }
 0x16d   :  { %6538 = vst [vmem:[#allocation9_spill] sm:$0xff] %v4316_v13  ;;  %v4320_v16 = vpop.permute.xlu1 %480  ;;  %v828_v13 = vmul.f32 %v3960_v44, %v4008_v2 }
 0x16e   :  { %857 = vrot.lane.b32.xlu0 %v829_v4, %s3752_s20  ;;  %v895_v4 = vmul.f32 %v4084_v29, %v3972_v50 }
 0x16f   :  { %849 = vrot.lane.b32.xlu1 %v825_v12, %s3752_s20 }
 0x170   :  { %v4326_v18 = vpop.permute.xlu0 %342 }
 0x171   :  { %6539 = vst [vmem:[#allocation10_spill] sm:$0xff] %v4326_v18  ;;  %v4330_v19 = vpop.permute.xlu1 %553  ;;  %v830_v18 = vmul.f32 %v4018_v6, %v3960_v44 }
 0x172   :  { %841 = vrot.lane.b32.xlu0 %v821_v41, %s3752_s20 }
 0x173   :  { %855 = vrot.lane.b32.xlu1 %v828_v13, %s3752_s20  ;;  %v897_v13 = vmul.f32 %v4084_v29, %v3998_v61 }
 0x174   :  { %v4336_v21 = vpop.permute.xlu0 %415 }
 0x175   :  { %6540 = vst [vmem:[#allocation11_spill] sm:$0xff] %v4336_v21  ;;  %v4340_v12 = vpop.permute.xlu1 %626  ;;  %v826_v21 = vmul.f32 %v3960_v44, %v3982_v54  ;;  %v902_v44 = vmul.f32 %v3962_v45, %v4010_v3 }
 0x176   :  { %6541 = vst [vmem:[#allocation12_spill] sm:$0xff] %v4340_v12  ;;  %916 = vrot.lane.b32.xlu0 %v895_v4, %s3753_s21  ;;  %v900_v4 = vmul.f32 %v3962_v45, %v3984_v55 }
 0x177   :  { %859 = vrot.lane.b32.xlu1 %v830_v18, %s3752_s20 }
 0x178   :  { %v4346_v43 = vpop.permute.xlu0 %488 }
 0x179   :  { %6542 = vst [vmem:[#allocation13_spill] sm:$0xff] %v4346_v43  ;;  %v4350_v41 = vpop.permute.xlu1 %344  ;;  %v896_v43 = vmul.f32 %v4084_v29, %v3996_v60 }
 0x17a   :  { %6543 = vst [vmem:[#allocation14_spill] sm:$0xff] %v4350_v41  ;;  %920 = vrot.lane.b32.xlu0 %v897_v13, %s3753_s21  ;;  %v898_v13 = vmul.f32 %v4084_v29, %v4022_v9 }
 0x17b   :  { %851 = vrot.lane.b32.xlu1 %v826_v21, %s3752_s20 }
 0x17c   :  { %v4356_v12 = vpop.permute.xlu0 %561 }
 0x17d   :  { %6544 = vst [vmem:[#allocation15_spill] sm:$0xff] %v4356_v12  ;;  %v4360_v18 = vpop.permute.xlu1 %417 }
 0x17e   :  { %926 = vrot.lane.b32.xlu0 %v900_v4, %s3753_s21  ;;  %v894_v4 = vmul.f32 %v4084_v29, %v3970_v49 }
 0x17f   :  { %918 = vrot.lane.b32.xlu1 %v896_v43, %s3753_s21 }
 0x180   :  { %v4366_v41 = vpop.permute.xlu0 %634 }
 0x181   :  { %6545 = vst [vmem:[#allocation16_spill] sm:$0xff] %v4366_v41  ;;  %v4370_v21 = vpop.permute.xlu1 %490  ;;  %v901_v41 = vmul.f32 %v3962_v45, %v4008_v2 }
 0x182   :  { %6546 = vst [vmem:[#allocation17_spill] sm:$0xff] %v4370_v21  ;;  %930 = vrot.lane.b32.xlu0 %v902_v44, %s3753_s21  ;;  %v968_v44 = vmul.f32 %v3964_v46, %v3972_v50 }
 0x183   :  { %922 = vrot.lane.b32.xlu1 %v898_v13, %s3753_s21 }
 0x184   :  { %v4376_v12 = vpop.permute.xlu0 %336 }
 0x185   :  { %6547 = vst [vmem:[#allocation18_spill] sm:$0xff] %v4376_v12  ;;  %v4380_v43 = vpop.permute.xlu1 %563  ;;  %v903_v12 = vmul.f32 %v4018_v6, %v3962_v45 }
 0x186   :  { %914 = vrot.lane.b32.xlu0 %v894_v4, %s3753_s21 }
 0x187   :  { %928 = vrot.lane.b32.xlu1 %v901_v41, %s3753_s21  ;;  %v970_v41 = vmul.f32 %v3964_v46, %v3998_v61 }
 0x188   :  { %v4386_v21 = vpop.permute.xlu0 %409 }
 0x189   :  { %6548 = vst [vmem:[#allocation19_spill] sm:$0xff] %v4386_v21  ;;  %v4390_v13 = vpop.permute.xlu1 %636  ;;  %v899_v21 = vmul.f32 %v3962_v45, %v3982_v54  ;;  %v975_v45 = vmul.f32 %v4096_v51, %v4010_v3 }
 0x18a   :  { %6549 = vst [vmem:[#allocation20_spill] sm:$0xff] %v4390_v13  ;;  %989 = vrot.lane.b32.xlu0 %v968_v44, %s3754_s22  ;;  %v973_v44 = vmul.f32 %v4096_v51, %v3984_v55 }
 0x18b   :  { %932 = vrot.lane.b32.xlu1 %v903_v12, %s3753_s21 }
 0x18c   :  { %v4396_v29 = vpop.permute.xlu0 %482 }
 0x18d   :  { %6550 = vst [vmem:[#allocation21_spill] sm:$0xff] %v4396_v29  ;;  %v4400_v4 = vpop.permute.xlu1 %699  ;;  %v969_v29 = vmul.f32 %v3964_v46, %v3996_v60 }
 0x18e   :  { %6551 = vst [vmem:[#allocation22_spill] sm:$0xff] %v4400_v4  ;;  %993 = vrot.lane.b32.xlu0 %v970_v41, %s3754_s22  ;;  %v971_v41 = vmul.f32 %v3964_v46, %v4022_v9 }
 0x18f   :  { %924 = vrot.lane.b32.xlu1 %v899_v21, %s3753_s21 }
 0x190   :  { %v4406_v13 = vpop.permute.xlu0 %555 }
 0x191   :  { %6552 = vst [vmem:[#allocation23_spill] sm:$0xff] %v4406_v13  ;;  %v4410_v12 = vpop.permute.xlu1 %348 }
 0x192   :  { %6553 = vst [vmem:[#allocation24_spill] sm:$0xff] %v4410_v12  ;;  %999 = vrot.lane.b32.xlu0 %v973_v44, %s3754_s22  ;;  %v967_v44 = vmul.f32 %v3964_v46, %v3970_v49  ;;  %v976_v12 = vmul.f32 %v4018_v6, %v4096_v51 }
 0x193   :  { %991 = vrot.lane.b32.xlu1 %v969_v29, %s3754_s22 }
 0x194   :  { %v4416_v4 = vpop.permute.xlu0 %628 }
 0x195   :  { %6554 = vst [vmem:[#allocation25_spill] sm:$0xff] %v4416_v4  ;;  %v4420_v21 = vpop.permute.xlu1 %421  ;;  %v974_v4 = vmul.f32 %v4096_v51, %v4008_v2 }
 0x196   :  { %6555 = vst [vmem:[#allocation26_spill] sm:$0xff] %v4420_v21  ;;  %1003 = vrot.lane.b32.xlu0 %v975_v45, %s3754_s22  ;;  %v1041_v45 = vmul.f32 %v3968_v48, %v3972_v50 }
 0x197   :  { %995 = vrot.lane.b32.xlu1 %v971_v41, %s3754_s22 }
 0x198   :  { %v4426_v13 = vpop.permute.xlu0 %346 }
 0x199   :  { %v4430_v29 = vpop.permute.xlu1 %494 }
 0x19a   :  { %6556 = vst [vmem:[#allocation27_spill] sm:$0xff] %v4430_v29  ;;  %987 = vrot.lane.b32.xlu0 %v967_v44, %s3754_s22  ;;  %v972_v29 = vmul.f32 %v4096_v51, %v3982_v54  ;;  %v1048_v51 = vmul.f32 %v3990_v58, %v4010_v3 }
 0x19b   :  { %1001 = vrot.lane.b32.xlu1 %v974_v4, %s3754_s22  ;;  %v1043_v4 = vmul.f32 %v3968_v48, %v3998_v61 }
 0x19c   :  { %v4436_v21 = vpop.permute.xlu0 %419 }
 0x19d   :  { %v4440_v41 = vpop.permute.xlu1 %567 }
 0x19e   :  { %6557 = vst [vmem:[#allocation28_spill] sm:$0xff] %v4440_v41  ;;  %1062 = vrot.lane.b32.xlu0 %v1041_v45, %s3755_s23  ;;  %v1046_v45 = vmul.f32 %v3990_v58, %v3984_v55 }
 0x19f   :  { %1005 = vrot.lane.b32.xlu1 %v976_v12, %s3754_s22 }
 0x1a0   :  { %v4446_v46 = vpop.permute.xlu0 %492 }
 0x1a1   :  { %6558 = vst [vmem:[#allocation29_spill] sm:$0xff] %v4446_v46  ;;  %v4450_v44 = vpop.permute.xlu1 %640  ;;  %v1042_v46 = vmul.f32 %v3968_v48, %v3996_v60 }
 0x1a2   :  { %6559 = vst [vmem:[#allocation30_spill] sm:$0xff] %v4450_v44  ;;  %1066 = vrot.lane.b32.xlu0 %v1043_v4, %s3755_s23  ;;  %v1044_v4 = vmul.f32 %v3968_v48, %v4022_v9 }
 0x1a3   :  { %997 = vrot.lane.b32.xlu1 %v972_v29, %s3754_s22 }
 0x1a4   :  { %v4456_v41 = vpop.permute.xlu0 %565 }
 0x1a5   :  { %6560 = vst [vmem:[#allocation31_spill] sm:$0xff] %v4456_v41  ;;  %v4460_v12 = vpop.permute.xlu1 %338 }
 0x1a6   :  { %1072 = vrot.lane.b32.xlu0 %v1046_v45, %s3755_s23  ;;  %v1040_v45 = vmul.f32 %v3968_v48, %v3970_v49 }
 0x1a7   :  { %1064 = vrot.lane.b32.xlu1 %v1042_v46, %s3755_s23 }
 0x1a8   :  { %v4466_v44 = vpop.permute.xlu0 %638 }
 0x1a9   :  { %6561 = vst [vmem:[#allocation32_spill] sm:$0xff] %v4466_v44  ;;  %v4470_v29 = vpop.permute.xlu1 %411  ;;  %v1047_v44 = vmul.f32 %v3990_v58, %v4008_v2 }
 0x1aa   :  { %6562 = vst [vmem:[#allocation33_spill] sm:$0xff] %v4470_v29  ;;  %1076 = vrot.lane.b32.xlu0 %v1048_v51, %s3755_s23  ;;  %v1114_v51 = vmul.f32 %v4110_v25, %v3972_v50 }
 0x1ab   :  { %1068 = vrot.lane.b32.xlu1 %v1044_v4, %s3755_s23 }
 0x1ac   :  { %v4476_v41 = vpop.permute.xlu0 %697 }
 0x1ad   :  { %6563 = vst [vmem:[#allocation34_spill] sm:$0xff] %v4476_v41  ;;  %v4480_v46 = vpop.permute.xlu1 %484  ;;  %v1049_v41 = vmul.f32 %v4018_v6, %v3990_v58 }
 0x1ae   :  { %1060 = vrot.lane.b32.xlu0 %v1040_v45, %s3755_s23 }
 0x1af   :  { %1074 = vrot.lane.b32.xlu1 %v1047_v44, %s3755_s23  ;;  %v1116_v44 = vmul.f32 %v4110_v25, %v3998_v61 }
 0x1b0   :  { %v4486_v29 = vpop.permute.xlu0 %701 }
 0x1b1   :  { %6564 = vst [vmem:[#allocation35_spill] sm:$0xff] %v4486_v29  ;;  %v4490_v4 = vpop.permute.xlu1 %557  ;;  %v1045_v29 = vmul.f32 %v3990_v58, %v3982_v54  ;;  %v1121_v58 = vmul.f32 %v4005_v1, %v4010_v3 }
 0x1b2   :  { %6565 = vst [vmem:[#allocation36_spill] sm:$0xff] %v4490_v4  ;;  %1135 = vrot.lane.b32.xlu0 %v1114_v51, %s3756_s24  ;;  %v1119_v51 = vmul.f32 %v4005_v1, %v3984_v55 }
 0x1b3   :  { %1078 = vrot.lane.b32.xlu1 %v1049_v41, %s3755_s23 }
 0x1b4   :  { %v4496_v48 = vpop.permute.xlu0 %707 }
 0x1b5   :  { %6566 = vst [vmem:[#allocation37_spill] sm:$0xff] %v4496_v48  ;;  %v4500_v45 = vpop.permute.xlu1 %630  ;;  %v1115_v48 = vmul.f32 %v4110_v25, %v3996_v60 }
 0x1b6   :  { %6567 = vst [vmem:[#allocation38_spill] sm:$0xff] %v4500_v45  ;;  %1139 = vrot.lane.b32.xlu0 %v1116_v44, %s3756_s24  ;;  %v1117_v44 = vmul.f32 %v4110_v25, %v4022_v9 }
 0x1b7   :  { %1070 = vrot.lane.b32.xlu1 %v1045_v29, %s3755_s23 }
 0x1b8   :  { %v4506_v4 = vpop.permute.xlu0 %711 }
 0x1b9   :  { %6568 = vst [vmem:[#allocation39_spill] sm:$0xff] %v4506_v4  ;;  %v4510_v41 = vpop.permute.xlu1 %703 }
 0x1ba   :  { %1145 = vrot.lane.b32.xlu0 %v1119_v51, %s3756_s24  ;;  %v1113_v51 = vmul.f32 %v4110_v25, %v3970_v49 }
 0x1bb   :  { %1137 = vrot.lane.b32.xlu1 %v1115_v48, %s3756_s24 }
 0x1bc   :  { %v4516_v45 = vpop.permute.xlu0 %695 }
 0x1bd   :  { %6569 = vst [vmem:[#allocation40_spill] sm:$0xff] %v4516_v45  ;;  %v4520_v29 = vpop.permute.xlu1 %709  ;;  %v1120_v45 = vmul.f32 %v4005_v1, %v4008_v2 }
 0x1be   :  { %6570 = vst [vmem:[#allocation41_spill] sm:$0xff] %v4520_v29  ;;  %1149 = vrot.lane.b32.xlu0 %v1121_v58, %s3756_s24  ;;  %v1187_v58 = vmul.f32 %v4026_v11, %v3972_v50 }
 0x1bf   :  { %1141 = vrot.lane.b32.xlu1 %v1117_v44, %s3756_s24 }
 0x1c0   :  { %v4526_v4 = vpop.permute.xlu0 %770 }
 0x1c1   :  { %6571 = vst [vmem:[#allocation42_spill] sm:$0xff] %v4526_v4  ;;  %v4530_v48 = vpop.permute.xlu1 %713  ;;  %v1122_v4 = vmul.f32 %v4018_v6, %v4005_v1 }
 0x1c2   :  { %1133 = vrot.lane.b32.xlu0 %v1113_v51, %s3756_s24 }
 0x1c3   :  { %1147 = vrot.lane.b32.xlu1 %v1120_v45, %s3756_s24  ;;  %v1189_v45 = vmul.f32 %v4026_v11, %v3998_v61 }
 0x1c4   :  { %v4536_v29 = vpop.permute.xlu0 %774 }
 0x1c5   :  { %6572 = vst [vmem:[#allocation43_spill] sm:$0xff] %v4536_v29  ;;  %v4540_v44 = vpop.permute.xlu1 %705  ;;  %v1118_v29 = vmul.f32 %v4005_v1, %v3982_v54  ;;  %v1194_v1 = vmul.f32 %v4122_v53, %v4010_v3 }
 0x1c6   :  { %6573 = vst [vmem:[#allocation44_spill] sm:$0xff] %v4540_v44  ;;  %1208 = vrot.lane.b32.xlu0 %v1187_v58, %s6510_s25  ;;  %v1192_v58 = vmul.f32 %v4122_v53, %v3984_v55 }
 0x1c7   :  { %1151 = vrot.lane.b32.xlu1 %v1122_v4, %s3756_s24 }
 0x1c8   :  { %v4546_v25 = vpop.permute.xlu0 %780 }
 0x1c9   :  { %6574 = vst [vmem:[#allocation45_spill] sm:$0xff] %v4546_v25  ;;  %v4550_v51 = vpop.permute.xlu1 %772  ;;  %v1188_v25 = vmul.f32 %v4026_v11, %v3996_v60 }
 0x1ca   :  { %6575 = vst [vmem:[#allocation46_spill] sm:$0xff] %v4550_v51  ;;  %1212 = vrot.lane.b32.xlu0 %v1189_v45, %s6510_s25  ;;  %v1190_v45 = vmul.f32 %v4026_v11, %v4022_v9 }
 0x1cb   :  { %1143 = vrot.lane.b32.xlu1 %v1118_v29, %s3756_s24 }
 0x1cc   :  { %v4556_v44 = vpop.permute.xlu0 %784 }
 0x1cd   :  { %6576 = vst [vmem:[#allocation47_spill] sm:$0xff] %v4556_v44  ;;  %v4560_v4 = vpop.permute.xlu1 %776 }
 0x1ce   :  { %1218 = vrot.lane.b32.xlu0 %v1192_v58, %s6510_s25  ;;  %v1186_v58 = vmul.f32 %v4026_v11, %v3970_v49 }
 0x1cf   :  { %1210 = vrot.lane.b32.xlu1 %v1188_v25, %s6510_s25 }
 0x1d0   :  { %v4566_v51 = vpop.permute.xlu0 %768 }
 0x1d1   :  { %6577 = vst [vmem:[#allocation48_spill] sm:$0xff] %v4566_v51  ;;  %v4570_v29 = vpop.permute.xlu1 %782  ;;  %v1193_v51 = vmul.f32 %v4122_v53, %v4008_v2 }
 0x1d2   :  { %6578 = vst [vmem:[#allocation49_spill] sm:$0xff] %v4570_v29  ;;  %1222 = vrot.lane.b32.xlu0 %v1194_v1, %s6510_s25  ;;  %v1260_v1 = vmul.f32 %v4037_v27, %v3972_v50 }
 0x1d3   :  { %1214 = vrot.lane.b32.xlu1 %v1190_v45, %s6510_s25 }
 0x1d4   :  { %v4576_v44 = vpop.permute.xlu0 %843 }
 0x1d5   :  { %6579 = vst [vmem:[#allocation50_spill] sm:$0xff] %v4576_v44  ;;  %v4580_v25 = vpop.permute.xlu1 %786  ;;  %v1195_v44 = vmul.f32 %v4018_v6, %v4122_v53 }
 0x1d6   :  { %1206 = vrot.lane.b32.xlu0 %v1186_v58, %s6510_s25 }
 0x1d7   :  { %1220 = vrot.lane.b32.xlu1 %v1193_v51, %s6510_s25  ;;  %v1262_v51 = vmul.f32 %v4037_v27, %v3998_v61 }
 0x1d8   :  { %v4586_v29 = vpop.permute.xlu0 %847 }
 0x1d9   :  { %6580 = vst [vmem:[#allocation51_spill] sm:$0xff] %v4586_v29  ;;  %v4590_v45 = vpop.permute.xlu1 %778  ;;  %v1191_v29 = vmul.f32 %v4122_v53, %v3982_v54  ;;  %v1267_v53 = vmul.f32 %v4048_v33, %v4010_v3 }
 0x1da   :  { %6581 = vst [vmem:[#allocation52_spill] sm:$0xff] %v4590_v45  ;;  %1281 = vrot.lane.b32.xlu0 %v1260_v1, %s6506_s26  ;;  %v1265_v1 = vmul.f32 %v4048_v33, %v3984_v55 }
 0x1db   :  { %1224 = vrot.lane.b32.xlu1 %v1195_v44, %s6510_s25 }
 0x1dc   :  { %v4596_v11 = vpop.permute.xlu0 %853 }
 0x1dd   :  { %6582 = vst [vmem:[#allocation53_spill] sm:$0xff] %v4596_v11  ;;  %v4600_v58 = vpop.permute.xlu1 %845  ;;  %v1261_v11 = vmul.f32 %v4037_v27, %v3996_v60 }
 0x1de   :  { %6583 = vst [vmem:[#allocation54_spill] sm:$0xff] %v4600_v58  ;;  %1285 = vrot.lane.b32.xlu0 %v1262_v51, %s6506_s26  ;;  %v1263_v51 = vmul.f32 %v4037_v27, %v4022_v9 }
 0x1df   :  { %1216 = vrot.lane.b32.xlu1 %v1191_v29, %s6510_s25 }
 0x1e0   :  { %v4606_v45 = vpop.permute.xlu0 %857 }
 0x1e1   :  { %6584 = vst [vmem:[#allocation55_spill] sm:$0xff] %v4606_v45  ;;  %v4610_v44 = vpop.permute.xlu1 %849 }
 0x1e2   :  { %1291 = vrot.lane.b32.xlu0 %v1265_v1, %s6506_s26  ;;  %v1259_v1 = vmul.f32 %v4037_v27, %v3970_v49 }
 0x1e3   :  { %1283 = vrot.lane.b32.xlu1 %v1261_v11, %s6506_s26 }
 0x1e4   :  { %v4616_v58 = vpop.permute.xlu0 %841 }
 0x1e5   :  { %6585 = vst [vmem:[#allocation56_spill] sm:$0xff] %v4616_v58  ;;  %v4620_v29 = vpop.permute.xlu1 %855  ;;  %v1266_v58 = vmul.f32 %v4048_v33, %v4008_v2 }
 0x1e6   :  { %6586 = vst [vmem:[#allocation57_spill] sm:$0xff] %v4620_v29  ;;  %1295 = vrot.lane.b32.xlu0 %v1267_v53, %s6506_s26  ;;  %v1333_v53 = vmul.f32 %v4136_v22, %v3972_v50 }
 0x1e7   :  { %1287 = vrot.lane.b32.xlu1 %v1263_v51, %s6506_s26 }
 0x1e8   :  { %v4626_v45 = vpop.permute.xlu0 %916 }
 0x1e9   :  { %6587 = vst [vmem:[#allocation58_spill] sm:$0xff] %v4626_v45  ;;  %v4630_v11 = vpop.permute.xlu1 %859  ;;  %v1268_v45 = vmul.f32 %v4018_v6, %v4048_v33 }
 0x1ea   :  { %1279 = vrot.lane.b32.xlu0 %v1259_v1, %s6506_s26 }
 0x1eb   :  { %1293 = vrot.lane.b32.xlu1 %v1266_v58, %s6506_s26  ;;  %v1335_v58 = vmul.f32 %v4136_v22, %v3998_v61 }
 0x1ec   :  { %v4636_v29 = vpop.permute.xlu0 %920 }
 0x1ed   :  { %6588 = vst [vmem:[#allocation59_spill] sm:$0xff] %v4636_v29  ;;  %v4640_v51 = vpop.permute.xlu1 %851  ;;  %v1264_v29 = vmul.f32 %v4048_v33, %v3982_v54  ;;  %v1340_v33 = vmul.f32 %v4061_v57, %v4010_v3 }
 0x1ee   :  { %6589 = vst [vmem:[#allocation60_spill] sm:$0xff] %v4640_v51  ;;  %1354 = vrot.lane.b32.xlu0 %v1333_v53, %s6498_s27  ;;  %v1338_v53 = vmul.f32 %v4061_v57, %v3984_v55 }
 0x1ef   :  { %1297 = vrot.lane.b32.xlu1 %v1268_v45, %s6506_s26 }
 0x1f0   :  { %v4646_v27 = vpop.permute.xlu0 %926 }
 0x1f1   :  { %6590 = vst [vmem:[#allocation61_spill] sm:$0xff] %v4646_v27  ;;  %v4650_v1 = vpop.permute.xlu1 %918  ;;  %v1334_v27 = vmul.f32 %v4136_v22, %v3996_v60 }
 0x1f2   :  { %6591 = vst [vmem:[#allocation62_spill] sm:$0xff] %v4650_v1  ;;  %1358 = vrot.lane.b32.xlu0 %v1335_v58, %s6498_s27  ;;  %v1336_v58 = vmul.f32 %v4136_v22, %v4022_v9 }
 0x1f3   :  { %1289 = vrot.lane.b32.xlu1 %v1264_v29, %s6506_s26 }
 0x1f4   :  { %v4656_v51 = vpop.permute.xlu0 %930 }
 0x1f5   :  { %6592 = vst [vmem:[#allocation63_spill] sm:$0xff] %v4656_v51  ;;  %v4660_v45 = vpop.permute.xlu1 %922 }
 0x1f6   :  { %1364 = vrot.lane.b32.xlu0 %v1338_v53, %s6498_s27  ;;  %v1332_v53 = vmul.f32 %v4136_v22, %v3970_v49 }
 0x1f7   :  { %1356 = vrot.lane.b32.xlu1 %v1334_v27, %s6498_s27 }
 0x1f8   :  { %v4666_v1 = vpop.permute.xlu0 %914 }
 0x1f9   :  { %6593 = vst [vmem:[#allocation64_spill] sm:$0xff] %v4666_v1  ;;  %v4670_v29 = vpop.permute.xlu1 %928  ;;  %v1339_v1 = vmul.f32 %v4061_v57, %v4008_v2 }
 0x1fa   :  { %6594 = vst [vmem:[#allocation65_spill] sm:$0xff] %v4670_v29  ;;  %1368 = vrot.lane.b32.xlu0 %v1340_v33, %s6498_s27  ;;  %v1406_v33 = vmul.f32 %v4074_v10, %v3972_v50 }
 0x1fb   :  { %1360 = vrot.lane.b32.xlu1 %v1336_v58, %s6498_s27 }
 0x1fc   :  { %v4676_v51 = vpop.permute.xlu0 %989 }
 0x1fd   :  { %6595 = vst [vmem:[#allocation66_spill] sm:$0xff] %v4676_v51  ;;  %v4680_v27 = vpop.permute.xlu1 %932  ;;  %v1341_v51 = vmul.f32 %v4018_v6, %v4061_v57 }
 0x1fe   :  { %1352 = vrot.lane.b32.xlu0 %v1332_v53, %s6498_s27 }
 0x1ff   :  { %1366 = vrot.lane.b32.xlu1 %v1339_v1, %s6498_s27  ;;  %v1408_v1 = vmul.f32 %v4074_v10, %v3998_v61 }
 0x200   :  { %v4686_v29 = vpop.permute.xlu0 %993 }
 0x201   :  { %6596 = vst [vmem:[#allocation67_spill] sm:$0xff] %v4686_v29  ;;  %v4690_v58 = vpop.permute.xlu1 %924  ;;  %v1337_v29 = vmul.f32 %v4061_v57, %v3982_v54  ;;  %v1413_v57 = vmul.f32 %v4148_v31, %v4010_v3 }
 0x202   :  { %6597 = vst [vmem:[#allocation68_spill] sm:$0xff] %v4690_v58  ;;  %1427 = vrot.lane.b32.xlu0 %v1406_v33, %s3760_s28  ;;  %v1411_v33 = vmul.f32 %v4148_v31, %v3984_v55 }
 0x203   :  { %1370 = vrot.lane.b32.xlu1 %v1341_v51, %s6498_s27 }
 0x204   :  { %v4696_v22 = vpop.permute.xlu0 %999 }
 0x205   :  { %6598 = vst [vmem:[#allocation69_spill] sm:$0xff] %v4696_v22  ;;  %v4700_v53 = vpop.permute.xlu1 %991  ;;  %v1407_v22 = vmul.f32 %v4074_v10, %v3996_v60 }
 0x206   :  { %6599 = vst [vmem:[#allocation70_spill] sm:$0xff] %v4700_v53  ;;  %1431 = vrot.lane.b32.xlu0 %v1408_v1, %s3760_s28  ;;  %v1409_v1 = vmul.f32 %v4074_v10, %v4022_v9 }
 0x207   :  { %1362 = vrot.lane.b32.xlu1 %v1337_v29, %s6498_s27 }
 0x208   :  { %v4706_v58 = vpop.permute.xlu0 %1003 }
 0x209   :  { %6600 = vst [vmem:[#allocation71_spill] sm:$0xff] %v4706_v58  ;;  %v4710_v51 = vpop.permute.xlu1 %995 }
 0x20a   :  { %1437 = vrot.lane.b32.xlu0 %v1411_v33, %s3760_s28  ;;  %v1405_v33 = vmul.f32 %v4074_v10, %v3970_v49 }
 0x20b   :  { %1429 = vrot.lane.b32.xlu1 %v1407_v22, %s3760_s28 }
 0x20c   :  { %v4716_v53 = vpop.permute.xlu0 %987 }
 0x20d   :  { %6601 = vst [vmem:[#allocation72_spill] sm:$0xff] %v4716_v53  ;;  %v4720_v29 = vpop.permute.xlu1 %1001  ;;  %v1412_v53 = vmul.f32 %v4148_v31, %v4008_v2 }
 0x20e   :  { %6602 = vst [vmem:[#allocation73_spill] sm:$0xff] %v4720_v29  ;;  %1441 = vrot.lane.b32.xlu0 %v1413_v57, %s3760_s28  ;;  %v1479_v57 = vmul.f32 %v4087_v30, %v3972_v50 }
 0x20f   :  { %1433 = vrot.lane.b32.xlu1 %v1409_v1, %s3760_s28 }
 0x210   :  { %v4726_v58 = vpop.permute.xlu0 %1062 }
 0x211   :  { %6603 = vst [vmem:[#allocation74_spill] sm:$0xff] %v4726_v58  ;;  %v4730_v22 = vpop.permute.xlu1 %1005  ;;  %v1414_v58 = vmul.f32 %v4018_v6, %v4148_v31 }
 0x212   :  { %1425 = vrot.lane.b32.xlu0 %v1405_v33, %s3760_s28 }
 0x213   :  { %1439 = vrot.lane.b32.xlu1 %v1412_v53, %s3760_s28  ;;  %v1481_v53 = vmul.f32 %v4087_v30, %v3998_v61 }
 0x214   :  { %v4736_v29 = vpop.permute.xlu0 %1066 }
 0x215   :  { %6604 = vst [vmem:[#allocation75_spill] sm:$0xff] %v4736_v29  ;;  %v4740_v1 = vpop.permute.xlu1 %997  ;;  %v1410_v29 = vmul.f32 %v4148_v31, %v3982_v54  ;;  %v1486_v31 = vmul.f32 %v4100_v62, %v4010_v3 }
 0x216   :  { %6605 = vst [vmem:[#allocation76_spill] sm:$0xff] %v4740_v1  ;;  %1500 = vrot.lane.b32.xlu0 %v1479_v57, %s3761_s29  ;;  %v1484_v57 = vmul.f32 %v4100_v62, %v3984_v55 }
 0x217   :  { %1443 = vrot.lane.b32.xlu1 %v1414_v58, %s3760_s28 }
 0x218   :  { %v4746_v10 = vpop.permute.xlu0 %1072 }
 0x219   :  { %6606 = vst [vmem:[#allocation77_spill] sm:$0xff] %v4746_v10  ;;  %v4750_v33 = vpop.permute.xlu1 %1064  ;;  %v1480_v10 = vmul.f32 %v4087_v30, %v3996_v60 }
 0x21a   :  { %6607 = vst [vmem:[#allocation78_spill] sm:$0xff] %v4750_v33  ;;  %1504 = vrot.lane.b32.xlu0 %v1481_v53, %s3761_s29  ;;  %v1482_v53 = vmul.f32 %v4087_v30, %v4022_v9 }
 0x21b   :  { %1435 = vrot.lane.b32.xlu1 %v1410_v29, %s3760_s28 }
 0x21c   :  { %v4756_v1 = vpop.permute.xlu0 %1076 }
 0x21d   :  { %6608 = vst [vmem:[#allocation79_spill] sm:$0xff] %v4756_v1  ;;  %v4760_v58 = vpop.permute.xlu1 %1068 }
 0x21e   :  { %1510 = vrot.lane.b32.xlu0 %v1484_v57, %s3761_s29  ;;  %v1478_v57 = vmul.f32 %v4087_v30, %v3970_v49 }
 0x21f   :  { %1502 = vrot.lane.b32.xlu1 %v1480_v10, %s3761_s29 }
 0x220   :  { %v4766_v33 = vpop.permute.xlu0 %1060 }
 0x221   :  { %6609 = vst [vmem:[#allocation80_spill] sm:$0xff] %v4766_v33  ;;  %v4770_v29 = vpop.permute.xlu1 %1074  ;;  %v1485_v33 = vmul.f32 %v4100_v62, %v4008_v2 }
 0x222   :  { %6610 = vst [vmem:[#allocation81_spill] sm:$0xff] %v4770_v29  ;;  %1514 = vrot.lane.b32.xlu0 %v1486_v31, %s3761_s29  ;;  %v1552_v31 = vmul.f32 %v4162_v23, %v3972_v50 }
 0x223   :  { %1506 = vrot.lane.b32.xlu1 %v1482_v53, %s3761_s29 }
 0x224   :  { %v4776_v1 = vpop.permute.xlu0 %1135 }
 0x225   :  { %6611 = vst [vmem:[#allocation82_spill] sm:$0xff] %v4776_v1  ;;  %v4780_v10 = vpop.permute.xlu1 %1078  ;;  %v1487_v1 = vmul.f32 %v4018_v6, %v4100_v62 }
 0x226   :  { %1498 = vrot.lane.b32.xlu0 %v1478_v57, %s3761_s29 }
 0x227   :  { %1512 = vrot.lane.b32.xlu1 %v1485_v33, %s3761_s29  ;;  %v1554_v33 = vmul.f32 %v4162_v23, %v3998_v61 }
 0x228   :  { %v4786_v29 = vpop.permute.xlu0 %1139 }
 0x229   :  { %6612 = vst [vmem:[#allocation83_spill] sm:$0xff] %v4786_v29  ;;  %v4790_v53 = vpop.permute.xlu1 %1070  ;;  %v1483_v29 = vmul.f32 %v4100_v62, %v3982_v54  ;;  %v1559_v62 = vmul.f32 %v4113_v26, %v4010_v3 }
 0x22a   :  { %6613 = vst [vmem:[#allocation84_spill] sm:$0xff] %v4790_v53  ;;  %1573 = vrot.lane.b32.xlu0 %v1552_v31, %s3762_s30  ;;  %v1557_v31 = vmul.f32 %v4113_v26, %v3984_v55 }
 0x22b   :  { %1516 = vrot.lane.b32.xlu1 %v1487_v1, %s3761_s29 }
 0x22c   :  { %v4796_v30 = vpop.permute.xlu0 %1145 }
 0x22d   :  { %6614 = vst [vmem:[#allocation85_spill] sm:$0xff] %v4796_v30  ;;  %v4800_v57 = vpop.permute.xlu1 %1137  ;;  %v1553_v30 = vmul.f32 %v4162_v23, %v3996_v60 }
 0x22e   :  { %6615 = vst [vmem:[#allocation86_spill] sm:$0xff] %v4800_v57  ;;  %1577 = vrot.lane.b32.xlu0 %v1554_v33, %s3762_s30  ;;  %v1555_v33 = vmul.f32 %v4162_v23, %v4022_v9 }
 0x22f   :  { %1508 = vrot.lane.b32.xlu1 %v1483_v29, %s3761_s29 }
 0x230   :  { %v4806_v53 = vpop.permute.xlu0 %1149 }
 0x231   :  { %6616 = vst [vmem:[#allocation87_spill] sm:$0xff] %v4806_v53  ;;  %v4810_v1 = vpop.permute.xlu1 %1141 }
 0x232   :  { %1583 = vrot.lane.b32.xlu0 %v1557_v31, %s3762_s30  ;;  %v1551_v31 = vmul.f32 %v4162_v23, %v3970_v49 }
 0x233   :  { %1575 = vrot.lane.b32.xlu1 %v1553_v30, %s3762_s30 }
 0x234   :  { %v4816_v57 = vpop.permute.xlu0 %1133 }
 0x235   :  { %6617 = vst [vmem:[#allocation88_spill] sm:$0xff] %v4816_v57  ;;  %v4820_v29 = vpop.permute.xlu1 %1147  ;;  %v1558_v57 = vmul.f32 %v4113_v26, %v4008_v2 }
 0x236   :  { %6618 = vst [vmem:[#allocation89_spill] sm:$0xff] %v4820_v29  ;;  %1587 = vrot.lane.b32.xlu0 %v1559_v62, %s3762_s30  ;;  %v1625_v62 = vmul.f32 %v4126_v5, %v3972_v50 }
 0x237   :  { %1579 = vrot.lane.b32.xlu1 %v1555_v33, %s3762_s30 }
 0x238   :  { %v4826_v53 = vpop.permute.xlu0 %1208 }
 0x239   :  { %6619 = vst [vmem:[#allocation90_spill] sm:$0xff] %v4826_v53  ;;  %v4830_v30 = vpop.permute.xlu1 %1151  ;;  %v1560_v53 = vmul.f32 %v4018_v6, %v4113_v26 }
 0x23a   :  { %1571 = vrot.lane.b32.xlu0 %v1551_v31, %s3762_s30 }
 0x23b   :  { %1585 = vrot.lane.b32.xlu1 %v1558_v57, %s3762_s30  ;;  %v1627_v57 = vmul.f32 %v4126_v5, %v3998_v61 }
 0x23c   :  { %v4836_v29 = vpop.permute.xlu0 %1212 }
 0x23d   :  { %6620 = vst [vmem:[#allocation91_spill] sm:$0xff] %v4836_v29  ;;  %v4840_v33 = vpop.permute.xlu1 %1143  ;;  %v1556_v29 = vmul.f32 %v4113_v26, %v3982_v54  ;;  %v1632_v26 = vmul.f32 %v4174_v36, %v4010_v3 }
 0x23e   :  { %6621 = vst [vmem:[#allocation92_spill] sm:$0xff] %v4840_v33  ;;  %1646 = vrot.lane.b32.xlu0 %v1625_v62, %s3763_s12  ;;  %v1630_v62 = vmul.f32 %v4174_v36, %v3984_v55 }
 0x23f   :  { %1589 = vrot.lane.b32.xlu1 %v1560_v53, %s3762_s30 }
 0x240   :  { %v4846_v23 = vpop.permute.xlu0 %1218 }
 0x241   :  { %6622 = vst [vmem:[#allocation93_spill] sm:$0xff] %v4846_v23  ;;  %v4850_v31 = vpop.permute.xlu1 %1210  ;;  %v1626_v23 = vmul.f32 %v4126_v5, %v3996_v60 }
 0x242   :  { %6623 = vst [vmem:[#allocation94_spill] sm:$0xff] %v4850_v31  ;;  %1650 = vrot.lane.b32.xlu0 %v1627_v57, %s3763_s12  ;;  %v1628_v57 = vmul.f32 %v4126_v5, %v4022_v9 }
 0x243   :  { %1581 = vrot.lane.b32.xlu1 %v1556_v29, %s3762_s30  ;;  %s3768_s30 = smov 104  }
 0x244   :  { %v4856_v33 = vpop.permute.xlu0 %1222 }
 0x245   :  { %6624 = vst [vmem:[#allocation95_spill] sm:$0xff] %v4856_v33  ;;  %v4860_v53 = vpop.permute.xlu1 %1214 }
 0x246   :  { %1656 = vrot.lane.b32.xlu0 %v1630_v62, %s3763_s12  ;;  %v1624_v62 = vmul.f32 %v4126_v5, %v3970_v49 }
 0x247   :  { %1648 = vrot.lane.b32.xlu1 %v1626_v23, %s3763_s12 }
 0x248   :  { %v4866_v31 = vpop.permute.xlu0 %1206 }
 0x249   :  { %6625 = vst [vmem:[#allocation96_spill] sm:$0xff] %v4866_v31  ;;  %v4870_v29 = vpop.permute.xlu1 %1220  ;;  %v1631_v31 = vmul.f32 %v4174_v36, %v4008_v2 }
 0x24a   :  { %6626 = vst [vmem:[#allocation97_spill] sm:$0xff] %v4870_v29  ;;  %1660 = vrot.lane.b32.xlu0 %v1632_v26, %s3763_s12  ;;  %v1698_v26 = vmul.f32 %v4139_v20, %v3972_v50 }
 0x24b   :  { %1652 = vrot.lane.b32.xlu1 %v1628_v57, %s3763_s12 }
 0x24c   :  { %v4876_v33 = vpop.permute.xlu0 %1281 }
 0x24d   :  { %6627 = vst [vmem:[#allocation98_spill] sm:$0xff] %v4876_v33  ;;  %v4880_v23 = vpop.permute.xlu1 %1224  ;;  %v1633_v33 = vmul.f32 %v4018_v6, %v4174_v36 }
 0x24e   :  { %1644 = vrot.lane.b32.xlu0 %v1624_v62, %s3763_s12 }
 0x24f   :  { %1658 = vrot.lane.b32.xlu1 %v1631_v31, %s3763_s12  ;;  %v1700_v31 = vmul.f32 %v4139_v20, %v3998_v61 }
 0x250   :  { %v4886_v29 = vpop.permute.xlu0 %1285 }
 0x251   :  { %6628 = vst [vmem:[#allocation99_spill] sm:$0xff] %v4886_v29  ;;  %v4890_v57 = vpop.permute.xlu1 %1216  ;;  %v1629_v29 = vmul.f32 %v4174_v36, %v3982_v54  ;;  %v1705_v36 = vmul.f32 %v4152_v32, %v4010_v3 }
 0x252   :  { %6629 = vst [vmem:[#allocation100_spill] sm:$0xff] %v4890_v57  ;;  %1719 = vrot.lane.b32.xlu0 %v1698_v26, %s3764_s13  ;;  %v1703_v26 = vmul.f32 %v4152_v32, %v3984_v55 }
 0x253   :  { %1662 = vrot.lane.b32.xlu1 %v1633_v33, %s3763_s12 }
 0x254   :  { %v4896_v5 = vpop.permute.xlu0 %1291 }
 0x255   :  { %6630 = vst [vmem:[#allocation101_spill] sm:$0xff] %v4896_v5  ;;  %v4900_v62 = vpop.permute.xlu1 %1283  ;;  %v1699_v5 = vmul.f32 %v4139_v20, %v3996_v60 }
 0x256   :  { %6631 = vst [vmem:[#allocation102_spill] sm:$0xff] %v4900_v62  ;;  %1723 = vrot.lane.b32.xlu0 %v1700_v31, %s3764_s13  ;;  %v1701_v31 = vmul.f32 %v4139_v20, %v4022_v9 }
 0x257   :  { %1654 = vrot.lane.b32.xlu1 %v1629_v29, %s3763_s12 }
 0x258   :  { %v4906_v57 = vpop.permute.xlu0 %1295 }
 0x259   :  { %6632 = vst [vmem:[#allocation103_spill] sm:$0xff] %v4906_v57  ;;  %v4910_v33 = vpop.permute.xlu1 %1287 }
 0x25a   :  { %1729 = vrot.lane.b32.xlu0 %v1703_v26, %s3764_s13  ;;  %v1697_v26 = vmul.f32 %v4139_v20, %v3970_v49 }
 0x25b   :  { %1721 = vrot.lane.b32.xlu1 %v1699_v5, %s3764_s13 }
 0x25c   :  { %v4916_v62 = vpop.permute.xlu0 %1279 }
 0x25d   :  { %6633 = vst [vmem:[#allocation104_spill] sm:$0xff] %v4916_v62  ;;  %v4920_v29 = vpop.permute.xlu1 %1293  ;;  %v1704_v62 = vmul.f32 %v4152_v32, %v4008_v2 }
 0x25e   :  { %6634 = vst [vmem:[#allocation105_spill] sm:$0xff] %v4920_v29  ;;  %1733 = vrot.lane.b32.xlu0 %v1705_v36, %s3764_s13  ;;  %v1771_v36 = vmul.f32 %v4188_v28, %v3972_v50 }
 0x25f   :  { %1725 = vrot.lane.b32.xlu1 %v1701_v31, %s3764_s13 }
 0x260   :  { %v4926_v57 = vpop.permute.xlu0 %1354 }
 0x261   :  { %6635 = vst [vmem:[#allocation106_spill] sm:$0xff] %v4926_v57  ;;  %v4930_v5 = vpop.permute.xlu1 %1297  ;;  %v1706_v57 = vmul.f32 %v4018_v6, %v4152_v32 }
 0x262   :  { %1717 = vrot.lane.b32.xlu0 %v1697_v26, %s3764_s13 }
 0x263   :  { %1731 = vrot.lane.b32.xlu1 %v1704_v62, %s3764_s13  ;;  %v1773_v62 = vmul.f32 %v4188_v28, %v3998_v61 }
 0x264   :  { %v4936_v29 = vpop.permute.xlu0 %1358 }
 0x265   :  { %6636 = vst [vmem:[#allocation107_spill] sm:$0xff] %v4936_v29  ;;  %v4940_v31 = vpop.permute.xlu1 %1289  ;;  %v1702_v29 = vmul.f32 %v4152_v32, %v3982_v54  ;;  %v1778_v32 = vmul.f32 %v4165_v52, %v4010_v3 }
 0x266   :  { %6637 = vst [vmem:[#allocation108_spill] sm:$0xff] %v4940_v31  ;;  %1792 = vrot.lane.b32.xlu0 %v1771_v36, %s3765_s2  ;;  %v1776_v36 = vmul.f32 %v4165_v52, %v3984_v55 }
 0x267   :  { %1735 = vrot.lane.b32.xlu1 %v1706_v57, %s3764_s13 }
 0x268   :  { %v4946_v20 = vpop.permute.xlu0 %1364 }
 0x269   :  { %6638 = vst [vmem:[#allocation109_spill] sm:$0xff] %v4946_v20  ;;  %v4950_v26 = vpop.permute.xlu1 %1356  ;;  %v1772_v20 = vmul.f32 %v4188_v28, %v3996_v60 }
 0x26a   :  { %6639 = vst [vmem:[#allocation110_spill] sm:$0xff] %v4950_v26  ;;  %1796 = vrot.lane.b32.xlu0 %v1773_v62, %s3765_s2  ;;  %v1774_v62 = vmul.f32 %v4188_v28, %v4022_v9 }
 0x26b   :  { %1727 = vrot.lane.b32.xlu1 %v1702_v29, %s3764_s13  ;;  %s3767_s13 = smov 105  }
 0x26c   :  { %v4956_v31 = vpop.permute.xlu0 %1368 }
 0x26d   :  { %6640 = vst [vmem:[#allocation111_spill] sm:$0xff] %v4956_v31  ;;  %v4960_v57 = vpop.permute.xlu1 %1360 }
 0x26e   :  { %1802 = vrot.lane.b32.xlu0 %v1776_v36, %s3765_s2  ;;  %v1770_v36 = vmul.f32 %v4188_v28, %v3970_v49 }
 0x26f   :  { %1794 = vrot.lane.b32.xlu1 %v1772_v20, %s3765_s2 }
 0x270   :  { %v4966_v26 = vpop.permute.xlu0 %1352 }
 0x271   :  { %6641 = vst [vmem:[#allocation112_spill] sm:$0xff] %v4966_v26  ;;  %v4970_v29 = vpop.permute.xlu1 %1366  ;;  %v1777_v26 = vmul.f32 %v4165_v52, %v4008_v2 }
 0x272   :  { %6642 = vst [vmem:[#allocation113_spill] sm:$0xff] %v4970_v29  ;;  %1806 = vrot.lane.b32.xlu0 %v1778_v32, %s3765_s2  ;;  %v1844_v32 = vmul.f32 %v4178_v17, %v3972_v50 }
 0x273   :  { %1798 = vrot.lane.b32.xlu1 %v1774_v62, %s3765_s2 }
 0x274   :  { %v4976_v31 = vpop.permute.xlu0 %1427 }
 0x275   :  { %6643 = vst [vmem:[#allocation114_spill] sm:$0xff] %v4976_v31  ;;  %v4980_v20 = vpop.permute.xlu1 %1370  ;;  %v1779_v31 = vmul.f32 %v4018_v6, %v4165_v52 }
 0x276   :  { %6644 = vst [vmem:[#allocation115_spill] sm:$0xff] %v4980_v20  ;;  %1790 = vrot.lane.b32.xlu0 %v1770_v36, %s3765_s2 }
 0x277   :  { %1804 = vrot.lane.b32.xlu1 %v1777_v26, %s3765_s2  ;;  %v1846_v26 = vmul.f32 %v4178_v17, %v3998_v61 }
 0x278   :  { %v4986_v29 = vpop.permute.xlu0 %1431 }
 0x279   :  { %6645 = vst [vmem:[#allocation116_spill] sm:$0xff] %v4986_v29  ;;  %v4990_v62 = vpop.permute.xlu1 %1362  ;;  %v1775_v29 = vmul.f32 %v4165_v52, %v3982_v54  ;;  %v1851_v52 = vmul.f32 %v4200_v40, %v4010_v3 }
 0x27a   :  { %6646 = vst [vmem:[#allocation117_spill] sm:$0xff] %v4990_v62  ;;  %1865 = vrot.lane.b32.xlu0 %v1844_v32, %s3766_s14  ;;  %v1849_v32 = vmul.f32 %v4200_v40, %v3984_v55 }
 0x27b   :  { %1808 = vrot.lane.b32.xlu1 %v1779_v31, %s3765_s2 }
 0x27c   :  { %v4996_v28 = vpop.permute.xlu0 %1437 }
 0x27d   :  { %6647 = vst [vmem:[#allocation118_spill] sm:$0xff] %v4996_v28  ;;  %v5000_v36 = vpop.permute.xlu1 %1429  ;;  %v1845_v28 = vmul.f32 %v4178_v17, %v3996_v60 }
 0x27e   :  { %6648 = vst [vmem:[#allocation119_spill] sm:$0xff] %v5000_v36  ;;  %1869 = vrot.lane.b32.xlu0 %v1846_v26, %s3766_s14  ;;  %v1847_v26 = vmul.f32 %v4178_v17, %v4022_v9 }
 0x27f   :  { %1800 = vrot.lane.b32.xlu1 %v1775_v29, %s3765_s2 }
 0x280   :  { %v5006_v62 = vpop.permute.xlu0 %1441 }
 0x281   :  { %6649 = vst [vmem:[#allocation120_spill] sm:$0xff] %v5006_v62  ;;  %v5010_v31 = vpop.permute.xlu1 %1433 }
 0x282   :  { %6650 = vst [vmem:[#allocation121_spill] sm:$0xff] %v5010_v31  ;;  %1875 = vrot.lane.b32.xlu0 %v1849_v32, %s3766_s14  ;;  %v2054_v32 = vld [vmem:[%s6374_s3] sm:$0xff]  ;;  %v1852_v31 = vmul.f32 %v4018_v6, %v4200_v40 }
 0x283   :  { %1867 = vrot.lane.b32.xlu1 %v1845_v28, %s3766_s14 }
 0x284   :  { %v5016_v36 = vpop.permute.xlu0 %1425 }
 0x285   :  { %6651 = vst [vmem:[#allocation122_spill] sm:$0xff] %v5016_v36  ;;  %v5020_v29 = vpop.permute.xlu1 %1439  ;;  %v1850_v36 = vmul.f32 %v4200_v40, %v4008_v2 }
 0x286   :  { %6652 = vst [vmem:[#allocation123_spill] sm:$0xff] %v5020_v29  ;;  %1879 = vrot.lane.b32.xlu0 %v1851_v52, %s3766_s14  ;;  %v1843_v52 = vmul.f32 %v4178_v17, %v3970_v49  ;;  %v2055_v17 = vld [vmem:[%s6374_s3 + $0x8] sm:$0xff] }
 0x287   :  { %1871 = vrot.lane.b32.xlu1 %v1847_v26, %s3766_s14 }
 0x288   :  { %v5029_v62 = vpop.permute.xlu0 %1500 }
 0x289   :  { %6653 = vst [vmem:[#allocation124_spill] sm:$0xff] %v5029_v62  ;;  %v5031_v28 = vpop.permute.xlu1 %1443  ;;  %v6657_v62 = vmov 1  }
 0x28a   :  { %6654 = vst [vmem:[#allocation125_spill] sm:$0xff] %v5031_v28  ;;  %2058 = vperm.xlu0 %3571, %v2054_v32  }
 0x28b   :  { %1877 = vrot.lane.b32.xlu1 %v1850_v36, %s3766_s14  ;;  %v1917_v36 = vmul.f32 %v4191_v8, %v3972_v50 }
 0x28c   :  { %v5036_v29 = vpop.permute.xlu0 %1504 }
 0x28d   :  { %6655 = vst [vmem:[#allocation126_spill] sm:$0xff] %v5036_v29  ;;  %v5040_v26 = vpop.permute.xlu1 %1435 }
 0x28e   :  { %6656 = vst [vmem:[#allocation127_spill] sm:$0xff] %v5040_v26  ;;  %1863 = vrot.lane.b32.xlu0 %v1843_v52, %s3766_s14  ;;  %v1848_v26 = vmul.f32 %v4200_v40, %v3982_v54  ;;  %v3604_v40 = vld [vmem:[%s6375_s4 + $0x4] ss:$8 sps:$4 sm:$0xff]  }
 0x28f   :  { %1881 = vrot.lane.b32.xlu1 %v1852_v31, %s3766_s14  ;;  %3572 = vset.pattern.permute.xlu0 %v6657_v62  ;;  %v3599_v31 = vld [vmem:[%s6375_s4 + $0x104] ss:$8 sps:$4 sm:$0xff]  }
 0x290   :  { %v5047_v28 = vpop.permute.xlu0 %1510  ;;  %2577 = vmatprep.subr.bf16.mxu1 %v3599_v31  ;;  %v1918_v31 = vmul.f32 %v4191_v8, %v3996_v60  ;;  %2534 = vmatprep.subr.bf16.mxu0 %v3604_v40 }
 0x291   :  { %6658 = vst [vmem:[#allocation128_spill] sm:$0xff] %v5047_v28  ;;  %v5054_v32 = vpop.permute.xlu1 %1502  ;;  %v1919_v28 = vmul.f32 %v4191_v8, %v3998_v61 }
 0x292   :  { %6659 = vst [vmem:[#allocation129_spill] sm:$0xff] %v5054_v32  ;;  %1938 = vrot.lane.b32.xlu0 %v1917_v36, %s3767_s13  ;;  %v3601_v36 = vld [vmem:[%s6375_s4 + $0x100] ss:$8 sps:$4 sm:$0xff]   ;;  %v3610_v32 = vld [vmem:[%s6375_s4 + $0x14] ss:$8 sps:$4 sm:$0xff]  }
 0x293   :  { %2063 = vperm.xlu1 %3570, %v2055_v17   ;;  %2578 = vmatpush1.bf16.msra.mxu1 %v3601_v36  ;;  %v3607_v36 = vld [vmem:[%s6375_s4 + $0x110] ss:$8 sps:$4 sm:$0xff]  }
 0x294   :  { %v5060_v52 = vpop.permute.xlu0 %1514 }
 0x295   :  { %6660 = vst [vmem:[#allocation130_spill] sm:$0xff] %v5060_v52  ;;  %v5064_v29 = vpop.permute.xlu1 %1506  ;;  %v1922_v52 = vmul.f32 %v4204_v63, %v3984_v55 }
 0x296   :  { %6661 = vst [vmem:[#allocation131_spill] sm:$0xff] %v5064_v29  ;;  %1942 = vrot.lane.b32.xlu0 %v1919_v28, %s3767_s13  ;;  %v3602_v29 = vld [vmem:[%s6375_s4] ss:$8 sps:$4 sm:$0xff]   ;;  %v3605_v28 = vld [vmem:[%s6375_s4 + $0x114] ss:$8 sps:$4 sm:$0xff]  }
 0x297   :  { %1873 = vrot.lane.b32.xlu1 %v1848_v26, %s3766_s14  ;;  %2535 = vmatpush1.bf16.msra.mxu0 %v3602_v29  ;;  %v1920_v29 = vmul.f32 %v4191_v8, %v4022_v9 }
 0x298   :  { %v5073_v17 = vpop.permute.xlu0 %1498  ;;  %3573 = vset.pattern.permute.xlu1 %v6657_v62  ;;  %v1924_v62 = vmul.f32 %v4204_v63, %v4010_v3  ;;  %2579 = vmatprep.subr.bf16.mxu1 %v3605_v28  ;;  %v3613_v28 = vld [vmem:[%s6375_s4 + $0x120] ss:$8 sps:$4 sm:$0xff]  }
 0x299   :  { %6662 = vst [vmem:[#allocation132_spill] sm:$0xff] %v5073_v17  ;;  %v5087_v26 = vpop.permute.xlu1 %1512  ;;  %2580 = vmatpush1.bf16.msra.mxu1 %v3607_v36  ;;  %2536 = vmatprep.subr.bf16.mxu0 %v3610_v32  ;;  %v3614_v36 = vld [vmem:[%s6375_s4 + $0x20] ss:$8 sps:$4 sm:$0xff]   ;;  %v3617_v32 = vld [vmem:[%s6375_s4 + $0x134] ss:$8 sps:$4 sm:$0xff]  }
 0x29a   :  { %6663 = vst [vmem:[#allocation133_spill] sm:$0xff] %v5087_v26  ;;  %1948 = vrot.lane.b32.xlu0 %v1922_v52, %s3767_s13  ;;  %v3608_v26 = vld [vmem:[%s6375_s4 + $0x10] ss:$8 sps:$4 sm:$0xff]   ;;  %v3611_v52 = vld [vmem:[%s6375_s4 + $0x124] ss:$8 sps:$4 sm:$0xff]  }
 0x29b   :  { %1940 = vrot.lane.b32.xlu1 %v1918_v31, %s3767_s13  ;;  %2537 = vmatpush1.bf16.msra.mxu0 %v3608_v26  ;;  %v1923_v26 = vmul.f32 %v4204_v63, %v4008_v2 }
 0x29c   :  { %v5096_v17 = vpop.permute.xlu0 %1573  ;;  %2581 = vmatprep.subr.bf16.mxu1 %v3611_v52 }
 0x29d   :  { %6664 = vst [vmem:[#allocation134_spill] sm:$0xff] %v5096_v17  ;;  %v5109_v40 = vpop.permute.xlu1 %1516  ;;  %v1916_v17 = vmul.f32 %v4191_v8, %v3970_v49  ;;  %2582 = vmatpush1.bf16.msra.mxu1 %v3613_v28  ;;  %v3619_v8 = vld [vmem:[%s6375_s4 + $0x130] ss:$8 sps:$4 sm:$0xff]  }
 0x29e   :  { %6665 = vst [vmem:[#allocation135_spill] sm:$0xff] %v5109_v40  ;;  %1952 = vrot.lane.b32.xlu0 %v1924_v62, %s3767_s13  ;;  %v3616_v40 = vld [vmem:[%s6375_s4 + $0x24] ss:$8 sps:$4 sm:$0xff]   ;;  %2583 = vmatprep.subr.bf16.mxu1 %v3617_v32  ;;  %v3620_v28 = vld [vmem:[%s6375_s4 + $0x30] ss:$8 sps:$4 sm:$0xff]  }
 0x29f   :  { %1944 = vrot.lane.b32.xlu1 %v1920_v29, %s3767_s13  ;;  %2538 = vmatprep.subr.bf16.mxu0 %v3616_v40  ;;  %v1990_v29 = vmul.f32 %v4214_v47, %v3972_v50  ;;  %v3623_v40 = vld [vmem:[%s6375_s4 + $0x144] ss:$8 sps:$4 sm:$0xff]   ;;  %v3625_v32 = vld [vmem:[%s6375_s4 + $0x140] ss:$8 sps:$4 sm:$0xff]  }
 0x2a0   :  { %v5118_v31 = vpop.permute.xlu0 %1577  ;;  %2539 = vmatpush1.bf16.msra.mxu0 %v3614_v36 }
 0x2a1   :  { %6666 = vst [vmem:[#allocation136_spill] sm:$0xff] %v5118_v31  ;;  %v5131_v62 = vpop.permute.xlu1 %1508  ;;  %2584 = vmatpush1.bf16.msra.mxu1 %v3619_v8  ;;  %v1992_v31 = vmul.f32 %v4214_v47, %v3998_v61  ;;  %v3626_v8 = vld [vmem:[%s6375_s4 + $0x40] ss:$8 sps:$4 sm:$0xff]  }
 0x2a2   :  { %6667 = vst [vmem:[#allocation137_spill] sm:$0xff] %v5131_v62  ;;  %1936 = vrot.lane.b32.xlu0 %v1916_v17, %s3767_s13  ;;  %v3622_v17 = vld [vmem:[%s6375_s4 + $0x34] ss:$8 sps:$4 sm:$0xff]   ;;  %2585 = vmatprep.subr.bf16.mxu1 %v3623_v40  ;;  %v3631_v40 = vld [vmem:[%s6375_s4 + $0x150] ss:$8 sps:$4 sm:$0xff]  }
 0x2a3   :  { %1950 = vrot.lane.b32.xlu1 %v1923_v26, %s3767_s13  ;;  %v1925_v26 = vmul.f32 %v4018_v6, %v4204_v63  ;;  %2540 = vmatprep.subr.bf16.mxu0 %v3622_v17  ;;  %v6707_v62 = vld [vmem:[#allocation5_spill] sm:$0xff] }
 0x2a4   :  { %v5140_v52 = vpop.permute.xlu0 %1583  ;;  %2541 = vmatpush1.bf16.msra.mxu0 %v3620_v28  ;;  %v1921_v28 = vmul.f32 %v4204_v63, %v3982_v54  ;;  %v3632_v63 = vld [vmem:[%s6375_s4 + $0x50] ss:$8 sps:$4 sm:$0xff]  }
 0x2a5   :  { %6668 = vst [vmem:[#allocation138_spill] sm:$0xff] %v5140_v52  ;;  %v5153_v36 = vpop.permute.xlu1 %1575  ;;  %2586 = vmatpush1.bf16.msra.mxu1 %v3625_v32  ;;  %v3634_v32 = vld [vmem:[%s6375_s4 + $0x54] ss:$8 sps:$4 sm:$0xff]  }
 0x2a6   :  { %6669 = vst [vmem:[#allocation139_spill] sm:$0xff] %v5153_v36  ;;  %2011 = vrot.lane.b32.xlu0 %v1990_v29, %s3768_s30  ;;  %v3628_v36 = vld [vmem:[%s6375_s4 + $0x44] ss:$8 sps:$4 sm:$0xff]   ;;  %v3629_v29 = vld [vmem:[%s6375_s4 + $0x154] ss:$8 sps:$4 sm:$0xff]  }
 0x2a7   :  { %1954 = vrot.lane.b32.xlu1 %v1925_v26, %s3767_s13  ;;  %2542 = vmatprep.subr.bf16.mxu0 %v3628_v36 }
 0x2a8   :  { %v5162_v52 = vpop.permute.xlu0 %1587  ;;  %2543 = vmatpush1.bf16.msra.mxu0 %v3626_v8  ;;  %2587 = vmatprep.subr.bf16.mxu1 %v3629_v29  ;;  %v1991_v8 = vmul.f32 %v4214_v47, %v3996_v60  ;;  %v3637_v29 = vld [vmem:[%s6375_s4 + $0x160] ss:$8 sps:$4 sm:$0xff]  }
 0x2a9   :  { %6670 = vst [vmem:[#allocation140_spill] sm:$0xff] %v5162_v52  ;;  %v5175_v17 = vpop.permute.xlu1 %1579  ;;  %v1995_v52 = vmul.f32 %v4217_v34, %v3984_v55  ;;  %2588 = vmatpush1.bf16.msra.mxu1 %v3631_v40  ;;  %2544 = vmatprep.subr.bf16.mxu0 %v3634_v32  ;;  %v1993_v40 = vmul.f32 %v4214_v47, %v4022_v9 }
 0x2aa   :  { %6671 = vst [vmem:[#allocation141_spill] sm:$0xff] %v5175_v17  ;;  %2015 = vrot.lane.b32.xlu0 %v1992_v31, %s3768_s30  ;;  %v3635_v31 = vld [vmem:[%s6375_s4 + $0x164] ss:$8 sps:$4 sm:$0xff]  }
 0x2ab   :  { %1946 = vrot.lane.b32.xlu1 %v1921_v28, %s3767_s13  ;;  %2589 = vmatprep.subr.bf16.mxu1 %v3635_v31  ;;  %v1996_v31 = vmul.f32 %v4217_v34, %v4008_v2 }
 0x2ac   :  { %v5184_v26 = vpop.permute.xlu0 %1571  ;;  %2545 = vmatpush1.bf16.msra.mxu0 %v3632_v63  ;;  %v1989_v63 = vmul.f32 %v4214_v47, %v3970_v49  ;;  %v3638_v47 = vld [vmem:[%s6375_s4 + $0x60] ss:$8 sps:$4 sm:$0xff]  }
 0x2ad   :  { %6672 = vst [vmem:[#allocation142_spill] sm:$0xff] %v5184_v26  ;;  %v5197_v36 = vpop.permute.xlu1 %1585  ;;  %v1997_v26 = vmul.f32 %v4217_v34, %v4010_v3  ;;  %2590 = vmatpush1.bf16.msra.mxu1 %v3637_v29  ;;  %v3640_v29 = vld [vmem:[%s6375_s4 + $0x64] ss:$8 sps:$4 sm:$0xff]  }
 0x2ae   :  { %6673 = vst [vmem:[#allocation143_spill] sm:$0xff] %v5197_v36  ;;  %2021 = vrot.lane.b32.xlu0 %v1995_v52, %s3768_s30  ;;  %2546 = vmatprep.subr.bf16.mxu0 %v3640_v29 }
 0x2af   :  { %2013 = vrot.lane.b32.xlu1 %v1991_v8, %s3768_s30 }
 0x2b0   :  { %v5206_v28 = vpop.permute.xlu0 %1646  ;;  %2547 = vmatpush1.bf16.msra.mxu0 %v3638_v47 }
 0x2b1   :  { %6674 = vst [vmem:[#allocation144_spill] sm:$0xff] %v5206_v28  ;;  %v5210_v36 = vpop.permute.xlu1 %1589 }
 0x2b2   :  { %6675 = vst [vmem:[#allocation145_spill] sm:$0xff] %v5210_v36  ;;  %2025 = vrot.lane.b32.xlu0 %v1997_v26, %s3768_s30  ;;  %v1998_v26 = vmul.f32 %v4018_v6, %v4217_v34  ;;  %v3646_v6 = vld [vmem:[%s6375_s4 + $0x74] ss:$8 sps:$4 sm:$0xff]  }
 0x2b3   :  { %2017 = vrot.lane.b32.xlu1 %v1993_v40, %s3768_s30  ;;  %v3641_v40 = vld [vmem:[%s6375_s4 + $0x174] ss:$8 sps:$4 sm:$0xff]   ;;  %2548 = vmatprep.subr.bf16.mxu0 %v3646_v6  ;;  %v3659_v6 = vld [vmem:[%s6375_s4 + $0x1a4] ss:$8 sps:$4 sm:$0xff]  }
 0x2b4   :  { %v5216_v52 = vpop.permute.xlu0 %1650  ;;  %2591 = vmatprep.subr.bf16.mxu1 %v3641_v40  ;;  %v3650_v40 = vld [vmem:[%s6375_s4 + $0x80] ss:$8 sps:$4 sm:$0xff]  }
 0x2b5   :  { %6676 = vst [vmem:[#allocation146_spill] sm:$0xff] %v5216_v52  ;;  %v5220_v32 = vpop.permute.xlu1 %1581  ;;  %v3644_v52 = vld [vmem:[%s6375_s4 + $0x70] ss:$8 sps:$4 sm:$0xff]  }
 0x2b6   :  { %6677 = vst [vmem:[#allocation147_spill] sm:$0xff] %v5220_v32  ;;  %2009 = vrot.lane.b32.xlu0 %v1989_v63, %s3768_s30  ;;  %v3643_v63 = vld [vmem:[%s6375_s4 + $0x170] ss:$8 sps:$4 sm:$0xff]   ;;  %2549 = vmatpush1.bf16.msra.mxu0 %v3644_v52  ;;  %v3658_v52 = vld [vmem:[%s6375_s4 + $0x94] ss:$8 sps:$4 sm:$0xff]  }
 0x2b7   :  { %2023 = vrot.lane.b32.xlu1 %v1996_v31, %s3768_s30  ;;  %v3647_v31 = vld [vmem:[%s6375_s4 + $0x184] ss:$8 sps:$4 sm:$0xff]   ;;  %2592 = vmatpush1.bf16.msra.mxu1 %v3643_v63  ;;  %v3655_v63 = vld [vmem:[%s6375_s4 + $0x190] ss:$8 sps:$4 sm:$0xff]  }
 0x2b8   :  { %v5226_v9 = vpop.permute.xlu0 %1656  ;;  %2593 = vmatprep.subr.bf16.mxu1 %v3647_v31 }
 0x2b9   :  { %6678 = vst [vmem:[#allocation148_spill] sm:$0xff] %v5226_v9  ;;  %v5228_v8 = vpop.permute.xlu1 %1648 }
 0x2ba   :  { %6679 = vst [vmem:[#allocation149_spill] sm:$0xff] %v5228_v8  ;;  %v1994_v8 = vmul.f32 %v4217_v34, %v3982_v54  ;;  %v3652_v34 = vld [vmem:[%s6375_s4 + $0x84] ss:$8 sps:$4 sm:$0xff]  }
 0x2bb   :  { %2027 = vrot.lane.b32.xlu1 %v1998_v26, %s3768_s30  ;;  %v3649_v26 = vld [vmem:[%s6375_s4 + $0x180] ss:$8 sps:$4 sm:$0xff]   ;;  %2550 = vmatprep.subr.bf16.mxu0 %v3652_v34 }
 0x2bc   :  { %v5251_v9 = vpop.permute.xlu0 %1660  ;;  %2594 = vmatpush1.bf16.msra.mxu1 %v3649_v26  ;;  %2551 = vmatpush1.bf16.msra.mxu0 %v3650_v40  ;;  %v3656_v26 = vld [vmem:[%s6375_s4 + $0x90] ss:$8 sps:$4 sm:$0xff]   ;;  %v3661_v34 = vld [vmem:[%s6375_s4 + $0x1a0] ss:$8 sps:$4 sm:$0xff]  }
 0x2bd   :  { %6680 = vst [vmem:[#allocation150_spill] sm:$0xff] %v5251_v9  ;;  %v5256_v28 = vpop.permute.xlu1 %1652  ;;  %2552 = vmatprep.subr.bf16.mxu0 %v3658_v52  ;;  %v3662_v40 = vld [vmem:[%s6375_s4 + $0xa0] ss:$8 sps:$4 sm:$0xff]  }
 0x2be   :  { %6681 = vst [vmem:[#allocation151_spill] sm:$0xff] %v5256_v28  ;;  %v570_v28 = vsel %vm569_vm4, %v4266_v14, %v4306_v39  ;;  %v5414_v14 = vmul.f32 %v4226_v37, %v4008_v2  ;;  %v3691_v2 = vld [vmem:[%s6375_s4 + $0x1f0] ss:$8 sps:$4 sm:$0xff]  }
 0x2bf   :  { %2019 = vrot.lane.b32.xlu1 %v1994_v8, %s3768_s30  ;;  %v3653_v8 = vld [vmem:[%s6375_s4 + $0x194] ss:$8 sps:$4 sm:$0xff]  }
 0x2c0   :  { %v5264_v47 = vpop.permute.xlu0 %1644  ;;  %2595 = vmatprep.subr.bf16.mxu1 %v3653_v8  ;;  %2553 = vmatpush1.bf16.msra.mxu0 %v3656_v26  ;;  %v3670_v26 = vld [vmem:[%s6375_s4 + $0xb4] ss:$8 sps:$4 sm:$0xff]  }
 0x2c1   :  { %6682 = vst [vmem:[#allocation152_spill] sm:$0xff] %v5264_v47  ;;  %v5266_v29 = vpop.permute.xlu1 %1658  ;;  %2596 = vmatpush1.bf16.msra.mxu1 %v3655_v63  ;;  %v3665_v63 = vld [vmem:[%s6375_s4 + $0x1b4] ss:$8 sps:$4 sm:$0xff]  }
 0x2c2   :  { %6683 = vst [vmem:[#allocation153_spill] sm:$0xff] %v5266_v29  ;;  %2597 = vmatprep.subr.bf16.mxu1 %v3659_v6  ;;  %v3667_v6 = vld [vmem:[%s6375_s4 + $0x1b0] ss:$8 sps:$4 sm:$0xff]   ;;  %v352_v29 = vsel %vm350_vm1, %v4240_v35, %v4300_v38 }
 0x2c4   :  { %v5286_v31 = vpop.permute.xlu0 %1719 }
 0x2c5   :  { %6684 = vst [vmem:[#allocation154_spill] sm:$0xff] %v5286_v31  ;;  %v5291_v9 = vpop.permute.xlu1 %1662  ;;  %v3664_v31 = vld [vmem:[%s6375_s4 + $0xa4] ss:$8 sps:$4 sm:$0xff]   ;;  %2598 = vmatpush1.bf16.msra.mxu1 %v3661_v34  ;;  %v3668_v34 = vld [vmem:[%s6375_s4 + $0xb0] ss:$8 sps:$4 sm:$0xff]  }
 0x2c6   :  { %6685 = vst [vmem:[#allocation155_spill] sm:$0xff] %v5291_v9  ;;  %2554 = vmatprep.subr.bf16.mxu0 %v3664_v31  ;;  %2599 = vmatprep.subr.bf16.mxu1 %v3665_v63  ;;  %v3673_v31 = vld [vmem:[%s6375_s4 + $0x1c0] ss:$8 sps:$4 sm:$0xff]   ;;  %v3676_v63 = vld [vmem:[%s6375_s4 + $0xc4] ss:$8 sps:$4 sm:$0xff]  }
 0x2c7   :  { %2555 = vmatpush1.bf16.msra.mxu0 %v3662_v40  ;;  %v3677_v40 = vld [vmem:[%s6375_s4 + $0x1d4] ss:$8 sps:$4 sm:$0xff]  }
 0x2c8   :  { %v5296_v8 = vpop.permute.xlu0 %1723  ;;  %2556 = vmatprep.subr.bf16.mxu0 %v3670_v26  ;;  %v351_v26 = vsel %vm350_vm1, %v4236_v24, %v4240_v35  ;;  %v294_v24 = vmul.f32 %v4230_v59, %v3970_v49  ;;  %v3680_v49 = vld [vmem:[%s6375_s4 + $0xd0] ss:$8 sps:$4 sm:$0xff]   ;;  %v3685_v35 = vld [vmem:[%s6375_s4 + $0x1e0] ss:$8 sps:$4 sm:$0xff]  }
 0x2c9   :  { %6686 = vst [vmem:[#allocation156_spill] sm:$0xff] %v5296_v8  ;;  %v5307_v52 = vpop.permute.xlu1 %1654  ;;  %v3671_v8 = vld [vmem:[%s6375_s4 + $0x1c4] ss:$8 sps:$4 sm:$0xff]   ;;  %2600 = vmatpush1.bf16.msra.mxu1 %v3667_v6  ;;  %v3674_v6 = vld [vmem:[%s6375_s4 + $0xc0] ss:$8 sps:$4 sm:$0xff]  }
 0x2ca   :  { %6687 = vst [vmem:[#allocation157_spill] sm:$0xff] %v5307_v52  ;;  %2601 = vmatprep.subr.bf16.mxu1 %v3671_v8  ;;  %v3679_v8 = vld [vmem:[%s6375_s4 + $0x1d0] ss:$8 sps:$4 sm:$0xff]  }
 0x2cb   :  { %2557 = vmatpush1.bf16.msra.mxu0 %v3668_v34  ;;  %v3682_v34 = vld [vmem:[%s6375_s4 + $0xd4] ss:$8 sps:$4 sm:$0xff]  }
 0x2cc   :  { %v5318_v9 = vpop.permute.xlu0 %1729  ;;  %2558 = vmatprep.subr.bf16.mxu0 %v3676_v63  ;;  %v424_v63 = vsel %vm423_vm2, %v4246_v56, %v4286_v0  ;;  %v295_v56 = vmul.f32 %v4230_v59, %v3972_v50  ;;  %v425_v50 = vsel %vm423_vm2, %v4286_v0, %v4310_v7 }
 0x2cd   :  { %6688 = vst [vmem:[#allocation158_spill] sm:$0xff] %v5318_v9  ;;  %v5323_v52 = vpop.permute.xlu1 %1721  ;;  %2602 = vmatpush1.bf16.msra.mxu1 %v3673_v31  ;;  %v3683_v31 = vld [vmem:[%s6375_s4 + $0x1e4] ss:$8 sps:$4 sm:$0xff]  }
 0x2ce   :  { %6689 = vst [vmem:[#allocation159_spill] sm:$0xff] %v5323_v52  ;;  %2603 = vmatprep.subr.bf16.mxu1 %v3677_v40  ;;  %v497_v40 = vsel %vm496_vm3, %v4256_v15, %v4296_v42 }
 0x2cf   :  { %2559 = vmatpush1.bf16.msra.mxu0 %v3674_v6  ;;  %v3688_v6 = vld [vmem:[%s6375_s4 + $0xe4] ss:$8 sps:$4 sm:$0xff]  }
 0x2d0   :  { %v5334_v9 = vpop.permute.xlu0 %1733  ;;  %2560 = vmatprep.subr.bf16.mxu0 %v3682_v34  ;;  %v3689_v34 = vld [vmem:[%s6375_s4 + $0x1f4] ss:$8 sps:$4 sm:$0xff]  }
 0x2d1   :  { %6690 = vst [vmem:[#allocation160_spill] sm:$0xff] %v5334_v9  ;;  %v5342_v52 = vpop.permute.xlu1 %1725  ;;  %v5353_v9 = vld [vmem:[%s6376_s5 + $0x8] sm:$0xff]  ;;  %2604 = vmatpush1.bf16.msra.mxu1 %v3679_v8  ;;  %v298_v8 = vmul.f32 %v4226_v37, %v3982_v54  ;;  %v498_v54 = vsel %vm496_vm3, %v4296_v42, %v4320_v16  ;;  %v5425_v42 = vmul.f32 %v4226_v37, %v4010_v3 }
 0x2d2   :  { %6691 = vst [vmem:[#allocation161_spill] sm:$0xff] %v5342_v52  ;;  %2637 = vperm.xlu1 %3573, %v5353_v9   ;;  %v367_v52 = vadd.f32 %v351_v26, %v294_v24  ;;  %v5388_v24 = vld [vmem:[%s6376_s5] sm:$0xff]  ;;  %2605 = vmatprep.subr.bf16.mxu1 %v3683_v31  ;;  %v6695_v31 = vld [vmem:[#allocation10_spill] sm:$0xff]  ;;  %v6700_v3 = vld [vmem:[#allocation4_spill] sm:$0xff] }
 0x2d3   :  { %2633 = vperm.xlu0 %3572, %v5388_v24   ;;  %2561 = vmatpush1.bf16.msra.mxu0 %v3680_v49  ;;  %v3694_v49 = vld [vmem:[%s6375_s4 + $0xf4] ss:$8 sps:$4 sm:$0xff]  }
 0x2d4   :  { %v5367_v47 = vpop.permute.xlu0 %1717  ;;  %v440_v15 = vadd.f32 %v424_v63, %v367_v52  ;;  %v299_v52 = vmul.f32 %v4226_v37, %v3984_v55  ;;  %v6696_v63 = vld [vmem:[#allocation3_spill] sm:$0xff]  ;;  %2562 = vmatprep.subr.bf16.mxu0 %v3688_v6  ;;  %v6702_v6 = vld [vmem:[#allocation9_spill] sm:$0xff] }
 0x2d5   :  { %6692 = vst [vmem:[#allocation162_spill] sm:$0xff] %v5367_v47  ;;  %v5377_v26 = vpop.permute.xlu1 %1731  ;;  %v368_v47 = vadd.f32 %v352_v29, %v295_v56  ;;  %v355_v29 = vsel %vm350_vm1, %v6696_v63, %v6695_v31  ;;  %v3686_v55 = vld [vmem:[%s6375_s4 + $0xe0] ss:$8 sps:$4 sm:$0xff]   ;;  %2606 = vmatpush1.bf16.msra.mxu1 %v3685_v35 }
 0x2d6   :  { %6693 = vst [vmem:[#allocation163_spill] sm:$0xff] %v5377_v26  ;;  %v6694_v26 = vmov 2   ;;  %v513_v0 = vadd.f32 %v497_v40, %v440_v15  ;;  %v296_v15 = vmul.f32 %v4230_v59, %v3996_v60  ;;  %v571_v60 = vsel %vm569_vm4, %v4306_v39, %v4330_v19  ;;  %2607 = vmatprep.subr.bf16.mxu1 %v3689_v34  ;;  %v6705_v39 = vld [vmem:[#allocation12_spill] sm:$0xff] }
 0x2d7   :  { %3574 = vset.pattern.permute.xlu1 %v6694_v26  ;;  %v441_v40 = vadd.f32 %v425_v50, %v368_v47  ;;  %v6699_v50 = vld [vmem:[#allocation11_spill] sm:$0xff]  ;;  %v371_v17 = vadd.f32 %v355_v29, %v298_v8  ;;  %3575 = vset.pattern.permute.xlu0 %v6694_v26  ;;  %v3692_v8 = vld [vmem:[%s6375_s4 + $0xf0] ss:$8 sps:$4 sm:$0xff]   ;;  %s6878_s4 = smov 115  }
 0x2d8   :  { %2663 = vperm.xlu1 %3574, %v5388_v24   ;;  %v5416_v56 = vpop.permute.xlu0 %1792  ;;  %v586_v47 = vadd.f32 %v570_v28, %v513_v0  ;;  %v428_v37 = vsel %vm423_vm2, %v6700_v3, %v6699_v50  ;;  %v6704_v28 = vmov 3   ;;  %v644_v0 = vsel %vm642_vm5, %v6702_v6, %v6705_v39  ;;  %v6706_v3 = vld [vmem:[#allocation13_spill] sm:$0xff]  ;;  %2563 = vmatpush1.bf16.msra.mxu0 %v3686_v55 }
 0x2d9   :  { %6697 = vst [vmem:[#allocation10_spill] sm:$0xff] %v5416_v56  ;;  %v5427_v63 = vpop.permute.xlu1 %1735  ;;  %v6703_v56 = vld [vmem:[#allocation6_spill] sm:$0xff]  ;;  %v514_v36 = vadd.f32 %v498_v54, %v441_v40  ;;  %v501_v20 = vsel %vm496_vm3, %v6707_v62, %v6706_v3  ;;  %v429_v34 = vsel %vm423_vm2, %v6699_v50, %v4360_v18  ;;  %v444_v54 = vadd.f32 %v428_v37, %v371_v17  ;;  %v6709_v62 = vld [vmem:[#allocation15_spill] sm:$0xff] }
 0x2da   :  { %6698 = vst [vmem:[#allocation3_spill] sm:$0xff] %v5427_v63  ;;  %v6701_v63 = vld [vmem:[#allocation14_spill] sm:$0xff]  ;;  %v643_v32 = vsel %vm642_vm5, %v6703_v56, %v6702_v6  ;;  %2608 = vmatpush1.bf16.msra.mxu1 %v3691_v2  ;;  %2564 = vmatprep.subr.bf16.mxu0 %v3694_v49  ;;  %v6710_v40 = vld [vmem:[#allocation7_spill] sm:$0xff]  ;;  %v6711_v6 = vld [vmem:[#allocation17_spill] sm:$0xff]  ;;  %v297_v17 = vmul.f32 %v4230_v59, %v3998_v61 }
 0x2db   :  { %v356_v35 = vsel %vm350_vm1, %v6695_v31, %v6701_v63  ;;  %v587_v26 = vadd.f32 %v571_v60, %v514_v36  ;;  %v574_v50 = vsel %vm569_vm4, %v6710_v40, %v6709_v62  ;;  %v502_v55 = vsel %vm496_vm3, %v6706_v3, %v6711_v6  ;;  %2667 = vperm.xlu0 %3575, %v5353_v9   ;;  %v6713_v37 = vld [vmem:[#allocation19_spill] sm:$0xff]  ;;  %v6719_v40 = vld [vmem:[#allocation26_spill] sm:$0xff] }
 0x2dc   :  { %3576 = vset.pattern.permute.xlu1 %v6704_v28  ;;  %v5458_v31 = vpop.permute.xlu0 %1796  ;;  %v372_v29 = vadd.f32 %v356_v35, %v299_v52  ;;  %v6712_v28 = vld [vmem:[#allocation18_spill] sm:$0xff]  ;;  %v5478_v36 = vadd.f32 %v643_v32, %v586_v47  ;;  %v517_v2 = vadd.f32 %v501_v20, %v444_v54  ;;  %v575_v60 = vsel %vm569_vm4, %v6709_v62, %v4380_v43  ;;  %v6714_v32 = vld [vmem:[#allocation24_spill] sm:$0xff] }
 0x2dd   :  { %6708 = vst [vmem:[#allocation11_spill] sm:$0xff] %v5458_v31  ;;  %2693 = vperm.xlu1 %3576, %v5388_v24   ;;  %v5464_v56 = vpop.permute.xlu1 %1727  ;;  %v353_v31 = vsel %vm350_vm1, %v4300_v38, %v6712_v28  ;;  %v5480_v52 = vadd.f32 %v644_v0, %v587_v26  ;;  %v426_v35 = vsel %vm423_vm2, %v4310_v7, %v6713_v37  ;;  %v6715_v7 = vld [vmem:[#allocation16_spill] sm:$0xff] }
 0x2de   :  { %v445_v49 = vadd.f32 %v429_v34, %v372_v29  ;;  %v357_v61 = vsel %vm350_vm1, %v6701_v63, %v4426_v13  ;;  %2565 = vmatpush1.bf16.msra.mxu0 %v3692_v8  ;;  %v590_v59 = vadd.f32 %v574_v50, %v517_v2  ;;  %v369_v20 = vadd.f32 %v353_v31, %v296_v15  ;;  %v6716_v34 = vld [vmem:[#allocation8_spill] sm:$0xff]  ;;  %v6717_v63 = vld [vmem:[#allocation21_spill] sm:$0xff] }
 0x2df   :  { %v358_v47 = vsel %vm350_vm1, %v4426_v13, %v6714_v32  ;;  %v647_v26 = vsel %vm642_vm5, %v6716_v34, %v6715_v7  ;;  %v499_v8 = vsel %vm496_vm3, %v4320_v16, %v6717_v63  ;;  %v430_v15 = vsel %vm423_vm2, %v4360_v18, %v4436_v21  ;;  %v6720_v16 = vld [vmem:[#allocation23_spill] sm:$0xff]  ;;  %v6722_v2 = vld [vmem:[#allocation33_spill] sm:$0xff] }
 0x2e0   :  { %v518_v38 = vadd.f32 %v502_v55, %v445_v49  ;;  %v5495_v0 = vpop.permute.xlu0 %1802  ;;  %v354_v13 = vsel %vm350_vm1, %v6712_v28, %v4460_v12  ;;  %v6718_v31 = vmov 4   ;;  %v442_v29 = vadd.f32 %v426_v35, %v369_v20  ;;  %v6721_v12 = vld [vmem:[#allocation29_spill] sm:$0xff]  ;;  %v6725_v20 = vld [vmem:[#allocation31_spill] sm:$0xff] }
 0x2e1   :  { %2697 = vperm.xlu1 %3576, %v5353_v9   ;;  %v5497_v3 = vpop.permute.xlu1 %1794  ;;  %3577 = vset.pattern.permute.xlu0 %v6718_v31  ;;  %v373_v62 = vadd.f32 %v357_v61, %v5414_v14  ;;  %v431_v50 = vsel %vm423_vm2, %v4436_v21, %v6719_v40  ;;  %v572_v18 = vsel %vm569_vm4, %v4330_v19, %v6720_v16 }
 0x2e2   :  { %v591_v54 = vadd.f32 %v575_v60, %v518_v38  ;;  %2723 = vperm.xlu0 %3577, %v5388_v24   ;;  %v374_v55 = vadd.f32 %v358_v47, %v5425_v42  ;;  %v503_v28 = vsel %vm496_vm3, %v6711_v6, %v6721_v12  ;;  %v427_v14 = vsel %vm423_vm2, %v6713_v37, %v6722_v2  ;;  %v6723_v60 = vld [vmem:[#allocation27_spill] sm:$0xff]  ;;  %v6724_v42 = vld [vmem:[#allocation20_spill] sm:$0xff] }
 0x2e3   :  { %v515_v21 = vadd.f32 %v499_v8, %v442_v29  ;;  %v446_v49 = vadd.f32 %v430_v15, %v373_v62  ;;  %v504_v35 = vsel %vm496_vm3, %v6721_v12, %v6723_v60  ;;  %v370_v61 = vadd.f32 %v354_v13, %v297_v17  ;;  %v6726_v17 = vld [vmem:[#allocation28_spill] sm:$0xff]  ;;  %v6732_v12 = vld [vmem:[#allocation22_spill] sm:$0xff] }
 0x2e4   :  { %v648_v6 = vsel %vm642_vm5, %v6715_v7, %v6724_v42  ;;  %v447_v38 = vadd.f32 %v431_v50, %v374_v55  ;;  %v576_v37 = vsel %vm569_vm4, %v4380_v43, %v6725_v20  ;;  %v500_v32 = vsel %vm496_vm3, %v6717_v63, %v4480_v46  ;;  %v5546_v13 = vpop.permute.xlu0 %1806  ;;  %v6728_v7 = vld [vmem:[#allocation25_spill] sm:$0xff]  ;;  %v6729_v62 = vld [vmem:[#allocation32_spill] sm:$0xff]  ;;  %v6734_v60 = vld [vmem:[#allocation38_spill] sm:$0xff] }
 0x2e5   :  { %3578 = vset.pattern.permute.xlu1 %v6718_v31  ;;  %v5531_v19 = vpop.permute.xlu1 %1798  ;;  %v588_v47 = vadd.f32 %v572_v18, %v515_v21  ;;  %v519_v34 = vadd.f32 %v503_v28, %v446_v49  ;;  %v577_v8 = vsel %vm569_vm4, %v6725_v20, %v6726_v17  ;;  %v443_v15 = vadd.f32 %v427_v14, %v370_v61  ;;  %v6730_v63 = vld [vmem:[#allocation36_spill] sm:$0xff]  ;;  %v6731_v18 = vld [vmem:[#allocation30_spill] sm:$0xff]  ;;  %v6738_v17 = vld [vmem:[#allocation41_spill] sm:$0xff] }
 0x2e6   :  { %2727 = vperm.xlu1 %3578, %v5353_v9   ;;  %v6727_v31 = vmov 5   ;;  %v645_v29 = vsel %vm642_vm5, %v6705_v39, %v6728_v7  ;;  %v520_v43 = vadd.f32 %v504_v35, %v447_v38  ;;  %v649_v46 = vsel %vm642_vm5, %v6724_v42, %v6729_v62  ;;  %v6733_v28 = vld [vmem:[#allocation34_spill] sm:$0xff]  ;;  %v6735_v38 = vld [vmem:[#allocation35_spill] sm:$0xff] }
 0x2e7   :  { %3580 = vset.pattern.permute.xlu0 %v6727_v31  ;;  %v573_v40 = vsel %vm569_vm4, %v6720_v16, %v6730_v63  ;;  %v592_v50 = vadd.f32 %v576_v37, %v519_v34  ;;  %v650_v55 = vsel %vm642_vm5, %v6729_v62, %v6731_v18  ;;  %v717_v39 = vsel %vm715_vm6, %v6733_v28, %v6732_v12  ;;  %v6743_v63 = vld [vmem:[#allocation42_spill] sm:$0xff] }
 0x2e8   :  { %2757 = vperm.xlu0 %3580, %v5353_v9   ;;  %v516_v2 = vadd.f32 %v500_v32, %v443_v15  ;;  %v663_v14 = vadd.f32 %v647_v26, %v590_v59  ;;  %v664_v21 = vadd.f32 %v648_v6, %v591_v54  ;;  %v593_v49 = vadd.f32 %v577_v8, %v520_v43  ;;  %v6736_v54 = vld [vmem:[#allocation40_spill] sm:$0xff]  ;;  %v6739_v8 = vld [vmem:[#allocation37_spill] sm:$0xff] }
 0x2e9   :  { %v646_v16 = vsel %vm642_vm5, %v6728_v7, %v6734_v60  ;;  %v5569_v35 = vpop.permute.xlu1 %1804  ;;  %v661_v61 = vadd.f32 %v645_v29, %v588_v47  ;;  %v665_v42 = vadd.f32 %v649_v46, %v592_v50  ;;  %v718_v20 = vsel %vm715_vm6, %v6732_v12, %v6735_v38  ;;  %v6741_v43 = vld [vmem:[#allocation44_spill] sm:$0xff]  ;;  %v6742_v46 = vld [vmem:[#allocation46_spill] sm:$0xff]  ;;  %v6744_v50 = vld [vmem:[#allocation43_spill] sm:$0xff] }
 0x2ea   :  { %3579 = vset.pattern.permute.xlu1 %v6727_v31  ;;  %v589_v37 = vadd.f32 %v573_v40, %v516_v2  ;;  %v666_v32 = vadd.f32 %v650_v55, %v593_v49  ;;  %v733_v59 = vadd.f32 %v717_v39, %v5480_v52  ;;  %v719_v26 = vsel %vm715_vm6, %v6735_v38, %v4510_v41  ;;  %v6740_v31 = vld [vmem:[#allocation39_spill] sm:$0xff]  ;;  %v5592_v41 = vpop.permute.xlu0 %1790  ;;  %v6746_v39 = vld [vmem:[#allocation48_spill] sm:$0xff]  ;;  %v6748_v38 = vld [vmem:[#allocation45_spill] sm:$0xff] }
 0x2eb   :  { %2753 = vperm.xlu1 %3579, %v5388_v24   ;;  %v716_v6 = vsel %vm715_vm6, %v6736_v54, %v6733_v28  ;;  %v6737_v34 = vmov 7   ;;  %v721_v15 = vsel %vm715_vm6, %v6739_v8, %v6738_v17  ;;  %v722_v7 = vsel %vm715_vm6, %v6738_v17, %v6740_v31 }
 0x2ec   :  { %3582 = vset.pattern.permute.xlu0 %v6737_v34  ;;  %v662_v47 = vadd.f32 %v646_v16, %v589_v37  ;;  %v723_v52 = vsel %vm715_vm6, %v6740_v31, %v4530_v48  ;;  %v734_v29 = vadd.f32 %v718_v20, %v661_v61  ;;  %v720_v62 = vsel %vm715_vm6, %v6741_v43, %v6739_v8  ;;  %v6747_v61 = vld [vmem:[#allocation49_spill] sm:$0xff] }
 0x2ed   :  { %2813 = vperm.xlu0 %3582, %v5388_v24   ;;  %v790_v40 = vsel %vm788_vm7, %v6743_v63, %v6742_v46  ;;  %v791_v18 = vsel %vm788_vm7, %v6742_v46, %v6744_v50  ;;  %v6745_v55 = vmov 6   ;;  %v732_v12 = vadd.f32 %v716_v6, %v5478_v36  ;;  %v5616_v37 = vpop.permute.xlu1 %1808 }
 0x2ee   :  { %v735_v48 = vadd.f32 %v719_v26, %v662_v47  ;;  %v792_v28 = vsel %vm788_vm7, %v6744_v50, %v4560_v4  ;;  %v789_v2 = vsel %vm788_vm7, %v6746_v39, %v6743_v63  ;;  %v737_v49 = vadd.f32 %v721_v15, %v664_v21  ;;  %v6749_v4 = vld [vmem:[#allocation47_spill] sm:$0xff]  ;;  %v6753_v15 = vld [vmem:[#allocation50_spill] sm:$0xff]  ;;  %v6756_v63 = vld [vmem:[#allocation57_spill] sm:$0xff] }
 0x2ef   :  { %3581 = vset.pattern.permute.xlu1 %v6745_v55  ;;  %v738_v60 = vadd.f32 %v722_v7, %v665_v42  ;;  %v739_v16 = vadd.f32 %v723_v52, %v666_v32  ;;  %v794_v20 = vsel %vm788_vm7, %v6748_v38, %v6747_v61  ;;  %v736_v36 = vadd.f32 %v720_v62, %v663_v14  ;;  %v6751_v42 = vld [vmem:[#allocation52_spill] sm:$0xff]  ;;  %v6754_v7 = vld [vmem:[#allocation51_spill] sm:$0xff] }
 0x2f0   :  { %2783 = vperm.xlu1 %3581, %v5388_v24   ;;  %v806_v26 = vadd.f32 %v790_v40, %v733_v59  ;;  %v807_v54 = vadd.f32 %v791_v18, %v734_v29  ;;  %v795_v6 = vsel %vm788_vm7, %v6747_v61, %v6749_v4  ;;  %v6750_v47 = vmov 8   ;;  %v6752_v59 = vld [vmem:[#allocation54_spill] sm:$0xff]  ;;  %v6755_v62 = vld [vmem:[#allocation56_spill] sm:$0xff]  ;;  %v6757_v40 = vld [vmem:[#allocation53_spill] sm:$0xff] }
 0x2f1   :  { %3585 = vset.pattern.permute.xlu0 %v6750_v47  ;;  %v808_v17 = vadd.f32 %v792_v28, %v735_v48  ;;  %v805_v8 = vadd.f32 %v789_v2, %v732_v12  ;;  %v796_v21 = vsel %vm788_vm7, %v6749_v4, %v4580_v25  ;;  %v793_v32 = vsel %vm788_vm7, %v6751_v42, %v6748_v38  ;;  %v5638_v25 = vpop.permute.xlu0 %1865  ;;  %v6758_v18 = vld [vmem:[#allocation55_spill] sm:$0xff]  ;;  %v6759_v28 = vld [vmem:[#allocation60_spill] sm:$0xff]  ;;  %v6760_v61 = vld [vmem:[#allocation62_spill] sm:$0xff]  ;;  %v5659_v4 = vpop.permute.xlu1 %1800 }
 0x2f2   :  { %2847 = vperm.xlu0 %3585, %v5353_v9   ;;  %v810_v14 = vadd.f32 %v794_v20, %v737_v49  ;;  %v863_v31 = vsel %vm861_vm8, %v6753_v15, %v6752_v59  ;;  %v864_v52 = vsel %vm861_vm8, %v6752_v59, %v6754_v7  ;;  %v865_v29 = vsel %vm861_vm8, %v6754_v7, %v4610_v44  ;;  %v6761_v38 = vld [vmem:[#allocation58_spill] sm:$0xff]  ;;  %v6766_v59 = vld [vmem:[#allocation61_spill] sm:$0xff] }
 0x2f3   :  { %v811_v43 = vadd.f32 %v795_v6, %v738_v60  ;;  %v862_v46 = vsel %vm861_vm8, %v6755_v62, %v6753_v15  ;;  %v867_v50 = vsel %vm861_vm8, %v6757_v40, %v6756_v63  ;;  %v868_v55 = vsel %vm861_vm8, %v6756_v63, %v6758_v18  ;;  %v6769_v62 = vld [vmem:[#allocation70_spill] sm:$0xff] }
 0x2f4   :  { %2787 = vperm.xlu1 %3581, %v5353_v9   ;;  %v812_v48 = vadd.f32 %v796_v21, %v739_v16  ;;  %v809_v12 = vadd.f32 %v793_v32, %v736_v36  ;;  %v869_v44 = vsel %vm861_vm8, %v6758_v18, %v4630_v11  ;;  %v866_v39 = vsel %vm861_vm8, %v6759_v28, %v6757_v40  ;;  %v6764_v32 = vld [vmem:[#allocation64_spill] sm:$0xff]  ;;  %v6771_v40 = vld [vmem:[#allocation67_spill] sm:$0xff] }
 0x2f5   :  { %v879_v2 = vadd.f32 %v863_v31, %v806_v26  ;;  %v880_v49 = vadd.f32 %v864_v52, %v807_v54  ;;  %v881_v60 = vadd.f32 %v865_v29, %v808_v17  ;;  %v936_v20 = vsel %vm934_vm9, %v6761_v38, %v6760_v61  ;;  %v6763_v54 = vld [vmem:[#allocation59_spill] sm:$0xff]  ;;  %v5680_v52 = vpop.permute.xlu0 %1869  ;;  %v6768_v29 = vld [vmem:[#allocation68_spill] sm:$0xff] }
 0x2f6   :  { %v6762_v6 = vmov 10   ;;  %v878_v16 = vadd.f32 %v862_v46, %v805_v8  ;;  %v883_v36 = vadd.f32 %v867_v50, %v810_v14  ;;  %v884_v21 = vadd.f32 %v868_v55, %v811_v43  ;;  %v6767_v31 = vld [vmem:[#allocation63_spill] sm:$0xff]  ;;  %v6770_v46 = vld [vmem:[#allocation66_spill] sm:$0xff] }
 0x2f7   :  { %3587 = vset.pattern.permute.xlu0 %v6762_v6  ;;  %v885_v11 = vadd.f32 %v869_v44, %v812_v48  ;;  %v882_v26 = vadd.f32 %v866_v39, %v809_v12  ;;  %v937_v17 = vsel %vm934_vm9, %v6760_v61, %v6763_v54  ;;  %v938_v42 = vsel %vm934_vm9, %v6763_v54, %v4660_v45  ;;  %v5701_v61 = vpop.permute.xlu1 %1867 }
 0x2f8   :  { %3583 = vset.pattern.permute.xlu1 %v6737_v34  ;;  %2903 = vperm.xlu0 %3587, %v5388_v24   ;;  %v952_v8 = vadd.f32 %v936_v20, %v879_v2  ;;  %v935_v14 = vsel %vm934_vm9, %v6764_v32, %v6761_v38  ;;  %v6765_v34 = vld [vmem:[#allocation65_spill] sm:$0xff]  ;;  %v942_v45 = vsel %vm934_vm9, %v6767_v31, %v4680_v27  ;;  %v6772_v27 = vld [vmem:[#allocation72_spill] sm:$0xff]  ;;  %v6773_v44 = vmov 11   ;;  %v6779_v32 = vld [vmem:[#allocation74_spill] sm:$0xff] }
 0x2f9   :  { %2817 = vperm.xlu1 %3583, %v5353_v9   ;;  %v940_v15 = vsel %vm934_vm9, %v6766_v59, %v6765_v34  ;;  %v941_v7 = vsel %vm934_vm9, %v6765_v34, %v6767_v31  ;;  %v939_v43 = vsel %vm934_vm9, %v6768_v29, %v6766_v59  ;;  %v1009_v63 = vsel %vm1007_vm10, %v6770_v46, %v6769_v62  ;;  %v6780_v34 = vld [vmem:[#allocation75_spill] sm:$0xff]  ;;  %v6783_v29 = vld [vmem:[#allocation77_spill] sm:$0xff] }
 0x2fa   :  { %v1010_v50 = vsel %vm1007_vm10, %v6769_v62, %v6771_v40  ;;  %v953_v18 = vadd.f32 %v937_v17, %v880_v49  ;;  %v954_v55 = vadd.f32 %v938_v42, %v881_v60  ;;  %v1011_v48 = vsel %vm1007_vm10, %v6771_v40, %v4710_v51  ;;  %v6774_v17 = vld [vmem:[#allocation73_spill] sm:$0xff]  ;;  %v6784_v62 = vld [vmem:[#allocation79_spill] sm:$0xff] }
 0x2fb   :  { %v1008_v12 = vsel %vm1007_vm10, %v6772_v27, %v6770_v46  ;;  %v951_v28 = vadd.f32 %v935_v14, %v878_v16  ;;  %v956_v39 = vadd.f32 %v940_v15, %v883_v36  ;;  %v957_v2 = vadd.f32 %v941_v7, %v884_v21  ;;  %v6775_v42 = vld [vmem:[#allocation69_spill] sm:$0xff]  ;;  %v6776_v36 = vld [vmem:[#allocation71_spill] sm:$0xff]  ;;  %v5724_v15 = vpop.permute.xlu0 %1875 }
 0x2fc   :  { %3590 = vset.pattern.permute.xlu0 %v6773_v44  ;;  %v958_v49 = vadd.f32 %v942_v45, %v885_v11  ;;  %v955_v60 = vadd.f32 %v939_v43, %v882_v26  ;;  %v1025_v38 = vadd.f32 %v1009_v63, %v952_v8  ;;  %v1026_v51 = vadd.f32 %v1010_v50, %v953_v18  ;;  %v6777_v11 = vld [vmem:[#allocation76_spill] sm:$0xff]  ;;  %v6778_v8 = vld [vmem:[#allocation78_spill] sm:$0xff]  ;;  %v6782_v45 = vld [vmem:[#allocation81_spill] sm:$0xff] }
 0x2fd   :  { %3584 = vset.pattern.permute.xlu1 %v6750_v47  ;;  %2937 = vperm.xlu0 %3590, %v5353_v9   ;;  %v1027_v20 = vadd.f32 %v1011_v48, %v954_v55  ;;  %v1024_v54 = vadd.f32 %v1008_v12, %v951_v28  ;;  %v1013_v16 = vsel %vm1007_vm10, %v6775_v42, %v6774_v17  ;;  %v6785_v63 = vmov 13   ;;  %v5744_v28 = vpop.permute.xlu1 %1871 }
 0x2fe   :  { %2843 = vperm.xlu1 %3584, %v5388_v24   ;;  %v1014_v21 = vsel %vm1007_vm10, %v6774_v17, %v6776_v36  ;;  %v1015_v47 = vsel %vm1007_vm10, %v6776_v36, %v4730_v22  ;;  %v1012_v26 = vsel %vm1007_vm10, %v6777_v11, %v6775_v42  ;;  %v1082_v14 = vsel %vm6530_vm11, %v6779_v32, %v6778_v8  ;;  %v6781_v22 = vld [vmem:[#allocation80_spill] sm:$0xff]  ;;  %v6789_v11 = vld [vmem:[#allocation82_spill] sm:$0xff] }
 0x2ff   :  { %v1083_v59 = vsel %vm6530_vm11, %v6778_v8, %v6780_v34  ;;  %v1084_v31 = vsel %vm6530_vm11, %v6780_v34, %v4760_v58  ;;  %v1081_v7 = vsel %vm6530_vm11, %v6781_v22, %v6779_v32  ;;  %v1086_v43 = vsel %vm6530_vm11, %v6783_v29, %v6782_v45  ;;  %v6794_v32 = vld [vmem:[#allocation87_spill] sm:$0xff]  ;;  %v5768_v34 = vpop.permute.xlu0 %1879 }
 0x300   :  { %v1087_v46 = vsel %vm6530_vm11, %v6782_v45, %v6784_v62  ;;  %v1029_v40 = vadd.f32 %v1013_v16, %v956_v39  ;;  %v1030_v50 = vadd.f32 %v1014_v21, %v957_v2  ;;  %v1088_v58 = vsel %vm6530_vm11, %v6784_v62, %v4780_v10  ;;  %v6787_v10 = vld [vmem:[#allocation84_spill] sm:$0xff]  ;;  %v6788_v21 = vld [vmem:[#allocation86_spill] sm:$0xff] }
 0x301   :  { %3592 = vset.pattern.permute.xlu0 %v6785_v63  ;;  %v6786_v18 = vmov 9   ;;  %v1031_v55 = vadd.f32 %v1015_v47, %v958_v49  ;;  %v1028_v48 = vadd.f32 %v1012_v26, %v955_v60  ;;  %v1098_v27 = vadd.f32 %v1082_v14, %v1025_v38  ;;  %v6790_v60 = vld [vmem:[#allocation83_spill] sm:$0xff]  ;;  %v6792_v47 = vld [vmem:[#allocation89_spill] sm:$0xff]  ;;  %v6798_v45 = vld [vmem:[#allocation90_spill] sm:$0xff] }
 0x302   :  { %3586 = vset.pattern.permute.xlu1 %v6786_v18  ;;  %2993 = vperm.xlu0 %3592, %v5388_v24   ;;  %v1099_v12 = vadd.f32 %v1083_v59, %v1026_v51  ;;  %v1100_v17 = vadd.f32 %v1084_v31, %v1027_v20  ;;  %v1097_v39 = vadd.f32 %v1081_v7, %v1024_v54  ;;  %v6791_v20 = vld [vmem:[#allocation88_spill] sm:$0xff]  ;;  %v6793_v26 = vld [vmem:[#allocation85_spill] sm:$0xff]  ;;  %v6795_v59 = vmov 14   ;;  %v6797_v7 = vld [vmem:[#allocation94_spill] sm:$0xff] }
 0x303   :  { %2873 = vperm.xlu1 %3586, %v5388_v24   ;;  %v1102_v2 = vadd.f32 %v1086_v43, %v1029_v40  ;;  %v1103_v42 = vadd.f32 %v1087_v46, %v1030_v50  ;;  %v1104_v16 = vadd.f32 %v1088_v58, %v1031_v55  ;;  %v1085_v36 = vsel %vm6530_vm11, %v6787_v10, %v6783_v29  ;;  %v6796_v31 = vld [vmem:[#allocation92_spill] sm:$0xff]  ;;  %v6799_v40 = vld [vmem:[#allocation91_spill] sm:$0xff]  ;;  %v5785_v10 = vpop.permute.xlu1 %1877 }
 0x304   :  { %v1155_v49 = vsel %vm6528_vm12, %v6789_v11, %v6788_v21  ;;  %v1156_v38 = vsel %vm6528_vm12, %v6788_v21, %v6790_v60  ;;  %v1157_v51 = vsel %vm6528_vm12, %v6790_v60, %v4810_v1  ;;  %v1154_v54 = vsel %vm6528_vm12, %v6791_v20, %v6789_v11 }
 0x305   :  { %v1159_v8 = vsel %vm6528_vm12, %v6793_v26, %v6792_v47  ;;  %v1160_v14 = vsel %vm6528_vm12, %v6792_v47, %v6794_v32  ;;  %v1161_v1 = vsel %vm6528_vm12, %v6794_v32, %v4830_v30  ;;  %v1158_v22 = vsel %vm6528_vm12, %v6796_v31, %v6793_v26  ;;  %v6807_v47 = vld [vmem:[#allocation98_spill] sm:$0xff]  ;;  %v6809_v31 = vld [vmem:[#allocation104_spill] sm:$0xff] }
 0x306   :  { %3595 = vset.pattern.permute.xlu0 %v6795_v59  ;;  %v1228_v29 = vsel %vm6526_vm13, %v6798_v45, %v6797_v7  ;;  %v1101_v43 = vadd.f32 %v1085_v36, %v1028_v48  ;;  %v1171_v62 = vadd.f32 %v1155_v49, %v1098_v27  ;;  %v1172_v46 = vadd.f32 %v1156_v38, %v1099_v12  ;;  %v6800_v12 = vld [vmem:[#allocation96_spill] sm:$0xff] }
 0x307   :  { %2877 = vperm.xlu1 %3586, %v5353_v9   ;;  %3027 = vperm.xlu0 %3595, %v5353_v9   ;;  %v1229_v30 = vsel %vm6526_vm13, %v6797_v7, %v6799_v40  ;;  %v1173_v50 = vadd.f32 %v1157_v51, %v1100_v17  ;;  %v1170_v58 = vadd.f32 %v1154_v54, %v1097_v39  ;;  %v6801_v17 = vld [vmem:[#allocation97_spill] sm:$0xff]  ;;  %v6805_v38 = vld [vmem:[#allocation100_spill] sm:$0xff]  ;;  %v6806_v54 = vld [vmem:[#allocation102_spill] sm:$0xff]  ;;  %vm1664_vm12 = vcmask 891904  }
 0x308   :  { %v1175_v18 = vadd.f32 %v1159_v8, %v1102_v2  ;;  %v1176_v55 = vadd.f32 %v1160_v14, %v1103_v42  ;;  %v1177_v21 = vadd.f32 %v1161_v1, %v1104_v16  ;;  %v1174_v11 = vadd.f32 %v1158_v22, %v1101_v43  ;;  %v6802_v39 = vld [vmem:[#allocation93_spill] sm:$0xff]  ;;  %v6804_v16 = vld [vmem:[#allocation95_spill] sm:$0xff] }
 0x309   :  { %v1244_v60 = vadd.f32 %v1228_v29, %v1171_v62  ;;  %v1230_v20 = vsel %vm6526_vm13, %v6799_v40, %v4860_v53  ;;  %v5790_v48 = vpop.permute.xlu0 %2058  ;;  %v1245_v27 = vadd.f32 %v1229_v30, %v1172_v46  ;;  %v1227_v36 = vsel %vm6526_vm13, %v6800_v12, %v6798_v45  ;;  %v6808_v8 = vld [vmem:[#allocation99_spill] sm:$0xff]  ;;  %v6810_v7 = vld [vmem:[#allocation105_spill] sm:$0xff] }
 0x30a   :  { %v1232_v2 = vsel %vm6526_vm13, %v6802_v39, %v6801_v17  ;;  %v6803_v42 = vmov 0   ;;  %v1233_v53 = vsel %vm6526_vm13, %v6801_v17, %v6804_v16  ;;  %v1234_v49 = vsel %vm6526_vm13, %v6804_v16, %v4880_v23  ;;  %v6811_v45 = vld [vmem:[#allocation101_spill] sm:$0xff]  ;;  %v6812_v30 = vld [vmem:[#allocation103_spill] sm:$0xff] }
 0x30b   :  { %3588 = vset.pattern.permute.xlu1 %v6762_v6  ;;  %3597 = vset.pattern.permute.xlu0 %v6803_v42  ;;  %v1231_v51 = vsel %vm6526_vm13, %v6805_v38, %v6802_v39  ;;  %v1246_v6 = vadd.f32 %v1230_v20, %v1173_v50  ;;  %v1301_v26 = vsel %vm6527_vm14, %v6807_v47, %v6806_v54  ;;  %vm1518_vm13 = vcmask 908288   ;;  %v5831_v50 = vpop.permute.xlu1 %1881  ;;  %v6815_v39 = vld [vmem:[#allocation106_spill] sm:$0xff] }
 0x30c   :  { %2907 = vperm.xlu1 %3588, %v5353_v9   ;;  %2622 = vperm.xlu0 %3597, %v5388_v24   ;;  %v1302_v32 = vsel %vm6527_vm14, %v6806_v54, %v6808_v8  ;;  %v1303_v23 = vsel %vm6527_vm14, %v6808_v8, %v4910_v33  ;;  %v1243_v14 = vadd.f32 %v1227_v36, %v1170_v58  ;;  %v6821_v8 = vld [vmem:[#allocation115_spill] sm:$0xff]  ;;  %vm1956_vm11 = vcmask 859136  }
 0x30d   :  { %v1248_v1 = vadd.f32 %v1232_v2, %v1175_v18  ;;  %v1300_v22 = vsel %vm6527_vm14, %v6809_v31, %v6807_v47  ;;  %v1305_v29 = vsel %vm6527_vm14, %v6811_v45, %v6810_v7  ;;  %v5826_v43 = vpop.permute.xlu0 %1863  ;;  %v1249_v62 = vadd.f32 %v1233_v53, %v1176_v55  ;;  %v6813_v55 = vld [vmem:[#allocation108_spill] sm:$0xff]  ;;  %v6820_v47 = vld [vmem:[#allocation111_spill] sm:$0xff] }
 0x30e   :  { %v1250_v46 = vadd.f32 %v1234_v49, %v1177_v21  ;;  %v1247_v40 = vadd.f32 %v1231_v51, %v1174_v11  ;;  %v1306_v33 = vsel %vm6527_vm14, %v6810_v7, %v6812_v30  ;;  %v1317_v58 = vadd.f32 %v1301_v26, %v1244_v60  ;;  %v6814_v11 = vld [vmem:[#allocation110_spill] sm:$0xff]  ;;  %v6818_v51 = vld [vmem:[#allocation113_spill] sm:$0xff] }
 0x30f   :  { %v1318_v18 = vadd.f32 %v1302_v32, %v1245_v27  ;;  %v1319_v20 = vadd.f32 %v1303_v23, %v1246_v6  ;;  %v1307_v12 = vsel %vm6527_vm14, %v6812_v30, %v4930_v5  ;;  %v1316_v36 = vadd.f32 %v1300_v22, %v1243_v14  ;;  %v6816_v27 = vld [vmem:[#allocation107_spill] sm:$0xff]  ;;  %v6819_v6 = vld [vmem:[#allocation109_spill] sm:$0xff]  ;;  %v6825_v7 = vld [vmem:[#allocation114_spill] sm:$0xff] }
 0x310   :  { %3589 = vset.pattern.permute.xlu1 %v6773_v44  ;;  %v1321_v17 = vadd.f32 %v1305_v29, %v1248_v1  ;;  %v1304_v21 = vsel %vm6527_vm14, %v6813_v55, %v6811_v45  ;;  %v1374_v2 = vsel %vm6529_vm15, %v6815_v39, %v6814_v11  ;;  %v1322_v60 = vadd.f32 %v1306_v33, %v1249_v62  ;;  %v6817_v44 = vld [vmem:[#allocation112_spill] sm:$0xff]  ;;  %v6823_v1 = vld [vmem:[#allocation117_spill] sm:$0xff]  ;;  %v6824_v22 = vld [vmem:[#allocation119_spill] sm:$0xff] }
 0x311   :  { %2933 = vperm.xlu1 %3589, %v5388_v24   ;;  %v1375_v16 = vsel %vm6529_vm15, %v6814_v11, %v6816_v27  ;;  %v1376_v5 = vsel %vm6529_vm15, %v6816_v27, %v4960_v57  ;;  %v1373_v53 = vsel %vm6529_vm15, %v6817_v44, %v6815_v39  ;;  %vm1591_vm14 = vcmask 900096   ;;  %v5853_v49 = vpop.permute.xlu0 %1938  ;;  %v6826_v30 = vld [vmem:[#allocation116_spill] sm:$0xff]  ;;  %v6830_v27 = vld [vmem:[#allocation123_spill] sm:$0xff] }
 0x312   :  { %v1323_v38 = vadd.f32 %v1307_v12, %v1250_v46  ;;  %v1378_v54 = vsel %vm6529_vm15, %v6819_v6, %v6818_v51  ;;  %v1379_v26 = vsel %vm6529_vm15, %v6818_v51, %v6820_v47  ;;  %v1380_v57 = vsel %vm6529_vm15, %v6820_v47, %v6821_v8  ;;  %v5864_v32 = vpop.permute.xlu1 %2063  ;;  %v6832_v44 = vld [vmem:[#allocation120_spill] sm:$0xff] }
 0x313   :  { %6822 = vst [vmem:[#allocation4_spill] sm:$0xff] %v5864_v32  ;;  %v1320_v23 = vadd.f32 %v1304_v21, %v1247_v40  ;;  %v1390_v14 = vadd.f32 %v1374_v2, %v1317_v58  ;;  %v1377_v31 = vsel %vm6529_vm15, %v6823_v1, %v6819_v6  ;;  %v1447_v45 = vsel %vm1445_vm0, %v6825_v7, %v6824_v22  ;;  %v6828_v21 = vld [vmem:[#allocation121_spill] sm:$0xff]  ;;  %v6834_v6 = vld [vmem:[#allocation127_spill] sm:$0xff]  ;;  %v6836_v8 = vld [vmem:[#allocation124_spill] sm:$0xff] }
 0x314   :  { %v1391_v29 = vadd.f32 %v1375_v16, %v1318_v18  ;;  %v1392_v62 = vadd.f32 %v1376_v5, %v1319_v20  ;;  %v1389_v46 = vadd.f32 %v1373_v53, %v1316_v36  ;;  %v1448_v33 = vsel %vm1445_vm0, %v6824_v22, %v6826_v30  ;;  %v6829_v36 = vld [vmem:[#allocation122_spill] sm:$0xff]  ;;  %v6838_v1 = vld [vmem:[#allocation131_spill] sm:$0xff]  ;;  %v6875_v32 = vld [vmem:[#allocation160_spill] sm:$0xff] }
 0x315   :  { %v6827_v12 = vmov 12   ;;  %v1394_v40 = vadd.f32 %v1378_v54, %v1321_v17  ;;  %v1395_v58 = vadd.f32 %v1379_v26, %v1322_v60  ;;  %v1396_v55 = vadd.f32 %v1380_v57, %v1323_v38  ;;  %v5879_v39 = vpop.permute.xlu0 %1942  ;;  %v6831_v16 = vld [vmem:[#allocation118_spill] sm:$0xff]  ;;  %v6833_v38 = vld [vmem:[#allocation125_spill] sm:$0xff] }
 0x316   :  { %3591 = vset.pattern.permute.xlu1 %v6827_v12  ;;  %v1449_v11 = vsel %vm1445_vm0, %v6826_v30, %v6828_v21  ;;  %v1393_v18 = vadd.f32 %v1377_v31, %v1320_v23  ;;  %v1463_v20 = vadd.f32 %v1447_v45, %v1390_v14  ;;  %v1446_v2 = vsel %vm1445_vm0, %v6829_v36, %v6825_v7  ;;  %v5888_v60 = vpop.permute.xlu1 %1873  ;;  %v6835_v26 = vld [vmem:[#allocation129_spill] sm:$0xff]  ;;  %v6837_v23 = vld [vmem:[#allocation126_spill] sm:$0xff]  ;;  %v6839_v45 = vld [vmem:[#allocation132_spill] sm:$0xff] }
 0x317   :  { %2963 = vperm.xlu1 %3591, %v5388_v24   ;;  %v1451_v17 = vsel %vm1445_vm0, %v6831_v16, %v6830_v27  ;;  %v1464_v5 = vadd.f32 %v1448_v33, %v1391_v29  ;;  %v1452_v53 = vsel %vm1445_vm0, %v6830_v27, %v6832_v44  ;;  %v1453_v51 = vsel %vm1445_vm0, %v6832_v44, %v6833_v38  ;;  %v6840_v30 = vld [vmem:[#allocation133_spill] sm:$0xff]  ;;  %v6842_v27 = vld [vmem:[#allocation130_spill] sm:$0xff]  ;;  %v6843_v44 = vld [vmem:[#allocation135_spill] sm:$0xff] }
 0x318   :  { %v1450_v54 = vsel %vm1445_vm0, %v6834_v6, %v6831_v16  ;;  %v1465_v47 = vadd.f32 %v1449_v11, %v1392_v62  ;;  %v1520_v57 = vsel %vm1518_vm13, %v6836_v8, %v6835_v26  ;;  %v1521_v14 = vsel %vm1518_vm13, %v6835_v26, %v6837_v23  ;;  %v6841_v62 = vld [vmem:[#allocation128_spill] sm:$0xff] }
 0x319   :  { %v1522_v31 = vsel %vm1518_vm13, %v6837_v23, %v6838_v1  ;;  %v1462_v22 = vadd.f32 %v1446_v2, %v1389_v46  ;;  %v1467_v7 = vadd.f32 %v1451_v17, %v1394_v40  ;;  %v1519_v29 = vsel %vm1518_vm13, %v6839_v45, %v6836_v8  ;;  %v5914_v12 = vpop.permute.xlu0 %1948  ;;  %v6847_v8 = vld [vmem:[#allocation136_spill] sm:$0xff] }
 0x31a   :  { %v1524_v33 = vsel %vm1518_vm13, %v6841_v62, %v6840_v30  ;;  %vm1737_vm0 = vcmask 883712   ;;  %v1468_v21 = vadd.f32 %v1452_v53, %v1395_v58  ;;  %v1469_v11 = vadd.f32 %v1453_v51, %v1396_v55  ;;  %v5920_v40 = vpop.permute.xlu1 %1940  ;;  %v6844_v58 = vld [vmem:[#allocation137_spill] sm:$0xff]  ;;  %v6846_v53 = vld [vmem:[#allocation134_spill] sm:$0xff]  ;;  %v6852_v45 = vld [vmem:[#allocation140_spill] sm:$0xff] }
 0x31b   :  { %2967 = vperm.xlu1 %3591, %v5353_v9   ;;  %v1466_v36 = vadd.f32 %v1450_v54, %v1393_v18  ;;  %v1525_v46 = vsel %vm1518_vm13, %v6840_v30, %v6842_v27  ;;  %v1536_v2 = vadd.f32 %v1520_v57, %v1463_v20  ;;  %v1537_v16 = vadd.f32 %v1521_v14, %v1464_v5  ;;  %v6845_v18 = vld [vmem:[#allocation139_spill] sm:$0xff]  ;;  %v6848_v5 = vld [vmem:[#allocation141_spill] sm:$0xff]  ;;  %v6849_v57 = vld [vmem:[#allocation142_spill] sm:$0xff] }
 0x31c   :  { %v1538_v17 = vadd.f32 %v1522_v31, %v1465_v47  ;;  %v1526_v38 = vsel %vm1518_vm13, %v6842_v27, %v6843_v44  ;;  %vm1810_vm15 = vcmask 875520   ;;  %v1535_v6 = vadd.f32 %v1519_v29, %v1462_v22  ;;  %v6850_v31 = vld [vmem:[#allocation143_spill] sm:$0xff]  ;;  %v6851_v22 = vld [vmem:[#allocation138_spill] sm:$0xff]  ;;  %v6853_v30 = vld [vmem:[#allocation145_spill] sm:$0xff] }
 0x31d   :  { %v1540_v26 = vadd.f32 %v1524_v33, %v1467_v7  ;;  %v1523_v55 = vsel %vm1518_vm13, %v6844_v58, %v6841_v62  ;;  %v1593_v51 = vsel %vm1591_vm14, %v6846_v53, %v6845_v18  ;;  %v1541_v54 = vadd.f32 %v1525_v46, %v1468_v21  ;;  %v5940_v14 = vpop.permute.xlu0 %1952  ;;  %v6855_v46 = vld [vmem:[#allocation149_spill] sm:$0xff]  ;;  %v6856_v44 = vld [vmem:[#allocation144_spill] sm:$0xff] }
 0x31e   :  { %v1594_v20 = vsel %vm1591_vm14, %v6845_v18, %v6847_v8  ;;  %v1595_v47 = vsel %vm1591_vm14, %v6847_v8, %v6848_v5  ;;  %v1592_v23 = vsel %vm1591_vm14, %v6849_v57, %v6846_v53  ;;  %v1542_v1 = vadd.f32 %v1526_v38, %v1469_v11  ;;  %v5952_v33 = vpop.permute.xlu1 %1944  ;;  %v6854_v11 = vld [vmem:[#allocation147_spill] sm:$0xff]  ;;  %v6857_v8 = vld [vmem:[#allocation146_spill] sm:$0xff] }
 0x31f   :  { %3593 = vset.pattern.permute.xlu1 %v6785_v63  ;;  %v1597_v7 = vsel %vm1591_vm14, %v6851_v22, %v6850_v31  ;;  %v1598_v29 = vsel %vm1591_vm14, %v6850_v31, %v6852_v45  ;;  %v1599_v62 = vsel %vm1591_vm14, %v6852_v45, %v6853_v30  ;;  %vm1883_vm13 = vcmask 867328   ;;  %v6864_v30 = vld [vmem:[#allocation157_spill] sm:$0xff] }
 0x320   :  { %2997 = vperm.xlu1 %3593, %v5353_v9   ;;  %v1539_v21 = vadd.f32 %v1523_v55, %v1466_v36  ;;  %v1609_v63 = vadd.f32 %v1593_v51, %v1536_v2  ;;  %v1596_v27 = vsel %vm1591_vm14, %v6854_v11, %v6851_v22  ;;  %v1666_v38 = vsel %vm1664_vm12, %v6856_v44, %v6855_v46  ;;  %v6858_v2 = vld [vmem:[#allocation151_spill] sm:$0xff]  ;;  %v6866_v11 = vld [vmem:[#allocation154_spill] sm:$0xff] }
 0x321   :  { %v1610_v58 = vadd.f32 %v1594_v20, %v1537_v16  ;;  %v1611_v18 = vadd.f32 %v1595_v47, %v1538_v17  ;;  %v1608_v53 = vadd.f32 %v1592_v23, %v1535_v6  ;;  %v1667_v5 = vsel %vm1664_vm12, %v6855_v46, %v6857_v8  ;;  %v5967_v51 = vpop.permute.xlu0 %1936  ;;  %v6859_v16 = vld [vmem:[#allocation152_spill] sm:$0xff]  ;;  %v6860_v6 = vld [vmem:[#allocation153_spill] sm:$0xff] }
 0x322   :  { %v1613_v57 = vadd.f32 %v1597_v7, %v1540_v26  ;;  %v1614_v31 = vadd.f32 %v1598_v29, %v1541_v54  ;;  %v1615_v36 = vadd.f32 %v1599_v62, %v1542_v1  ;;  %v1668_v55 = vsel %vm1664_vm12, %v6857_v8, %v6858_v2  ;;  %v6861_v20 = vld [vmem:[#allocation148_spill] sm:$0xff]  ;;  %v5975_v23 = vpop.permute.xlu1 %1950  ;;  %v6862_v54 = vld [vmem:[#allocation150_spill] sm:$0xff]  ;;  %v6863_v7 = vld [vmem:[#allocation155_spill] sm:$0xff] }
 0x323   :  { %v1612_v22 = vadd.f32 %v1596_v27, %v1539_v21  ;;  %v1682_v45 = vadd.f32 %v1666_v38, %v1609_v63  ;;  %v1665_v17 = vsel %vm1664_vm12, %v6859_v16, %v6856_v44  ;;  %v1670_v47 = vsel %vm1664_vm12, %v6861_v20, %v6860_v6  ;;  %v6865_v63 = vld [vmem:[#allocation159_spill] sm:$0xff]  ;;  %v6867_v27 = vld [vmem:[#allocation156_spill] sm:$0xff]  ;;  %v6868_v44 = vld [vmem:[#allocation161_spill] sm:$0xff] }
 0x324   :  { %3594 = vset.pattern.permute.xlu1 %v6795_v59  ;;  %v1683_v26 = vadd.f32 %v1667_v5, %v1610_v58  ;;  %v1671_v1 = vsel %vm1664_vm12, %v6860_v6, %v6862_v54  ;;  %v1672_v29 = vsel %vm1664_vm12, %v6862_v54, %v6863_v7  ;;  %v1669_v62 = vsel %vm1664_vm12, %v6864_v30, %v6861_v20  ;;  %v6869_v5 = vld [vmem:[#allocation162_spill] sm:$0xff] }
 0x325   :  { %3023 = vperm.xlu1 %3594, %v5388_v24   ;;  %v1684_v21 = vadd.f32 %v1668_v55, %v1611_v18  ;;  %v1739_v59 = vsel %vm1737_vm0, %v6866_v11, %v6865_v63  ;;  %v1740_v46 = vsel %vm1737_vm0, %v6865_v63, %v6867_v27  ;;  %v1741_v38 = vsel %vm1737_vm0, %v6867_v27, %v6868_v44  ;;  %v6870_v18 = vld [vmem:[#allocation163_spill] sm:$0xff]  ;;  %v6871_v55 = vld [vmem:[#allocation158_spill] sm:$0xff]  ;;  %v6003_v6 = vpop.permute.xlu0 %2011 }
 0x326   :  { %vm2029_vm14 = vcmask 850944   ;;  %v1681_v58 = vadd.f32 %v1665_v17, %v1608_v53  ;;  %v1686_v8 = vadd.f32 %v1670_v47, %v1613_v57  ;;  %v1738_v2 = vsel %vm1737_vm0, %v6869_v5, %v6866_v11  ;;  %v6872_v30 = vld [vmem:[#allocation10_spill] sm:$0xff]  ;;  %v6008_v27 = vpop.permute.xlu1 %1954  ;;  %v6873_v47 = vld [vmem:[#allocation11_spill] sm:$0xff] }
 0x327   :  { %v1743_v16 = vsel %vm1737_vm0, %v6871_v55, %v6870_v18  ;;  %v1687_v20 = vadd.f32 %v1671_v1, %v1614_v31  ;;  %v1688_v54 = vadd.f32 %v1672_v29, %v1615_v36  ;;  %v1685_v7 = vadd.f32 %v1669_v62, %v1612_v22  ;;  %v6876_v22 = vld [vmem:[#allocation3_spill] sm:$0xff] }
 0x328   :  { %v1812_v63 = vsel %vm1810_vm15, %v6872_v30, %v5497_v3  ;;  %v1755_v53 = vadd.f32 %v1739_v59, %v1682_v45  ;;  %v1756_v57 = vadd.f32 %v1740_v46, %v1683_v26  ;;  %v1757_v17 = vadd.f32 %v1741_v38, %v1684_v21 }
 0x329   :  { %v1813_v11 = vsel %vm1810_vm15, %v5497_v3, %v6873_v47  ;;  %v6874_v44 = vmov 15   ;;  %v1754_v5 = vadd.f32 %v1738_v2, %v1681_v58  ;;  %v1744_v31 = vsel %vm1737_vm0, %v6870_v18, %v6875_v32  ;;  %v2016_v62 = vpop.permute.xlu0 %2015 }
 0x32a   :  { %3596 = vset.pattern.permute.xlu1 %v6874_v44  ;;  %v1759_v36 = vadd.f32 %v1743_v16, %v1686_v8  ;;  %v1745_v1 = vsel %vm1737_vm0, %v6875_v32, %v6876_v22  ;;  %v1742_v45 = vsel %vm1737_vm0, %v5464_v56, %v6871_v55  ;;  %v1828_v26 = vadd.f32 %v1812_v63, %v1755_v53  ;;  %v6039_v59 = vpop.permute.xlu1 %1946 }
 0x32b   :  { %3053 = vperm.xlu1 %3596, %v5388_v24   ;;  %v1885_v3 = vsel %vm1883_vm13, %v5638_v25, %v5701_v61  ;;  %v1886_v29 = vsel %vm1883_vm13, %v5701_v61, %v5680_v52  ;;  %v1829_v21 = vadd.f32 %v1813_v11, %v1756_v57  ;;  %v1814_v32 = vsel %vm1810_vm15, %v6873_v47, %v5531_v19 }
 0x32c   :  { %v1811_v24 = vsel %vm1810_vm15, %v5592_v41, %v6872_v30  ;;  %v1816_v56 = vsel %vm1810_vm15, %v5495_v0, %v5569_v35  ;;  %v1760_v46 = vadd.f32 %v1744_v31, %v1687_v20  ;;  %v1761_v38 = vadd.f32 %v1745_v1, %v1688_v54 }
 0x32d   :  { %v1958_v61 = vsel %vm1956_vm11, %v5853_v49, %v5920_v40  ;;  %v1959_v19 = vsel %vm1956_vm11, %v5920_v40, %v5879_v39  ;;  %v1758_v58 = vadd.f32 %v1742_v45, %v1685_v7  ;;  %v1817_v41 = vsel %vm1810_vm15, %v5569_v35, %v5546_v13  ;;  %v6054_v54 = vpop.permute.xlu0 %2021 }
 0x32e   :  { %v1901_v8 = vadd.f32 %v1885_v3, %v1828_v26  ;;  %v1902_v2 = vadd.f32 %v1886_v29, %v1829_v21  ;;  %v1830_v18 = vadd.f32 %v1814_v32, %v1757_v17  ;;  %v1827_v55 = vadd.f32 %v1811_v24, %v1754_v5  ;;  %v2014_v63 = vpop.permute.xlu1 %2013 }
 0x32f   :  { %3057 = vperm.xlu1 %3596, %v5353_v9   ;;  %v1832_v16 = vadd.f32 %v1816_v56, %v1759_v36  ;;  %v1887_v20 = vsel %vm1883_vm13, %v5680_v52, %v5744_v28  ;;  %v1818_v40 = vsel %vm1810_vm15, %v5546_v13, %v5616_v37  ;;  %v1815_v35 = vsel %vm1810_vm15, %v5659_v4, %v5495_v0 }
 0x330   :  { %v1974_v7 = vadd.f32 %v1958_v61, %v1901_v8  ;;  %v1975_v30 = vadd.f32 %v1959_v19, %v1902_v2  ;;  %v1833_v53 = vadd.f32 %v1817_v41, %v1760_v46  ;;  %v1960_v57 = vsel %vm1956_vm11, %v5879_v39, %v5952_v33 }
 0x331   :  { %v2031_v52 = vsel %vm2029_vm14, %v6003_v6, %v2014_v63  ;;  %v2032_v28 = vsel %vm2029_vm14, %v2014_v63, %v2016_v62  ;;  %v1903_v17 = vadd.f32 %v1887_v20, %v1830_v18  ;;  %v1884_v13 = vsel %vm1883_vm13, %v5826_v43, %v5638_v25  ;;  %v2026_v11 = vpop.permute.xlu0 %2025  ;;  %v6877_v18 = vld [vmem:[#allocation4_spill] sm:$0xff] }
 0x332   :  { %v2047_v37 = vadd.f32 %v2031_v52, %v1974_v7  ;;  %v2048_v0 = vadd.f32 %v2032_v28, %v1975_v30  ;;  %v1834_v4 = vadd.f32 %v1818_v40, %v1761_v38  ;;  %v1831_v47 = vadd.f32 %v1815_v35, %v1758_v58  ;;  %v2018_v5 = vpop.permute.xlu1 %2017 }
 0x333   :  { %3598 = vset.pattern.permute.xlu1 %v6803_v42  ;;  %v1889_v39 = vsel %vm1883_vm13, %v5724_v15, %v5785_v10  ;;  %v1890_v33 = vsel %vm1883_vm13, %v5785_v10, %v5768_v34  ;;  %v1976_v44 = vadd.f32 %v1960_v57, %v1903_v17  ;;  %v1957_v25 = vsel %vm1956_vm11, %v5967_v51, %v5853_v49 }
 0x334   :  { %2627 = vperm.xlu1 %3598, %v5353_v9   ;;  %v6083_v42 = vadd.f32 %v5790_v48, %v2047_v37  ;;  %v6086_v43 = vadd.f32 %v5790_v48, %v2048_v0  ;;  %v1900_v31 = vadd.f32 %v1884_v13, %v1827_v55  ;;  %v1962_v10 = vsel %vm1956_vm11, %v5914_v12, %v5975_v23 }
 0x335   :  { %v1963_v9 = vsel %vm1956_vm11, %v5975_v23, %v5940_v14  ;;  %v2033_v36 = vsel %vm2029_vm14, %v2016_v62, %v2018_v5  ;;  %v1905_v22 = vadd.f32 %v1889_v39, %v1832_v16  ;;  %v1906_v49 = vadd.f32 %v1890_v33, %v1833_v53  ;;  %v2010_v21 = vpop.permute.xlu0 %2009 }
 0x336   :  { %v2083_v51 = vmin.f32 %v6083_v42, 0.0  ;;  %v2049_v1 = vadd.f32 %v2033_v36, %v1976_v44  ;;  %v1891_v45 = vsel %vm1883_vm13, %v5768_v34, %v5831_v50  ;;  %v1888_v26 = vsel %vm1883_vm13, %v5888_v60, %v5724_v15  ;;  %v2024_v56 = vpop.permute.xlu1 %2023 }
 0x337   :  { %v1973_v3 = vadd.f32 %v1957_v25, %v1900_v31  ;;  %v2084_v29 = vmin.f32 %v6086_v43, 0.0  ;;  %v1978_v23 = vadd.f32 %v1962_v10, %v1905_v22  ;;  %v1979_v32 = vadd.f32 %v1963_v9, %v1906_v49 }
 0x338   :  { %v6104_v62 = vadd.f32 %v5790_v48, %v2049_v1  ;;  %v2030_v24 = vsel %vm2029_vm14, %v2010_v21, %v6003_v6  ;;  %v1964_v34 = vsel %vm1956_vm11, %v5940_v14, %v6008_v27  ;;  %v2035_v15 = vsel %vm2029_vm14, %v6054_v54, %v2024_v56 }
 0x339   :  { %v2046_v50 = vadd.f32 %v2030_v24, %v1973_v3  ;;  %v2036_v60 = vsel %vm2029_vm14, %v2024_v56, %v2026_v11  ;;  %v1907_v46 = vadd.f32 %v1891_v45, %v1834_v4  ;;  %v2092_v38 = vmul.f32 1.442695, %v2083_v51 }
 0x33a   :  { %v2051_v61 = vadd.f32 %v2035_v15, %v1978_v23  ;;  %v2052_v19 = vadd.f32 %v2036_v60, %v1979_v32  ;;  %v2094_v58 = vmul.f32 1.442695, %v2084_v29  ;;  %v2085_v6 = vmin.f32 %v6104_v62, 0.0  ;;  %v2028_v55 = vpop.permute.xlu1 %2027 }
 0x33b   :  { %v6115_v41 = vadd.f32 %v5790_v48, %v2046_v50  ;;  %v1904_v8 = vadd.f32 %v1888_v26, %v1831_v47  ;;  %v1980_v2 = vadd.f32 %v1964_v34, %v1907_v46  ;;  %v1961_v16 = vsel %vm1956_vm11, %v6039_v59, %v5914_v12 }
 0x33c   :  { %v2071_v14 = vadd.f32 %v6877_v18, %v2051_v61  ;;  %v2072_v27 = vadd.f32 %v6877_v18, %v2052_v19  ;;  %v2037_v40 = vsel %vm2029_vm14, %v2026_v11, %v2028_v55  ;;  %v2096_v35 = vmul.f32 1.442695, %v2085_v6 }
 0x33d   :  { %v2082_v20 = vmin.f32 %v6115_v41, 0.0  ;;  %3695 = vpow2.f32 %v2092_v38  ;;  %v2053_v30 = vadd.f32 %v2037_v40, %v1980_v2  ;;  %v1977_v63 = vadd.f32 %v1961_v16, %v1904_v8 }
 0x33e   :  { %v2087_v48 = vmin.f32 %v2071_v14, 0.0  ;;  %v2088_v7 = vmin.f32 %v2072_v27, 0.0  ;;  %3697 = vpow2.f32 %v2094_v58  ;;  %v2020_v28 = vpop.permute.xlu1 %2019  ;;  %vm2075_vm11 = vcmp.gt.f32.partialorder %v6083_v42, 0.0 }
 0x33f   :  { %v2073_v52 = vadd.f32 %v6877_v18, %v2053_v30  ;;  %v2090_v17 = vmul.f32 1.442695, %v2082_v20  ;;  %v2034_v12 = vsel %vm2029_vm14, %v2020_v28, %v6054_v54  ;;  %3699 = vpow2.f32 %v2096_v35 }
 0x340   :  { %v2100_v53 = vmul.f32 1.442695, %v2087_v48  ;;  %v2102_v57 = vmul.f32 1.442695, %v2088_v7  ;;  %v2050_v59 = vadd.f32 %v2034_v12, %v1977_v63  ;;  %vm2079_vm12 = vcmp.gt.f32.partialorder %v2071_v14, 0.0 }
 0x341   :  { %v2089_v13 = vmin.f32 %v2073_v52, 0.0  ;;  %vm2076_vm15 = vcmp.gt.f32.partialorder %v6086_v43, 0.0  ;;  %vm2080_vm0 = vcmp.gt.f32.partialorder %v2072_v27, 0.0  ;;  %vm2077_vm13 = vcmp.gt.f32.partialorder %v6104_v62, 0.0 }
 0x342   :  { %3701 = vpow2.f32 %v2100_v53  ;;  %v2070_v37 = vadd.f32 %v6877_v18, %v2050_v59  ;;  %vm2081_vm14 = vcmp.gt.f32.partialorder %v2073_v52, 0.0 }
 0x343   :  { %3703 = vpow2.f32 %v2102_v57  ;;  %v2104_v0 = vmul.f32 1.442695, %v2089_v13 }
 0x344   :  { %3705 = vpow2.f32 %v2090_v17  ;;  %v2086_v4 = vmin.f32 %v2070_v37, 0.0 }
 0x345   :  { %3707 = vpow2.f32 %v2104_v0 }
 0x346   :  { %v2098_v39 = vmul.f32 1.442695, %v2086_v4 }
 0x347   :  { %v3696_v47 = vpop.eup %3695 }
 0x348   :  { %v3698_v33 = vpop.eup %3697  ;;  %3709 = vpow2.f32 %v2098_v39  ;;  %v3294_v44 = vadd.f32 -1.0, %v3696_v47 }
 0x349   :  { %v3700_v11 = vpop.eup %3699  ;;  %v3295_v5 = vadd.f32 -1.0, %v3698_v33 }
 0x34a   :  { %v2115_v36 = vsel %vm2075_vm11, %v6083_v42, %v3294_v44  ;;  %v3296_v49 = vadd.f32 -1.0, %v3700_v11  ;;  %vm2074_vm11 = vcmp.gt.f32.partialorder %v6115_v41, 0.0 }
 0x34b   :  { %v2116_v45 = vsel %vm2076_vm15, %v6086_v43, %v3295_v5  ;;  %vm3092_vm15 = vcmask 130048  }
 0x34c   :  { %v3702_v25 = vpop.eup %3701  ;;  %v2117_v21 = vsel %vm2077_vm13, %v6104_v62, %v3296_v49 }
 0x34d   :  { %v3704_v54 = vpop.eup %3703  ;;  %v3298_v31 = vadd.f32 -1.0, %v3702_v25 }
 0x34e   :  { %v3299_v10 = vadd.f32 -1.0, %v3704_v54  ;;  %v3706_v9 = vpop.eup %3705 }
 0x34f   :  { %v2119_v22 = vsel %vm2079_vm12, %v2071_v14, %v3298_v31  ;;  %v3708_v51 = vpop.eup %3707  ;;  %v3293_v32 = vadd.f32 -1.0, %v3706_v9  ;;  %vm2078_vm12 = vcmp.gt.f32.partialorder %v2070_v37, 0.0 }
 0x350   :  { %v2123_v1 = vpack.c.bf16 %v2119_v22, %v2115_v36  ;;  %v2120_v26 = vsel %vm2080_vm0, %v2072_v27, %v3299_v10  ;;  %v3300_v3 = vadd.f32 -1.0, %v3708_v51 }
 0x351   :  { %v2124_v29 = vpack.c.bf16 %v2120_v26, %v2116_v45  ;;  %v2114_v43 = vsel %vm2074_vm11, %v6115_v41, %v3293_v32  ;;  %v2638_v15 = vpop.permute.xlu1 %2637  ;;  %vm3281_vm11 = vcmask 24576  }
 0x352   :  { %2566 = vmatprep.mubr.bf16.mxu0 %v2123_v1  ;;  %v2121_v23 = vsel %vm2081_vm14, %v2073_v52, %v3300_v3  ;;  %v3710_v24 = vpop.eup %3709  ;;  %v2634_v8 = vpop.permute.xlu0 %2633  ;;  %vm3263_vm14 = vcmask 31744  }
 0x353   :  { %v2125_v42 = vpack.c.bf16 %v2121_v23, %v2117_v21  ;;  %v3297_v56 = vadd.f32 -1.0, %v3710_v24 }
 0x355   :  { %2609 = vmatprep.mubr.bf16.mxu1 %v2125_v42  ;;  %v2118_v34 = vsel %vm2078_vm12, %v2070_v37, %v3297_v56 }
 0x356   :  { %2610 = vmatmul.mubr.bf16.vlgmr.msra.gmra.mrb[0].mxu1 %v2124_v29  ;;  %v2122_v50 = vpack.c.bf16 %v2118_v34, %v2114_v43 }
 0x357   :  { %v2664_v19 = vpop.permute.xlu1 %2663 }
 0x358   :  { %2567 = vmatmul.mubr.bf16.vlgmr.msra.gmra.mrb[12].mxu0 %v2122_v50 }
 0x35a   :  { %v2668_v63 = vpop.permute.xlu0 %2667 }
 0x35c   :  { %v2694_v20 = vpop.permute.xlu1 %2693 }
 0x360   :  { %v2698_v30 = vpop.permute.xlu1 %2697 }
 0x361   :  { %v2724_v37 = vpop.permute.xlu0 %2723 }
 0x365   :  { %v2728_v52 = vpop.permute.xlu1 %2727 }
 0x367   :  { %v2758_v5 = vpop.permute.xlu0 %2757 }
 0x36a   :  { %v2754_v13 = vpop.permute.xlu1 %2753 }
 0x36c   :  { %v2814_v1 = vpop.permute.xlu0 %2813 }
 0x36f   :  { %v2784_v47 = vpop.permute.xlu1 %2783 }
 0x371   :  { %v2848_v42 = vpop.permute.xlu0 %2847 }
 0x373   :  { %v2788_v25 = vpop.permute.xlu1 %2787 }
 0x378   :  { %v2818_v10 = vpop.permute.xlu1 %2817 }
 0x37d   :  { %v2844_v51 = vpop.permute.xlu1 %2843 }
 0x382   :  { %v2874_v3 = vpop.permute.xlu1 %2873 }
 0x386   :  { %v2878_v24 = vpop.permute.xlu1 %2877 }
 0x38b   :  { %v2908_v34 = vpop.permute.xlu1 %2907 }
 0x429   :  { %v2611_v60 = vpop.f32.mrb[0].mxu1 }
 0x42a   :  { %v2613_v46 = vpop.f32.mrb[1].mxu1 }
 0x42b   :  { %v2615_v38 = vpop.f32.mrb[2].mxu1  ;;  %v2568_v62 = vpop.f32.mrb[12].mxu0 }
 0x42c   :  { %v2617_v61 = vpop.f32.mrb[3].mxu1  ;;  %v6137_v58 = vadd.f32 %v2611_v60, %v2568_v62  ;;  %v2570_v6 = vpop.f32.mrb[13].mxu0 }
 0x42d   :  { %v6139_v2 = vadd.f32 %v2613_v46, %v2570_v6  ;;  %v2572_v18 = vpop.f32.mrb[14].mxu0  ;;  %v2904_v62 = vpop.permute.xlu0 %2903 }
 0x42e   :  { %v6141_v14 = vadd.f32 %v2615_v38, %v2572_v18  ;;  %v2574_v41 = vpop.f32.mrb[15].mxu0  ;;  %v2640_v27 = vmul.f32 %v2634_v8, %v6137_v58  ;;  %v2670_v48 = vmul.f32 %v2664_v19, %v6137_v58  ;;  %v2700_v28 = vmul.f32 %v2694_v20, %v6137_v58  ;;  %v2934_v38 = vpop.permute.xlu1 %2933 }
 0x42f   :  { %v6144_v55 = vadd.f32 %v2617_v61, %v2574_v41  ;;  %v2641_v16 = vmul.f32 %v2634_v8, %v6139_v2  ;;  %v2671_v7 = vmul.f32 %v2664_v19, %v6139_v2  ;;  %v2701_v17 = vmul.f32 %v2694_v20, %v6139_v2 }
 0x430   :  { %2648 = vrot.lane.b32.xlu1 %v2640_v27, %s3745_s0  ;;  %v2642_v40 = vmul.f32 %v2638_v15, %v6141_v14  ;;  %v2672_v53 = vmul.f32 %v2668_v63, %v6141_v14  ;;  %v2702_v12 = vmul.f32 %v2698_v30, %v6141_v14  ;;  %v2730_v0 = vmul.f32 %v2724_v37, %v6137_v58 }
 0x431   :  { %2650 = vrot.lane.b32.xlu0 %v2641_v16, %s3745_s0  ;;  %v2643_v35 = vmul.f32 %v2638_v15, %v6144_v55  ;;  %v2673_v57 = vmul.f32 %v2668_v63, %v6144_v55  ;;  %v2703_v59 = vmul.f32 %v2698_v30, %v6144_v55  ;;  %v2731_v4 = vmul.f32 %v2724_v37, %v6139_v2  ;;  %v2938_v20 = vpop.permute.xlu0 %2937 }
 0x432   :  { %v2732_v39 = vmul.f32 %v2728_v52, %v6141_v14  ;;  %v2733_v33 = vmul.f32 %v2728_v52, %v6144_v55  ;;  %v2760_v11 = vmul.f32 %v2754_v13, %v6137_v58  ;;  %v2761_v44 = vmul.f32 %v2754_v13, %v6139_v2  ;;  %v2964_v6 = vpop.permute.xlu1 %2963 }
 0x433   :  { %v2762_v54 = vmul.f32 %v2758_v5, %v6141_v14  ;;  %v2763_v31 = vmul.f32 %v2758_v5, %v6144_v55  ;;  %v2790_v9 = vmul.f32 %v2784_v47, %v6137_v58  ;;  %v2791_v36 = vmul.f32 %v2784_v47, %v6139_v2 }
 0x434   :  { %2652 = vrot.lane.b32.xlu1 %v2642_v40, %s3745_s0  ;;  %v2792_v22 = vmul.f32 %v2788_v25, %v6141_v14  ;;  %v2793_v49 = vmul.f32 %v2788_v25, %v6144_v55  ;;  %v2820_v45 = vmul.f32 %v2814_v1, %v6137_v58  ;;  %v2821_v26 = vmul.f32 %v2814_v1, %v6139_v2 }
 0x435   :  { %2654 = vrot.lane.b32.xlu0 %v2643_v35, %s3745_s0  ;;  %v2822_v29 = vmul.f32 %v2818_v10, %v6141_v14  ;;  %v2823_v21 = vmul.f32 %v2818_v10, %v6144_v55  ;;  %v2850_v23 = vmul.f32 %v2844_v51, %v6137_v58  ;;  %v2851_v32 = vmul.f32 %v2844_v51, %v6139_v2  ;;  %v2994_v52 = vpop.permute.xlu0 %2993  ;;  %s6879_s0 = smov 114   ;;  %v2194_v51 = vld [vmem:[%s6378_s7] sm:$0xff] }
 0x436   :  { %v2852_v56 = vmul.f32 %v2848_v42, %v6141_v14  ;;  %v2853_v43 = vmul.f32 %v2848_v42, %v6144_v55  ;;  %v2880_v50 = vmul.f32 %v2874_v3, %v6137_v58  ;;  %v2881_v15 = vmul.f32 %v2874_v3, %v6139_v2  ;;  %v2968_v16 = vpop.permute.xlu1 %2967 }
 0x437   :  { %v2882_v60 = vmul.f32 %v2878_v24, %v6141_v14  ;;  %v2883_v46 = vmul.f32 %v2878_v24, %v6144_v55  ;;  %v2910_v61 = vmul.f32 %v2904_v62, %v6137_v58  ;;  %v2911_v19 = vmul.f32 %v2904_v62, %v6139_v2  ;;  %v2201_v24 = vld [vmem:[%s6379_s9 + $0x18] sm:$0xff] }
 0x438   :  { %2678 = vrot.lane.b32.xlu1 %v2670_v48, %s3746_s1  ;;  %v2912_v8 = vmul.f32 %v2908_v34, %v6141_v14  ;;  %v2913_v18 = vmul.f32 %v2908_v34, %v6144_v55  ;;  %v2940_v41 = vmul.f32 %v2934_v38, %v6137_v58  ;;  %v2941_v27 = vmul.f32 %v2934_v38, %v6139_v2 }
 0x439   :  { %2680 = vrot.lane.b32.xlu0 %v2671_v7, %s3746_s1  ;;  %v2942_v40 = vmul.f32 %v2938_v20, %v6141_v14  ;;  %v2943_v35 = vmul.f32 %v2938_v20, %v6144_v55  ;;  %v2970_v7 = vmul.f32 %v2964_v6, %v6137_v58  ;;  %v2971_v30 = vmul.f32 %v2964_v6, %v6139_v2  ;;  %v3028_v47 = vpop.permute.xlu0 %3027 }
 0x43a   :  { %v2998_v48 = vpop.permute.xlu1 %2997  ;;  %v2972_v63 = vmul.f32 %v2968_v16, %v6141_v14 }
 0x43b   :  { %v3003_v13 = vmul.f32 %v2998_v48, %v6144_v55 }
 0x43c   :  { %2682 = vrot.lane.b32.xlu1 %v2672_v53, %s3746_s1  ;;  %v2973_v53 = vmul.f32 %v2968_v16, %v6144_v55 }
 0x43d   :  { %2684 = vrot.lane.b32.xlu0 %v2673_v57, %s3746_s1  ;;  %v2623_v25 = vpop.permute.xlu0 %2622 }
 0x43e   :  { %v3024_v57 = vpop.permute.xlu1 %3023 }
 0x43f   :  { %v3030_v37 = vmul.f32 %v3024_v57, %v6137_v58 }
 0x440   :  { %2708 = vrot.lane.b32.xlu1 %v2700_v28, %s3747_s15  ;;  %v3000_v28 = vmul.f32 %v2994_v52, %v6137_v58 }
 0x441   :  { %2710 = vrot.lane.b32.xlu0 %v2701_v17, %s3747_s15  ;;  %v3001_v17 = vmul.f32 %v2994_v52, %v6139_v2 }
 0x444   :  { %2712 = vrot.lane.b32.xlu1 %v2702_v12, %s3747_s15  ;;  %v3054_v12 = vpop.permute.xlu1 %3053 }
 0x445   :  { %2714 = vrot.lane.b32.xlu0 %v2703_v59, %s3747_s15  ;;  %v3002_v59 = vmul.f32 %v2998_v48, %v6141_v14  ;;  %v3061_v5 = vmul.f32 %v3054_v12, %v6139_v2 }
 0x448   :  { %2738 = vrot.lane.b32.xlu1 %v2730_v0, %s3748_s16  ;;  %v3031_v0 = vmul.f32 %v3024_v57, %v6139_v2 }
 0x449   :  { %2740 = vrot.lane.b32.xlu0 %v2731_v4, %s3748_s16  ;;  %v3058_v4 = vpop.permute.xlu1 %3057 }
 0x44a   :  { %v3062_v10 = vmul.f32 %v3058_v4, %v6141_v14 }
 0x44c   :  { %2742 = vrot.lane.b32.xlu1 %v2732_v39, %s3748_s16  ;;  %v3032_v39 = vmul.f32 %v3028_v47, %v6141_v14 }
 0x44d   :  { %2744 = vrot.lane.b32.xlu0 %v2733_v33, %s3748_s16  ;;  %v3033_v33 = vmul.f32 %v3028_v47, %v6144_v55  ;;  %s6880_s16 = smov 113  }
 0x450   :  { %2768 = vrot.lane.b32.xlu1 %v2760_v11, %s3749_s17  ;;  %v2628_v11 = vpop.permute.xlu1 %2627 }
 0x451   :  { %2770 = vrot.lane.b32.xlu0 %v2761_v44, %s3749_s17  ;;  %v3060_v44 = vmul.f32 %v3054_v12, %v6137_v58 }
 0x454   :  { %2772 = vrot.lane.b32.xlu1 %v2762_v54, %s3749_s17  ;;  %v2192_v54 = vld [vmem:[%s6377_s6] sm:$0xff] }
 0x455   :  { %2774 = vrot.lane.b32.xlu0 %v2763_v31, %s3749_s17  ;;  %3403 = vmatprep.mubr.msk.f32.mxu0 %vm3092_vm15, %v2192_v54 }
 0x458   :  { %2798 = vrot.lane.b32.xlu1 %v2790_v9, %s3750_s18  ;;  %v2630_v9 = vmul.f32 %v2623_v25, %v6137_v58  ;;  %v2631_v58 = vmul.f32 %v2628_v11, %v6141_v14 }
 0x459   :  { %2800 = vrot.lane.b32.xlu0 %v2791_v36, %s3750_s18 }
 0x45c   :  { %2802 = vrot.lane.b32.xlu1 %v2792_v22, %s3750_s18  ;;  %v3063_v22 = vmul.f32 %v3058_v4, %v6144_v55 }
 0x45d   :  { %2804 = vrot.lane.b32.xlu0 %v2793_v49, %s3750_s18 }
 0x460   :  { %2828 = vrot.lane.b32.xlu1 %v2820_v45, %s3751_s19  ;;  %v2195_v45 = vld [vmem:[%s6378_s7 + $0x8] sm:$0xff] }
 0x461   :  { %2830 = vrot.lane.b32.xlu0 %v2821_v26, %s3751_s19 }
 0x464   :  { %2832 = vrot.lane.b32.xlu1 %v2822_v29, %s3751_s19  ;;  %v2198_v29 = vld [vmem:[%s6379_s9] sm:$0xff] }
 0x465   :  { %2834 = vrot.lane.b32.xlu0 %v2823_v21, %s3751_s19  ;;  %v2199_v21 = vld [vmem:[%s6379_s9 + $0x8] sm:$0xff] }
 0x466   :  { %v3445_v14 = vpack.c.bf16 %v2199_v21, %v2198_v29 }
 0x468   :  { %2858 = vrot.lane.b32.xlu1 %v2850_v23, %s3752_s20  ;;  %v2200_v23 = vld [vmem:[%s6379_s9 + $0x10] sm:$0xff]  ;;  %3446 = vmatprep.subr.bf16.mxu1 %v3445_v14 }
 0x469   :  { %2860 = vrot.lane.b32.xlu0 %v2851_v32, %s3752_s20  ;;  %3448 = vmatpush3.bf16.msra.mxu1 %v3445_v14 }
 0x46c   :  { %2862 = vrot.lane.b32.xlu1 %v2852_v56, %s3752_s20  ;;  %v3449_v56 = vpack.c.bf16 %v2201_v24, %v2200_v23 }
 0x46d   :  { %2864 = vrot.lane.b32.xlu0 %v2853_v43, %s3752_s20 }
 0x46e   :  { %3450 = vmatprep.subr.bf16.mxu1 %v3449_v56 }
 0x46f   :  { %3452 = vmatpush3.bf16.msra.mxu1 %v3449_v56 }
 0x470   :  { %2888 = vrot.lane.b32.xlu1 %v2880_v50, %s3753_s21 }
 0x471   :  { %2890 = vrot.lane.b32.xlu0 %v2881_v15, %s3753_s21 }
 0x474   :  { %2892 = vrot.lane.b32.xlu1 %v2882_v60, %s3753_s21 }
 0x475   :  { %2894 = vrot.lane.b32.xlu0 %v2883_v46, %s3753_s21 }
 0x478   :  { %2918 = vrot.lane.b32.xlu1 %v2910_v61, %s3754_s22 }
 0x479   :  { %2920 = vrot.lane.b32.xlu0 %v2911_v19, %s3754_s22 }
 0x47c   :  { %2922 = vrot.lane.b32.xlu1 %v2912_v8, %s3754_s22 }
 0x47d   :  { %2924 = vrot.lane.b32.xlu0 %v2913_v18, %s3754_s22 }
 0x480   :  { %2948 = vrot.lane.b32.xlu1 %v2940_v41, %s3755_s23 }
 0x481   :  { %2950 = vrot.lane.b32.xlu0 %v2941_v27, %s3755_s23 }
 0x484   :  { %2952 = vrot.lane.b32.xlu1 %v2942_v40, %s3755_s23 }
 0x485   :  { %2954 = vrot.lane.b32.xlu0 %v2943_v35, %s3755_s23 }
 0x488   :  { %2978 = vrot.lane.b32.xlu1 %v2970_v7, %s3756_s24 }
 0x489   :  { %2980 = vrot.lane.b32.xlu0 %v2971_v30, %s3756_s24 }
 0x48c   :  { %2982 = vrot.lane.b32.xlu1 %v2972_v63, %s3756_s24 }
 0x48d   :  { %2984 = vrot.lane.b32.xlu0 %v2973_v53, %s3756_s24 }
 0x490   :  { %3008 = vrot.lane.b32.xlu1 %v3000_v28, %s6878_s4 }
 0x491   :  { %3010 = vrot.lane.b32.xlu0 %v3001_v17, %s6878_s4 }
 0x494   :  { %3012 = vrot.lane.b32.xlu1 %v3002_v59, %s6878_s4 }
 0x495   :  { %3014 = vrot.lane.b32.xlu0 %v3003_v13, %s6878_s4 }
 0x498   :  { %3038 = vrot.lane.b32.xlu1 %v3030_v37, %s6879_s0 }
 0x499   :  { %3040 = vrot.lane.b32.xlu0 %v3031_v0, %s6879_s0 }
 0x49c   :  { %3042 = vrot.lane.b32.xlu1 %v3032_v39, %s6879_s0 }
 0x49d   :  { %3044 = vrot.lane.b32.xlu0 %v3033_v33, %s6879_s0 }
 0x4a0   :  { %3068 = vrot.lane.b32.xlu1 %v3060_v44, %s6880_s16 }
 0x4a1   :  { %3070 = vrot.lane.b32.xlu0 %v3061_v5, %s6880_s16 }
 0x4a2   :  { %v2649_v31 = vpop.permute.xlu1 %2648 }
 0x4a3   :  { %v2651_v36 = vpop.permute.xlu0 %2650 }
 0x4a4   :  { %v2656_v2 = vsel %vm350_vm1, %v2649_v31, %v2651_v36  ;;  %3072 = vrot.lane.b32.xlu1 %v3062_v10, %s6880_s16 }
 0x4a5   :  { %v2660_v49 = vadd.f32 %v2656_v2, %v2630_v9  ;;  %3074 = vrot.lane.b32.xlu0 %v3063_v22, %s6880_s16 }
 0x4a6   :  { %v2653_v1 = vpop.permute.xlu1 %2652 }
 0x4a7   :  { %v2655_v26 = vpop.permute.xlu0 %2654 }
 0x4a8   :  { %v2657_v55 = vsel %vm350_vm1, %v2653_v1, %v2655_v26  ;;  %3084 = vperm.xlu1 %3598, %v2194_v51   ;;  %vm6881_vm1 = vcmask 957440  }
 0x4a9   :  { %v2661_v3 = vadd.f32 %v2657_v55, %v2631_v58  ;;  %3089 = vperm.xlu0 %3597, %v2195_v45  }
 0x4aa   :  { %v2679_v32 = vpop.permute.xlu1 %2678 }
 0x4ab   :  { %v2681_v42 = vpop.permute.xlu0 %2680 }
 0x4ac   :  { %v2686_v43 = vsel %vm423_vm2, %v2679_v32, %v2681_v42 }
 0x4ad   :  { %v2690_v34 = vadd.f32 %v2686_v43, %v2660_v49 }
 0x4ae   :  { %v2683_v50 = vpop.permute.xlu1 %2682 }
 0x4af   :  { %v2685_v15 = vpop.permute.xlu0 %2684 }
 0x4b0   :  { %v2687_v60 = vsel %vm423_vm2, %v2683_v50, %v2685_v15  ;;  %vm6882_vm2 = vmmov %vm6881_vm1 }
 0x4b1   :  { %v2691_v46 = vadd.f32 %v2687_v60, %v2661_v3 }
 0x4b2   :  { %v2709_v38 = vpop.permute.xlu1 %2708 }
 0x4b3   :  { %v2711_v62 = vpop.permute.xlu0 %2710 }
 0x4b4   :  { %v2716_v61 = vsel %vm496_vm3, %v2709_v38, %v2711_v62 }
 0x4b5   :  { %v2720_v19 = vadd.f32 %v2716_v61, %v2690_v34 }
 0x4b6   :  { %v2713_v6 = vpop.permute.xlu1 %2712 }
 0x4b7   :  { %v2715_v8 = vpop.permute.xlu0 %2714 }
 0x4b8   :  { %v2717_v18 = vsel %vm496_vm3, %v2713_v6, %v2715_v8  ;;  %vm6883_vm3 = vcmask 949248  }
 0x4b9   :  { %v2721_v41 = vadd.f32 %v2717_v18, %v2691_v46 }
 0x4ba   :  { %v2739_v27 = vpop.permute.xlu1 %2738 }
 0x4bb   :  { %v2741_v16 = vpop.permute.xlu0 %2740 }
 0x4bc   :  { %v2746_v20 = vsel %vm569_vm4, %v2739_v27, %v2741_v16 }
 0x4bd   :  { %v2750_v40 = vadd.f32 %v2746_v20, %v2720_v19 }
 0x4be   :  { %v2743_v35 = vpop.permute.xlu1 %2742 }
 0x4bf   :  { %v2745_v48 = vpop.permute.xlu0 %2744 }
 0x4c0   :  { %v2747_v7 = vsel %vm569_vm4, %v2743_v35, %v2745_v48  ;;  %vm6884_vm4 = vmmov %vm6883_vm3 }
 0x4c1   :  { %v2751_v30 = vadd.f32 %v2747_v7, %v2721_v41 }
 0x4c2   :  { %v2769_v63 = vpop.permute.xlu1 %2768 }
 0x4c3   :  { %v2771_v53 = vpop.permute.xlu0 %2770 }
 0x4c4   :  { %v2776_v57 = vsel %vm642_vm5, %v2769_v63, %v2771_v53 }
 0x4c5   :  { %v2780_v52 = vadd.f32 %v2776_v57, %v2750_v40 }
 0x4c6   :  { %v2773_v28 = vpop.permute.xlu1 %2772 }
 0x4c7   :  { %v2775_v17 = vpop.permute.xlu0 %2774 }
 0x4c8   :  { %v2777_v29 = vsel %vm642_vm5, %v2773_v28, %v2775_v17  ;;  %vm6885_vm5 = vcmask 941056  }
 0x4c9   :  { %v2781_v24 = vadd.f32 %v2777_v29, %v2751_v30 }
 0x4ca   :  { %v2799_v12 = vpop.permute.xlu1 %2798 }
 0x4cb   :  { %v2801_v59 = vpop.permute.xlu0 %2800 }
 0x4cc   :  { %v2806_v32 = vsel %vm715_vm6, %v2799_v12, %v2801_v59 }
 0x4cd   :  { %v2810_v34 = vadd.f32 %v2806_v32, %v2780_v52 }
 0x4ce   :  { %v2803_v13 = vpop.permute.xlu1 %2802 }
 0x4cf   :  { %v2805_v37 = vpop.permute.xlu0 %2804 }
 0x4d0   :  { %v2807_v14 = vsel %vm715_vm6, %v2803_v13, %v2805_v37  ;;  %vm6886_vm6 = vmmov %vm6885_vm5 }
 0x4d1   :  { %v2811_v50 = vadd.f32 %v2807_v14, %v2781_v24  ;;  %v2210_v14 = vld [vmem:[%s6379_s9 + $0x60] sm:$0xff]  ;;  %v2211_v24 = vld [vmem:[%s6379_s9 + $0x68] sm:$0xff] }
 0x4d2   :  { %v2829_v0 = vpop.permute.xlu1 %2828 }
 0x4d3   :  { %v2831_v4 = vpop.permute.xlu0 %2830 }
 0x4d4   :  { %v2836_v42 = vsel %vm788_vm7, %v2829_v0, %v2831_v4 }
 0x4d5   :  { %v2840_v38 = vadd.f32 %v2836_v42, %v2810_v34  ;;  %v3469_v42 = vpack.c.bf16 %v2211_v24, %v2210_v14 }
 0x4d6   :  { %v2833_v47 = vpop.permute.xlu1 %2832 }
 0x4d7   :  { %v2835_v39 = vpop.permute.xlu0 %2834 }
 0x4d8   :  { %v2837_v56 = vsel %vm788_vm7, %v2833_v47, %v2835_v39  ;;  %vm6887_vm7 = vcmask 932864  }
 0x4d9   :  { %v2841_v62 = vadd.f32 %v2837_v56, %v2811_v50  ;;  %v2212_v56 = vld [vmem:[%s6379_s9 + $0x70] sm:$0xff] }
 0x4da   :  { %v2859_v33 = vpop.permute.xlu1 %2858 }
 0x4db   :  { %v2861_v11 = vpop.permute.xlu0 %2860 }
 0x4dc   :  { %v2866_v60 = vsel %vm861_vm8, %v2859_v33, %v2861_v11 }
 0x4dd   :  { %v2870_v8 = vadd.f32 %v2866_v60, %v2840_v38 }
 0x4de   :  { %v2863_v44 = vpop.permute.xlu1 %2862 }
 0x4df   :  { %v2865_v25 = vpop.permute.xlu0 %2864 }
 0x4e0   :  { %v2867_v46 = vsel %vm861_vm8, %v2863_v44, %v2865_v25  ;;  %vm6888_vm8 = vmmov %vm6887_vm7 }
 0x4e1   :  { %v2871_v18 = vadd.f32 %v2867_v46, %v2841_v62 }
 0x4e2   :  { %v2889_v5 = vpop.permute.xlu1 %2888 }
 0x4e3   :  { %v2891_v54 = vpop.permute.xlu0 %2890 }
 0x4e4   :  { %v2896_v61 = vsel %vm934_vm9, %v2889_v5, %v2891_v54 }
 0x4e5   :  { %v2900_v20 = vadd.f32 %v2896_v61, %v2870_v8 }
 0x4e6   :  { %v2893_v31 = vpop.permute.xlu1 %2892 }
 0x4e7   :  { %v2895_v10 = vpop.permute.xlu0 %2894 }
 0x4e8   :  { %v2897_v19 = vsel %vm934_vm9, %v2893_v31, %v2895_v10  ;;  %vm6889_vm9 = vcmask 924672  }
 0x4e9   :  { %v2901_v40 = vadd.f32 %v2897_v19, %v2871_v18 }
 0x4ea   :  { %v2919_v9 = vpop.permute.xlu1 %2918 }
 0x4eb   :  { %v2921_v36 = vpop.permute.xlu0 %2920 }
 0x4ec   :  { %v2926_v27 = vsel %vm1007_vm10, %v2919_v9, %v2921_v36 }
 0x4ed   :  { %v2930_v30 = vadd.f32 %v2926_v27, %v2900_v20  ;;  %v2196_v20 = vld [vmem:[%s6380_s8] sm:$0xff] }
 0x4ee   :  { %v2923_v22 = vpop.permute.xlu1 %2922 }
 0x4ef   :  { %v2925_v2 = vpop.permute.xlu0 %2924 }
 0x4f0   :  { %v2927_v16 = vsel %vm1007_vm10, %v2923_v22, %v2925_v2  ;;  %vm6890_vm10 = vmmov %vm6889_vm9  ;;  %v2193_v2 = vld [vmem:[%s6377_s6 + $0x8] sm:$0xff] }
 0x4f1   :  { %v2931_v63 = vadd.f32 %v2927_v16, %v2901_v40  ;;  %v2197_v40 = vld [vmem:[%s6380_s8 + $0x8] sm:$0xff] }
 0x4f2   :  { %v2949_v49 = vpop.permute.xlu1 %2948 }
 0x4f3   :  { %v2951_v51 = vpop.permute.xlu0 %2950 }
 0x4f4   :  { %v2956_v35 = vsel %vm6881_vm1, %v2949_v49, %v2951_v51  ;;  %v2202_v49 = vld [vmem:[%s6379_s9 + $0x20] sm:$0xff]  ;;  %v2203_v51 = vld [vmem:[%s6379_s9 + $0x28] sm:$0xff] }
 0x4f5   :  { %v2960_v28 = vadd.f32 %v2956_v35, %v2930_v30 }
 0x4f6   :  { %v2953_v1 = vpop.permute.xlu1 %2952 }
 0x4f7   :  { %v2955_v45 = vpop.permute.xlu0 %2954 }
 0x4f8   :  { %v2957_v48 = vsel %vm6882_vm2, %v2953_v1, %v2955_v45  ;;  %v2204_v1 = vld [vmem:[%s6379_s9 + $0x30] sm:$0xff]  ;;  %v3453_v45 = vpack.c.bf16 %v2203_v51, %v2202_v49 }
 0x4f9   :  { %v2961_v17 = vadd.f32 %v2957_v48, %v2931_v63 }
 0x4fa   :  { %v2979_v58 = vpop.permute.xlu1 %2978  ;;  %3454 = vmatprep.subr.bf16.mxu1 %v3453_v45 }
 0x4fb   :  { %v2981_v26 = vpop.permute.xlu0 %2980  ;;  %3456 = vmatpush3.bf16.msra.mxu1 %v3453_v45 }
 0x4fc   :  { %v2986_v57 = vsel %vm6883_vm3, %v2979_v58, %v2981_v26  ;;  %v2205_v58 = vld [vmem:[%s6379_s9 + $0x38] sm:$0xff] }
 0x4fd   :  { %v2990_v37 = vadd.f32 %v2986_v57, %v2960_v28  ;;  %v3457_v26 = vpack.c.bf16 %v2205_v58, %v2204_v1 }
 0x4fe   :  { %v2983_v55 = vpop.permute.xlu1 %2982 }
 0x4ff   :  { %v2985_v3 = vpop.permute.xlu0 %2984  ;;  %3458 = vmatprep.subr.bf16.mxu1 %v3457_v26 }
 0x500   :  { %v2987_v52 = vsel %vm6884_vm4, %v2983_v55, %v2985_v3  ;;  %v2206_v55 = vld [vmem:[%s6379_s9 + $0x40] sm:$0xff]  ;;  %v2207_v3 = vld [vmem:[%s6379_s9 + $0x48] sm:$0xff]  ;;  %3460 = vmatpush3.bf16.msra.mxu1 %v3457_v26 }
 0x501   :  { %v2991_v0 = vadd.f32 %v2987_v52, %v2961_v17  ;;  %v3461_v29 = vpack.c.bf16 %v2207_v3, %v2206_v55 }
 0x502   :  { %v3009_v21 = vpop.permute.xlu1 %3008 }
 0x503   :  { %v3011_v23 = vpop.permute.xlu0 %3010  ;;  %3462 = vmatprep.subr.bf16.mxu1 %v3461_v29 }
 0x504   :  { %v3016_v12 = vsel %vm6885_vm5, %v3009_v21, %v3011_v23  ;;  %v2208_v21 = vld [vmem:[%s6379_s9 + $0x50] sm:$0xff]  ;;  %v2209_v23 = vld [vmem:[%s6379_s9 + $0x58] sm:$0xff]  ;;  %3464 = vmatpush3.bf16.msra.mxu1 %v3461_v29 }
 0x505   :  { %v3020_v33 = vadd.f32 %v3016_v12, %v2990_v37  ;;  %v3465_v32 = vpack.c.bf16 %v2209_v23, %v2208_v21 }
 0x506   :  { %v3013_v43 = vpop.permute.xlu1 %3012 }
 0x507   :  { %v3015_v15 = vpop.permute.xlu0 %3014  ;;  %3466 = vmatprep.subr.bf16.mxu1 %v3465_v32 }
 0x508   :  { %v3017_v59 = vsel %vm6886_vm6, %v3013_v43, %v3015_v15  ;;  %v2213_v43 = vld [vmem:[%s6379_s9 + $0x78] sm:$0xff]  ;;  %3468 = vmatpush3.bf16.msra.mxu1 %v3465_v32 }
 0x509   :  { %v3021_v11 = vadd.f32 %v3017_v59, %v2991_v0  ;;  %3470 = vmatprep.subr.bf16.mxu1 %v3469_v42  ;;  %v3473_v34 = vpack.c.bf16 %v2213_v43, %v2212_v56  ;;  %v3274_v0 = vstv %s6381_s10 }
 0x50a   :  { %v3039_v6 = vpop.permute.xlu1 %3038 }
 0x50b   :  { %v3041_v41 = vpop.permute.xlu0 %3040 }
 0x50c   :  { %v3046_v47 = vsel %vm6887_vm7, %v3039_v6, %v3041_v41  ;;  %3472 = vmatpush3.bf16.msra.mxu1 %v3469_v42 }
 0x50d   :  { %v3050_v5 = vadd.f32 %v3046_v47, %v3020_v33  ;;  %3474 = vmatprep.subr.bf16.mxu1 %v3473_v34 }
 0x50e   :  { %v3043_v7 = vpop.permute.xlu1 %3042 }
 0x50f   :  { %v3045_v53 = vpop.permute.xlu0 %3044 }
 0x510   :  { %v3047_v39 = vsel %vm6888_vm8, %v3043_v7, %v3045_v53  ;;  %3476 = vmatpush3.bf16.msra.mxu1 %v3473_v34 }
 0x511   :  { %v3051_v54 = vadd.f32 %v3047_v39, %v3021_v11 }
 0x512   :  { %v3069_v13 = vpop.permute.xlu1 %3068 }
 0x513   :  { %v3071_v4 = vpop.permute.xlu0 %3070 }
 0x514   :  { %v3076_v44 = vsel %vm6889_vm9, %v3069_v13, %v3071_v4 }
 0x515   :  { %v3080_v9 = vadd.f32 %v3076_v44, %v3050_v5 }
 0x516   :  { %v3073_v25 = vpop.permute.xlu1 %3072 }
 0x517   :  { %v3075_v31 = vpop.permute.xlu0 %3074 }
 0x518   :  { %v3077_v10 = vsel %vm6890_vm10, %v3073_v25, %v3075_v31 }
 0x519   :  { %v3081_v36 = vadd.f32 %v3077_v10, %v3051_v54 }
 0x51b   :  { %v3441_v22 = vpack.c.bf16 %v3081_v36, %v3080_v9 }
 0x51d   :  { %3442 = vmatprep.subr.bf16.mxu0 %v3441_v22 }
 0x51e   :  { %3444 = vmatpush3.bf16.msra.mxu0 %v3441_v22 }
 0x521   :  { %3404 = vmatmul.mubr.msk.f32.vlgmr.msra.gmra.mrb[10].mxu0 %vm3092_vm15, %v2193_v2 }
 0x527   :  { %v3085_v60 = vpop.permute.xlu1 %3084 }
 0x528   :  { %v3090_v50 = vpop.permute.xlu0 %3089 }
 0x5f4   :  { %v3405_v15 = vpop.f32.mrb[10].mxu0 }
 0x5f5   :  { %v3171_v46 = vadd.f32 %v3405_v15, %v3090_v50  ;;  %v3165_v38 = vpop.f32.mrb[11].mxu0 }
 0x5f6   :  { %v3166_v62 = vadd.f32 %v3165_v38, %v3085_v60 }
 0x5f7   :  { %v3177_v61 = vmin.f32 %v3171_v46, 0.0  ;;  %vm3175_vm0 = vcmp.gt.f32.partialorder %v3171_v46, 0.0 }
 0x5f8   :  { %v3176_v19 = vmin.f32 %v3166_v62, 0.0  ;;  %vm3174_vm13 = vcmp.gt.f32.partialorder %v3166_v62, 0.0 }
 0x5f9   :  { %v3180_v6 = vmul.f32 1.442695, %v3177_v61 }
 0x5fa   :  { %v3178_v8 = vmul.f32 1.442695, %v3176_v19 }
 0x5fb   :  { %3711 = vpow2.f32 %v3180_v6 }
 0x5fc   :  { %3713 = vpow2.f32 %v3178_v8 }
 0x605   :  { %v3712_v18 = vpop.eup %3711 }
 0x606   :  { %v3714_v41 = vpop.eup %3713  ;;  %v3368_v27 = vadd.f32 -1.0, %v3712_v18 }
 0x607   :  { %v3367_v16 = vadd.f32 -1.0, %v3714_v41 }
 0x608   :  { %v3185_v35 = vsel %vm3175_vm0, %v3171_v46, %v3368_v27 }
 0x609   :  { %v3184_v48 = vsel %vm3174_vm13, %v3166_v62, %v3367_v16  ;;  %v3187_v30 = vmul.f32 %v3185_v35, %v2197_v40 }
 0x60a   :  { %v3186_v7 = vmul.f32 %v3184_v48, %v2196_v20 }
 0x60c   :  { %3438 = vmatprep.mubr.f32.mxu1 %v3186_v7 }
 0x60d   :  { %3439 = vmatmul.mubr.f32.vlgmr.msra.gmra.mrb[4].mxu1 %v3187_v30 }
 0x6e0   :  { %v3440_v63 = vpop.f32.mrb[4].mxu1 }
 0x6e1   :  { %v3265_v53 = vsel %vm3263_vm14, %v3440_v63, 0.0  ;;  %v3254_v57 = vpop.f32.mrb[5].mxu1 }
 0x6e2   :  { %v3264_v52 = vsel %vm3263_vm14, %v3254_v57, 0.0 }
 0x6e3   :  { %v3266_v28 = vadd.f32 %v3265_v53, %v3264_v52 }
 0x6e5   :  { %v3267_v17 = vrot.slane %v3266_v28, 4 }
 0x6e7   :  { %v3268_v12 = vadd.f32 %v3267_v17, %v3266_v28 }
 0x6e9   :  { %v3269_v59 = vrot.slane %v3268_v12, 2 }
 0x6eb   :  { %v3270_v13 = vadd.f32 %v3269_v59, %v3268_v12 }
 0x6ed   :  { %v3271_v37 = vrot.slane %v3270_v13, 1 }
 0x6ef   :  { %v3272_v4 = vadd.f32 %v3271_v37, %v3270_v13 }
 0x6f1   :  { %v3275_v47 = vadd.f32 %v3274_v0, %v3272_v4 }
 0x6f3   :  { %v3276_v39 = vsub.f32 0.0, %v3275_v47 }
 0x6f5   :  { %v3277_v33 = vmul.f32 1.442695, %v3276_v39 }
 0x6f7   :  { %3715 = vpow2.f32 %v3277_v33 }
 0x701   :  { %v3716_v11 = vpop.eup %3715 }
 0x702   :  { %v3279_v44 = vadd.f32 1.0, %v3716_v11 }
 0x704   :  { %3717 = vrcp.f32 %v3279_v44 }
 0x70e   :  { %v3718_v25 = vpop.eup %3717 }
 0x70f   :  { %3282 = vst.msk [vmem:[%s6382_s11] sm:$0x1] %vm3281_vm11, %v3718_v25 }

</bundles_post_ra>
